<compile_context>
chip_gen: v6e
topology: v6e:2x2x1
jax: 0.10.0
libtpu: 0.0.40
codegen_flags: <defaults>
</compile_context>

<pallas_src>
import functools

import jax
import jax.numpy as jnp
import numpy as np
from jax import lax
from jax.experimental import pallas as pl
from jax.experimental.pallas import tpu as pltpu


_TAPS = tuple((dy, dx) for dy in range(3) for dx in range(3))


# ---------------------------------------------------------------------------
# Kernel helpers
# ---------------------------------------------------------------------------
def _zero_border(pad_ref):
    """Zero only the 1-pixel spatial border of a (N, H+2, W+2, C) pad plane."""
    n, hp, wp, c = pad_ref.shape
    zrow = jnp.zeros((n, 1, wp, c), pad_ref.dtype)
    zcol = jnp.zeros((n, hp, 1, c), pad_ref.dtype)
    pad_ref[:, 0:1, :, :] = zrow
    pad_ref[:, hp - 1:hp, :, :] = zrow
    pad_ref[:, :, 0:1, :] = zcol
    pad_ref[:, :, wp - 1:wp, :] = zcol


def _conv3x3_taps(pad_ref, w_ref, b_ref, m, relu):
    """3x3 conv (pad=1) as a 9-tap MXU accumulation over a zero-bordered plane.

    pad_ref: (N, ho+2, wo+2, Cin) f32 VMEM scratch (border already zero)
    w_ref:   (1, 9, Cin, Cout) bf16 BN-folded tap weights
    b_ref:   (1, 1, Cout) f32 BN-folded bias
    returns  (M=N*ho*wo, Cout) f32
    """
    n, hp, wp, cin = pad_ref.shape
    ho, wo = hp - 2, wp - 2
    cout = w_ref.shape[-1]
    acc = jnp.zeros((m, cout), jnp.float32)
    for k, (dy, dx) in enumerate(_TAPS):                      # static unroll, 9 taps
        tap = pad_ref[:, dy:dy + ho, dx:dx + wo, :].reshape(m, cin)
        acc = acc + jnp.dot(tap.astype(jnp.bfloat16), w_ref[0, k],
                            preferred_element_type=jnp.float32)
    acc = acc + b_ref[0]
    if relu:
        acc = jnp.maximum(acc, 0.0)
    return acc


# ---------------------------------------------------------------------------
# Fused kernel: pool(2x2) -> conv3x3(+folded BN)+ReLU -> conv3x3(+folded BN)+ReLU
# One grid step = one stream (0: img/max-pool, 1: elev/avg-pool), whole batch at once.
# ---------------------------------------------------------------------------
def _down_kernel(x_ref, w1_ref, b1_ref, w2_ref, b2_ref, o_ref, pad1_ref, pad2_ref,
                 *, relu):
    """
    x_ref:    (1, N*ho, 2, wo, 2*cin)  pooling windows pre-grouped by a free reshape
    w1_ref:   (1, 9, cin,  cmid) bf16  BN-folded conv1 tap weights
    b1_ref:   (1, 1, cmid)       f32
    w2_ref:   (1, 9, cmid, cout) bf16  BN-folded conv2 tap weights
    b2_ref:   (1, 1, cout)       f32
    o_ref:    (1, N*ho*wo, cout)
    pad*_ref: f32 VMEM scratch, zero-bordered planes (N, ho+2, wo+2, c)
    """
    n, hp, wp, cin = pad1_ref.shape
    ho, wo = hp - 2, wp - 2
    cmid = pad2_ref.shape[-1]
    m = n * ho * wo

    # ---- 2x2 pool, stride 2 (stream 0: max, stream 1: avg) ----
    top = x_ref[0, :, 0]                        # (N*ho, wo, 2*cin)
    bot = x_ref[0, :, 1]
    rows_mx = jnp.maximum(top, bot)
    rows_sm = top + bot
    pooled_mx = jnp.maximum(rows_mx[..., :cin], rows_mx[..., cin:])
    pooled_av = (rows_sm[..., :cin] + rows_sm[..., cin:]) * 0.25
    # Scalar arithmetic blend (avoids broadcasting an i1 mask): exact for wmax in {0, 1}.
    wmax = (pl.program_id(0) == 0).astype(jnp.float32)
    pooled = wmax * pooled_mx + (1.0 - wmax) * pooled_av      # (N*ho, wo, cin) f32

    # ---- conv1 (+folded BN/bias) + ReLU ----
    _zero_border(pad1_ref)
    pad1_ref[:, 1:1 + ho, 1:1 + wo, :] = pooled.reshape(n, ho, wo, cin)
    y = _conv3x3_taps(pad1_ref, w1_ref, b1_ref, m, relu)      # (M, cmid) f32

    # ---- conv2 (+folded BN/bias) + ReLU (input stays in VMEM) ----
    _zero_border(pad2_ref)
    pad2_ref[:, 1:1 + ho, 1:1 + wo, :] = y.reshape(n, ho, wo, cmid)
    z = _conv3x3_taps(pad2_ref, w2_ref, b2_ref, m, relu)      # (M, cout) f32

    o_ref[0] = z.astype(o_ref.dtype)


# ---------------------------------------------------------------------------
# `down.forward(x, h)` : NCHW in, NCHW out (matching PyTorch), one pallas_call.
# ---------------------------------------------------------------------------
def down_forward(params, x_nchw, h_nchw, *, activate=True):
    x = jnp.transpose(x_nchw, (0, 2, 3, 1))                   # NCHW -> NHWC
    h = jnp.transpose(h_nchw, (0, 2, 3, 1))
    n, hh, ww, cin = x.shape
    ho, wo = hh // 2, ww // 2
    if (hh % 2) or (ww % 2):                                  # pool2d floors odd dims
        x = x[:, :2 * ho, :2 * wo, :]
        h = h[:, :2 * ho, :2 * wo, :]

    # Stream 0 = img (max pool), stream 1 = elev (avg pool).  The reshape groups each 2x2
    # pooling window (row pair -> dim 2, column pair packed into lanes); metadata-only.
    xh = jnp.stack([x, h], axis=0).reshape(2, n * ho, 2, wo, 2 * cin)

    w1, b1, w2, b2 = params["w1"], params["b1"], params["w2"], params["b2"]
    cmid, cout = w1.shape[-1], w2.shape[-1]

    out = pl.pallas_call(
        functools.partial(_down_kernel, relu=activate),
        out_shape=jax.ShapeDtypeStruct((2, n * ho * wo, cout), x.dtype),
        grid=(2,),
        in_specs=[
            pl.BlockSpec((1, n * ho, 2, wo, 2 * cin), lambda s: (s, 0, 0, 0, 0)),
            pl.BlockSpec((1, 9, cin, cmid), lambda s: (s, 0, 0, 0)),
            pl.BlockSpec((1, 1, cmid), lambda s: (s, 0, 0)),
            pl.BlockSpec((1, 9, cmid, cout), lambda s: (s, 0, 0, 0)),
            pl.BlockSpec((1, 1, cout), lambda s: (s, 0, 0)),
        ],
        out_specs=pl.BlockSpec((1, n * ho * wo, cout), lambda s: (s, 0, 0)),
        scratch_shapes=[
            pltpu.VMEM((n, ho + 2, wo + 2, cin), jnp.float32),   # padded pooled plane
            pltpu.VMEM((n, ho + 2, wo + 2, cmid), jnp.float32),  # padded conv1 output
        ],
        compiler_params=pltpu.CompilerParams(
            dimension_semantics=("parallel",),
            vmem_limit_bytes=32 * 1024 * 1024,
        ),
    )(xh, w1, b1, w2, b2)

    out = out.reshape(2, n, ho, wo, cout)                      # metadata-only in HBM
    x_out = jnp.transpose(out[0], (0, 3, 1, 2))                # NHWC -> NCHW
    h_out = jnp.transpose(out[1], (0, 3, 1, 2))
    return x_out, h_out


# ---------------------------------------------------------------------------
# Deterministic synthetic parameters with conv-bias + inference BN folded in, weights
# pre-reshaped to tap layout (9, Cin, Cout) bf16 and stacked over the two streams.
# ---------------------------------------------------------------------------
def _init_conv(key, cin, cout):
    kw, kb = jax.random.split(key)
    bound = 1.0 / (cin * 9) ** 0.5
    w = jax.random.uniform(kw, (3, 3, cin, cout), jnp.float32, -bound, bound)
    b = jax.random.uniform(kb, (cout,), jnp.float32, -bound, bound)
    return w, b


def _init_bn(key, cout, normalize):
    if not normalize:
        return jnp.ones((cout,), jnp.float32), jnp.zeros((cout,), jnp.float32)
    k1, k2, k3, k4 = jax.random.split(key, 4)
    gamma = 1.0 + 0.1 * jax.random.normal(k1, (cout,), jnp.float32)
    beta = 0.1 * jax.random.normal(k2, (cout,), jnp.float32)
    mean = 0.1 * jax.random.normal(k3, (cout,), jnp.float32)
    var = 1.0 + 0.1 * jax.random.uniform(k4, (cout,), jnp.float32)
    eps = 1e-5
    s = gamma / jnp.sqrt(var + eps)
    t = beta - mean * s
    return s, t


def _fold_conv_bn(w, b, s, t):
    """Fold conv bias + inference BN: w' = w*s (tap layout (9,cin,cout)), b' = b*s + t."""
    cin, cout = w.shape[2], w.shape[3]
    w_f = (w * s).reshape(9, cin, cout).astype(jnp.bfloat16)
    b_f = (b * s + t).reshape(1, cout).astype(jnp.float32)
    return w_f, b_f


def init_down_params(key, in_ch, out_ch, normalize=True):
    """Stacked (stream 0 = img, stream 1 = elev) BN-folded parameters for the kernel."""
    ks = jax.random.split(key, 8)
    w1s, b1s, w2s, b2s = [], [], [], []
    for si in range(2):                                        # 0: img, 1: elev
        w1, b1 = _init_conv(ks[4 * si + 0], in_ch, out_ch)
        s1, t1 = _init_bn(ks[4 * si + 1], out_ch, normalize)
        w2, b2 = _init_conv(ks[4 * si + 2], out_ch, out_ch)
        s2, t2 = _init_bn(ks[4 * si + 3], out_ch, normalize)
        w1f, b1f = _fold_conv_bn(w1, b1, s1, t1)
        w2f, b2f = _fold_conv_bn(w2, b2, s2, t2)
        w1s.append(w1f); b1s.append(b1f); w2s.append(w2f); b2s.append(b2f)
    return {"w1": jnp.stack(w1s), "b1": jnp.stack(b1s),
            "w2": jnp.stack(w2s), "b2": jnp.stack(b2s)}


# ---------------------------------------------------------------------------
# Pure-JAX reference (same folded params) for a numerical sanity check.
# ---------------------------------------------------------------------------
def _ref_down(params, x_nchw, h_nchw, activate=True):
    def conv(x, w9, b):                                        # x NHWC, w9 (9,cin,cout)
        w = w9.astype(jnp.float32).reshape(3, 3, w9.shape[1], w9.shape[2])
        y = lax.conv_general_dilated(x, w, (1, 1), "SAME",
                                     dimension_numbers=("NHWC", "HWIO", "NHWC"))
        y = y + b.astype(jnp.float32).reshape(1, 1, 1, -1)
        return jnp.maximum(y, 0.0) if activate else y

    def stream(inp_nchw, s, pool):
        x = jnp.transpose(inp_nchw, (0, 2, 3, 1))
        if pool == "max":
            x = lax.reduce_window(x, -jnp.inf, lax.max, (1, 2, 2, 1), (1, 2, 2, 1), "VALID")
        else:
            x = lax.reduce_window(x, 0.0, lax.add, (1, 2, 2, 1), (1, 2, 2, 1), "VALID") * 0.25
        x = conv(x, params["w1"][s], params["b1"][s])
        x = conv(x, params["w2"][s], params["b2"][s])
        return jnp.transpose(x, (0, 3, 1, 2))

    return stream(x_nchw, 0, "max"), stream(h_nchw, 1, "avg")


if __name__ == "__main__":
    key = jax.random.PRNGKey(0)
    kx, kh, kp = jax.random.split(key, 3)

    batch, in_ch, out_ch, spatial = 2, 4, 8, 16
    x = jax.random.normal(kx, (batch, in_ch, spatial, spatial), jnp.float32)
    h = jax.random.normal(kh, (batch, in_ch, spatial, spatial), jnp.float32)
    params = init_down_params(kp, in_ch, out_ch, normalize=True)

    fwd = jax.jit(down_forward, static_argnames=("activate",))
    x_out, h_out = fwd(params, x, h)
    jax.block_until_ready((x_out, h_out))

    assert x_out.shape == (batch, out_ch, spatial // 2, spatial // 2), x_out.shape
    assert h_out.shape == (batch, out_ch, spatial // 2, spatial // 2), h_out.shape

    # Sanity check vs. a pure-JAX reference using the same folded params
    # (kernel runs its matmuls with bf16 operands -> loose tolerance).
    x_ref, h_ref = _ref_down(params, x, h)
    np.testing.assert_allclose(np.asarray(x_out), np.asarray(x_ref), rtol=5e-2, atol=5e-2)
    np.testing.assert_allclose(np.asarray(h_out), np.asarray(h_ref), rtol=5e-2, atol=5e-2)
    print("KERNEL_OK")
</pallas_src>

<mosaic_0001>
module attributes {stable_mosaic.version = 11 : i64} {
  func.func @_down_kernel(%arg0: i32, %arg1: memref<1x16x2x8x8xf32, #tpu.memory_space<vmem>>, %arg2: memref<1x9x4x8xbf16, #tpu.memory_space<vmem>>, %arg3: memref<1x1x8xf32, #tpu.memory_space<vmem>>, %arg4: memref<1x9x8x8xbf16, #tpu.memory_space<vmem>>, %arg5: memref<1x1x8xf32, #tpu.memory_space<vmem>>, %arg6: memref<1x128x8xf32, #tpu.memory_space<vmem>>, %arg7: memref<2x10x10x4xf32, #tpu.memory_space<vmem>>, %arg8: memref<2x10x10x8xf32, #tpu.memory_space<vmem>>) attributes {dimension_semantics = [#tpu.dimension_semantics<parallel>], iteration_bounds = array<i64: 2>, scalar_prefetch = 0 : i64, scratch_operands = 2 : i64, tpu.core_type = #tpu.core_type<tc>, window_params = [{transform_indices = @transform_0, window_bounds = array<i64: 1, 16, 2, 8, 8>}, {transform_indices = @transform_1, window_bounds = array<i64: 1, 9, 4, 8>}, {transform_indices = @transform_2, window_bounds = array<i64: 1, 1, 8>}, {transform_indices = @transform_3, window_bounds = array<i64: 1, 9, 8, 8>}, {transform_indices = @transform_4, window_bounds = array<i64: 1, 1, 8>}, {transform_indices = @transform_5, window_bounds = array<i64: 1, 128, 8>}]} {
    %c0 = arith.constant 0 : index
    %c0_0 = arith.constant 0 : index
    %c0_1 = arith.constant 0 : index
    %c0_2 = arith.constant 0 : index
    %c0_3 = arith.constant 0 : index
    %0 = vector.load %arg1[%c0, %c0_0, %c0_1, %c0_2, %c0_3] : memref<1x16x2x8x8xf32, #tpu.memory_space<vmem>>, vector<1x16x1x8x8xf32>
    %1 = vector.shape_cast %0 : vector<1x16x1x8x8xf32> to vector<16x8x8xf32>
    %c0_4 = arith.constant 0 : index
    %c0_5 = arith.constant 0 : index
    %c1 = arith.constant 1 : index
    %c0_6 = arith.constant 0 : index
    %c0_7 = arith.constant 0 : index
    %2 = vector.load %arg1[%c0_4, %c0_5, %c1, %c0_6, %c0_7] : memref<1x16x2x8x8xf32, #tpu.memory_space<vmem>>, vector<1x16x1x8x8xf32>
    %3 = vector.shape_cast %2 : vector<1x16x1x8x8xf32> to vector<16x8x8xf32>
    %4 = arith.maximumf %1, %3 : vector<16x8x8xf32>
    %5 = arith.addf %1, %3 : vector<16x8x8xf32>
    %6 = vector.extract_strided_slice %4 {offsets = [0, 0, 0], sizes = [16, 8, 4], strides = [1, 1, 1]} : vector<16x8x8xf32> to vector<16x8x4xf32>
    %7 = vector.extract_strided_slice %4 {offsets = [0, 0, 4], sizes = [16, 8, 4], strides = [1, 1, 1]} : vector<16x8x8xf32> to vector<16x8x4xf32>
    %8 = arith.maximumf %6, %7 : vector<16x8x4xf32>
    %9 = vector.extract_strided_slice %5 {offsets = [0, 0, 0], sizes = [16, 8, 4], strides = [1, 1, 1]} : vector<16x8x8xf32> to vector<16x8x4xf32>
    %10 = vector.extract_strided_slice %5 {offsets = [0, 0, 4], sizes = [16, 8, 4], strides = [1, 1, 1]} : vector<16x8x8xf32> to vector<16x8x4xf32>
    %11 = arith.addf %9, %10 : vector<16x8x4xf32>
    %cst = arith.constant 2.500000e-01 : f32
    %12 = vector.broadcast %cst : f32 to vector<16x8x4xf32>
    %13 = arith.mulf %11, %12 : vector<16x8x4xf32>
    %c0_i32 = arith.constant 0 : i32
    %14 = arith.cmpi eq, %arg0, %c0_i32 : i32
    %15 = arith.extui %14 : i1 to i32
    %16 = arith.sitofp %15 : i32 to f32
    %17 = vector.broadcast %16 : f32 to vector<16x8x4xf32>
    %18 = arith.mulf %17, %8 : vector<16x8x4xf32>
    %cst_8 = arith.constant 1.000000e+00 : f32
    %19 = arith.subf %cst_8, %16 : f32
    %20 = vector.broadcast %19 : f32 to vector<16x8x4xf32>
    %21 = arith.mulf %20, %13 : vector<16x8x4xf32>
    %22 = arith.addf %18, %21 : vector<16x8x4xf32>
    %cst_9 = arith.constant 0.000000e+00 : f32
    %23 = vector.broadcast %cst_9 : f32 to vector<2x1x10x4xf32>
    %cst_10 = arith.constant 0.000000e+00 : f32
    %24 = vector.broadcast %cst_10 : f32 to vector<2x10x1x4xf32>
    %c0_11 = arith.constant 0 : index
    %c0_12 = arith.constant 0 : index
    %c0_13 = arith.constant 0 : index
    %c0_14 = arith.constant 0 : index
    %25 = vector.load %arg7[%c0_11, %c0_12, %c0_13, %c0_14] : memref<2x10x10x4xf32, #tpu.memory_space<vmem>>, vector<2x1x10x4xf32>
    tpu.vector_store %arg7[%c0_11, %c0_12, %c0_13, %c0_14], %23 {strides = array<i32>} : memref<2x10x10x4xf32, #tpu.memory_space<vmem>>, vector<2x1x10x4xf32>,
    %c0_15 = arith.constant 0 : index
    %c9 = arith.constant 9 : index
    %c0_16 = arith.constant 0 : index
    %c0_17 = arith.constant 0 : index
    %26 = vector.load %arg7[%c0_15, %c9, %c0_16, %c0_17] : memref<2x10x10x4xf32, #tpu.memory_space<vmem>>, vector<2x1x10x4xf32>
    tpu.vector_store %arg7[%c0_15, %c9, %c0_16, %c0_17], %23 {strides = array<i32>} : memref<2x10x10x4xf32, #tpu.memory_space<vmem>>, vector<2x1x10x4xf32>,
    %c0_18 = arith.constant 0 : index
    %c0_19 = arith.constant 0 : index
    %c0_20 = arith.constant 0 : index
    %c0_21 = arith.constant 0 : index
    %27 = vector.load %arg7[%c0_18, %c0_19, %c0_20, %c0_21] : memref<2x10x10x4xf32, #tpu.memory_space<vmem>>, vector<2x10x1x4xf32>
    tpu.vector_store %arg7[%c0_18, %c0_19, %c0_20, %c0_21], %24 {strides = array<i32>} : memref<2x10x10x4xf32, #tpu.memory_space<vmem>>, vector<2x10x1x4xf32>,
    %c0_22 = arith.constant 0 : index
    %c0_23 = arith.constant 0 : index
    %c9_24 = arith.constant 9 : index
    %c0_25 = arith.constant 0 : index
    %28 = vector.load %arg7[%c0_22, %c0_23, %c9_24, %c0_25] : memref<2x10x10x4xf32, #tpu.memory_space<vmem>>, vector<2x10x1x4xf32>
    tpu.vector_store %arg7[%c0_22, %c0_23, %c9_24, %c0_25], %24 {strides = array<i32>} : memref<2x10x10x4xf32, #tpu.memory_space<vmem>>, vector<2x10x1x4xf32>,
    %29 = vector.shape_cast %22 : vector<16x8x4xf32> to vector<2x8x8x4xf32>
    %c0_26 = arith.constant 0 : index
    %c1_27 = arith.constant 1 : index
    %c1_28 = arith.constant 1 : index
    %c0_29 = arith.constant 0 : index
    %30 = vector.load %arg7[%c0_26, %c1_27, %c1_28, %c0_29] : memref<2x10x10x4xf32, #tpu.memory_space<vmem>>, vector<2x8x8x4xf32>
    tpu.vector_store %arg7[%c0_26, %c1_27, %c1_28, %c0_29], %29 {strides = array<i32>} : memref<2x10x10x4xf32, #tpu.memory_space<vmem>>, vector<2x8x8x4xf32>,
    %cst_30 = arith.constant 0.000000e+00 : f32
    %31 = vector.broadcast %cst_30 : f32 to vector<128x8xf32>
    %c0_31 = arith.constant 0 : index
    %c0_32 = arith.constant 0 : index
    %c0_33 = arith.constant 0 : index
    %c0_34 = arith.constant 0 : index
    %32 = vector.load %arg7[%c0_31, %c0_32, %c0_33, %c0_34] : memref<2x10x10x4xf32, #tpu.memory_space<vmem>>, vector<2x8x8x4xf32>
    %33 = vector.shape_cast %32 : vector<2x8x8x4xf32> to vector<128x4xf32>
    %34 = arith.truncf %33 : vector<128x4xf32> to vector<128x4xbf16>
    %c0_35 = arith.constant 0 : index
    %c0_36 = arith.constant 0 : index
    %c0_37 = arith.constant 0 : index
    %c0_38 = arith.constant 0 : index
    %35 = vector.load %arg2[%c0_35, %c0_36, %c0_37, %c0_38] : memref<1x9x4x8xbf16, #tpu.memory_space<vmem>>, vector<1x1x4x8xbf16>
    %36 = vector.shape_cast %35 : vector<1x1x4x8xbf16> to vector<4x8xbf16>
    %cst_39 = arith.constant dense<0.000000e+00> : vector<128x8xf32>
    %37 = tpu.matmul %34, %36, %cst_39 {dimension_numbers = #tpu.dot_dimension_numbers<[1], [0], [0], [1], [0, 0, 1, 1], [], []>} : vector<128x4xbf16>, vector<4x8xbf16>, vector<128x8xf32> -> vector<128x8xf32>
    %38 = arith.addf %31, %37 : vector<128x8xf32>
    %c0_40 = arith.constant 0 : index
    %c0_41 = arith.constant 0 : index
    %c1_42 = arith.constant 1 : index
    %c0_43 = arith.constant 0 : index
    %39 = vector.load %arg7[%c0_40, %c0_41, %c1_42, %c0_43] : memref<2x10x10x4xf32, #tpu.memory_space<vmem>>, vector<2x8x8x4xf32>
    %40 = vector.shape_cast %39 : vector<2x8x8x4xf32> to vector<128x4xf32>
    %41 = arith.truncf %40 : vector<128x4xf32> to vector<128x4xbf16>
    %c0_44 = arith.constant 0 : index
    %c1_45 = arith.constant 1 : index
    %c0_46 = arith.constant 0 : index
    %c0_47 = arith.constant 0 : index
    %42 = vector.load %arg2[%c0_44, %c1_45, %c0_46, %c0_47] : memref<1x9x4x8xbf16, #tpu.memory_space<vmem>>, vector<1x1x4x8xbf16>
    %43 = vector.shape_cast %42 : vector<1x1x4x8xbf16> to vector<4x8xbf16>
    %cst_48 = arith.constant dense<0.000000e+00> : vector<128x8xf32>
    %44 = tpu.matmul %41, %43, %cst_48 {dimension_numbers = #tpu.dot_dimension_numbers<[1], [0], [0], [1], [0, 0, 1, 1], [], []>} : vector<128x4xbf16>, vector<4x8xbf16>, vector<128x8xf32> -> vector<128x8xf32>
    %45 = arith.addf %38, %44 : vector<128x8xf32>
    %c0_49 = arith.constant 0 : index
    %c0_50 = arith.constant 0 : index
    %c2 = arith.constant 2 : index
    %c0_51 = arith.constant 0 : index
    %46 = vector.load %arg7[%c0_49, %c0_50, %c2, %c0_51] : memref<2x10x10x4xf32, #tpu.memory_space<vmem>>, vector<2x8x8x4xf32>
    %47 = vector.shape_cast %46 : vector<2x8x8x4xf32> to vector<128x4xf32>
    %48 = arith.truncf %47 : vector<128x4xf32> to vector<128x4xbf16>
    %c0_52 = arith.constant 0 : index
    %c2_53 = arith.constant 2 : index
    %c0_54 = arith.constant 0 : index
    %c0_55 = arith.constant 0 : index
    %49 = vector.load %arg2[%c0_52, %c2_53, %c0_54, %c0_55] : memref<1x9x4x8xbf16, #tpu.memory_space<vmem>>, vector<1x1x4x8xbf16>
    %50 = vector.shape_cast %49 : vector<1x1x4x8xbf16> to vector<4x8xbf16>
    %cst_56 = arith.constant dense<0.000000e+00> : vector<128x8xf32>
    %51 = tpu.matmul %48, %50, %cst_56 {dimension_numbers = #tpu.dot_dimension_numbers<[1], [0], [0], [1], [0, 0, 1, 1], [], []>} : vector<128x4xbf16>, vector<4x8xbf16>, vector<128x8xf32> -> vector<128x8xf32>
    %52 = arith.addf %45, %51 : vector<128x8xf32>
    %c0_57 = arith.constant 0 : index
    %c1_58 = arith.constant 1 : index
    %c0_59 = arith.constant 0 : index
    %c0_60 = arith.constant 0 : index
    %53 = vector.load %arg7[%c0_57, %c1_58, %c0_59, %c0_60] : memref<2x10x10x4xf32, #tpu.memory_space<vmem>>, vector<2x8x8x4xf32>
    %54 = vector.shape_cast %53 : vector<2x8x8x4xf32> to vector<128x4xf32>
    %55 = arith.truncf %54 : vector<128x4xf32> to vector<128x4xbf16>
    %c0_61 = arith.constant 0 : index
    %c3 = arith.constant 3 : index
    %c0_62 = arith.constant 0 : index
    %c0_63 = arith.constant 0 : index
    %56 = vector.load %arg2[%c0_61, %c3, %c0_62, %c0_63] : memref<1x9x4x8xbf16, #tpu.memory_space<vmem>>, vector<1x1x4x8xbf16>
    %57 = vector.shape_cast %56 : vector<1x1x4x8xbf16> to vector<4x8xbf16>
    %cst_64 = arith.constant dense<0.000000e+00> : vector<128x8xf32>
    %58 = tpu.matmul %55, %57, %cst_64 {dimension_numbers = #tpu.dot_dimension_numbers<[1], [0], [0], [1], [0, 0, 1, 1], [], []>} : vector<128x4xbf16>, vector<4x8xbf16>, vector<128x8xf32> -> vector<128x8xf32>
    %59 = arith.addf %52, %58 : vector<128x8xf32>
    %c0_65 = arith.constant 0 : index
    %c1_66 = arith.constant 1 : index
    %c1_67 = arith.constant 1 : index
    %c0_68 = arith.constant 0 : index
    %60 = vector.load %arg7[%c0_65, %c1_66, %c1_67, %c0_68] : memref<2x10x10x4xf32, #tpu.memory_space<vmem>>, vector<2x8x8x4xf32>
    %61 = vector.shape_cast %60 : vector<2x8x8x4xf32> to vector<128x4xf32>
    %62 = arith.truncf %61 : vector<128x4xf32> to vector<128x4xbf16>
    %c0_69 = arith.constant 0 : index
    %c4 = arith.constant 4 : index
    %c0_70 = arith.constant 0 : index
    %c0_71 = arith.constant 0 : index
    %63 = vector.load %arg2[%c0_69, %c4, %c0_70, %c0_71] : memref<1x9x4x8xbf16, #tpu.memory_space<vmem>>, vector<1x1x4x8xbf16>
    %64 = vector.shape_cast %63 : vector<1x1x4x8xbf16> to vector<4x8xbf16>
    %cst_72 = arith.constant dense<0.000000e+00> : vector<128x8xf32>
    %65 = tpu.matmul %62, %64, %cst_72 {dimension_numbers = #tpu.dot_dimension_numbers<[1], [0], [0], [1], [0, 0, 1, 1], [], []>} : vector<128x4xbf16>, vector<4x8xbf16>, vector<128x8xf32> -> vector<128x8xf32>
    %66 = arith.addf %59, %65 : vector<128x8xf32>
    %c0_73 = arith.constant 0 : index
    %c1_74 = arith.constant 1 : index
    %c2_75 = arith.constant 2 : index
    %c0_76 = arith.constant 0 : index
    %67 = vector.load %arg7[%c0_73, %c1_74, %c2_75, %c0_76] : memref<2x10x10x4xf32, #tpu.memory_space<vmem>>, vector<2x8x8x4xf32>
    %68 = vector.shape_cast %67 : vector<2x8x8x4xf32> to vector<128x4xf32>
    %69 = arith.truncf %68 : vector<128x4xf32> to vector<128x4xbf16>
    %c0_77 = arith.constant 0 : index
    %c5 = arith.constant 5 : index
    %c0_78 = arith.constant 0 : index
    %c0_79 = arith.constant 0 : index
    %70 = vector.load %arg2[%c0_77, %c5, %c0_78, %c0_79] : memref<1x9x4x8xbf16, #tpu.memory_space<vmem>>, vector<1x1x4x8xbf16>
    %71 = vector.shape_cast %70 : vector<1x1x4x8xbf16> to vector<4x8xbf16>
    %cst_80 = arith.constant dense<0.000000e+00> : vector<128x8xf32>
    %72 = tpu.matmul %69, %71, %cst_80 {dimension_numbers = #tpu.dot_dimension_numbers<[1], [0], [0], [1], [0, 0, 1, 1], [], []>} : vector<128x4xbf16>, vector<4x8xbf16>, vector<128x8xf32> -> vector<128x8xf32>
    %73 = arith.addf %66, %72 : vector<128x8xf32>
    %c0_81 = arith.constant 0 : index
    %c2_82 = arith.constant 2 : index
    %c0_83 = arith.constant 0 : index
    %c0_84 = arith.constant 0 : index
    %74 = vector.load %arg7[%c0_81, %c2_82, %c0_83, %c0_84] : memref<2x10x10x4xf32, #tpu.memory_space<vmem>>, vector<2x8x8x4xf32>
    %75 = vector.shape_cast %74 : vector<2x8x8x4xf32> to vector<128x4xf32>
    %76 = arith.truncf %75 : vector<128x4xf32> to vector<128x4xbf16>
    %c0_85 = arith.constant 0 : index
    %c6 = arith.constant 6 : index
    %c0_86 = arith.constant 0 : index
    %c0_87 = arith.constant 0 : index
    %77 = vector.load %arg2[%c0_85, %c6, %c0_86, %c0_87] : memref<1x9x4x8xbf16, #tpu.memory_space<vmem>>, vector<1x1x4x8xbf16>
    %78 = vector.shape_cast %77 : vector<1x1x4x8xbf16> to vector<4x8xbf16>
    %cst_88 = arith.constant dense<0.000000e+00> : vector<128x8xf32>
    %79 = tpu.matmul %76, %78, %cst_88 {dimension_numbers = #tpu.dot_dimension_numbers<[1], [0], [0], [1], [0, 0, 1, 1], [], []>} : vector<128x4xbf16>, vector<4x8xbf16>, vector<128x8xf32> -> vector<128x8xf32>
    %80 = arith.addf %73, %79 : vector<128x8xf32>
    %c0_89 = arith.constant 0 : index
    %c2_90 = arith.constant 2 : index
    %c1_91 = arith.constant 1 : index
    %c0_92 = arith.constant 0 : index
    %81 = vector.load %arg7[%c0_89, %c2_90, %c1_91, %c0_92] : memref<2x10x10x4xf32, #tpu.memory_space<vmem>>, vector<2x8x8x4xf32>
    %82 = vector.shape_cast %81 : vector<2x8x8x4xf32> to vector<128x4xf32>
    %83 = arith.truncf %82 : vector<128x4xf32> to vector<128x4xbf16>
    %c0_93 = arith.constant 0 : index
    %c7 = arith.constant 7 : index
    %c0_94 = arith.constant 0 : index
    %c0_95 = arith.constant 0 : index
    %84 = vector.load %arg2[%c0_93, %c7, %c0_94, %c0_95] : memref<1x9x4x8xbf16, #tpu.memory_space<vmem>>, vector<1x1x4x8xbf16>
    %85 = vector.shape_cast %84 : vector<1x1x4x8xbf16> to vector<4x8xbf16>
    %cst_96 = arith.constant dense<0.000000e+00> : vector<128x8xf32>
    %86 = tpu.matmul %83, %85, %cst_96 {dimension_numbers = #tpu.dot_dimension_numbers<[1], [0], [0], [1], [0, 0, 1, 1], [], []>} : vector<128x4xbf16>, vector<4x8xbf16>, vector<128x8xf32> -> vector<128x8xf32>
    %87 = arith.addf %80, %86 : vector<128x8xf32>
    %c0_97 = arith.constant 0 : index
    %c2_98 = arith.constant 2 : index
    %c2_99 = arith.constant 2 : index
    %c0_100 = arith.constant 0 : index
    %88 = vector.load %arg7[%c0_97, %c2_98, %c2_99, %c0_100] : memref<2x10x10x4xf32, #tpu.memory_space<vmem>>, vector<2x8x8x4xf32>
    %89 = vector.shape_cast %88 : vector<2x8x8x4xf32> to vector<128x4xf32>
    %90 = arith.truncf %89 : vector<128x4xf32> to vector<128x4xbf16>
    %c0_101 = arith.constant 0 : index
    %c8 = arith.constant 8 : index
    %c0_102 = arith.constant 0 : index
    %c0_103 = arith.constant 0 : index
    %91 = vector.load %arg2[%c0_101, %c8, %c0_102, %c0_103] : memref<1x9x4x8xbf16, #tpu.memory_space<vmem>>, vector<1x1x4x8xbf16>
    %92 = vector.shape_cast %91 : vector<1x1x4x8xbf16> to vector<4x8xbf16>
    %cst_104 = arith.constant dense<0.000000e+00> : vector<128x8xf32>
    %93 = tpu.matmul %90, %92, %cst_104 {dimension_numbers = #tpu.dot_dimension_numbers<[1], [0], [0], [1], [0, 0, 1, 1], [], []>} : vector<128x4xbf16>, vector<4x8xbf16>, vector<128x8xf32> -> vector<128x8xf32>
    %94 = arith.addf %87, %93 : vector<128x8xf32>
    %c0_105 = arith.constant 0 : index
    %c0_106 = arith.constant 0 : index
    %c0_107 = arith.constant 0 : index
    %95 = vector.load %arg3[%c0_105, %c0_106, %c0_107] : memref<1x1x8xf32, #tpu.memory_space<vmem>>, vector<1x1x8xf32>
    %96 = vector.shape_cast %95 : vector<1x1x8xf32> to vector<1x8xf32>
    %97 = vector.broadcast %96 : vector<1x8xf32> to vector<128x8xf32>
    %98 = arith.addf %94, %97 : vector<128x8xf32>
    %cst_108 = arith.constant 0.000000e+00 : f32
    %99 = vector.broadcast %cst_108 : f32 to vector<128x8xf32>
    %100 = arith.maximumf %98, %99 : vector<128x8xf32>
    %cst_109 = arith.constant 0.000000e+00 : f32
    %101 = vector.broadcast %cst_109 : f32 to vector<2x1x10x8xf32>
    %cst_110 = arith.constant 0.000000e+00 : f32
    %102 = vector.broadcast %cst_110 : f32 to vector<2x10x1x8xf32>
    %c0_111 = arith.constant 0 : index
    %c0_112 = arith.constant 0 : index
    %c0_113 = arith.constant 0 : index
    %c0_114 = arith.constant 0 : index
    %103 = vector.load %arg8[%c0_111, %c0_112, %c0_113, %c0_114] : memref<2x10x10x8xf32, #tpu.memory_space<vmem>>, vector<2x1x10x8xf32>
    tpu.vector_store %arg8[%c0_111, %c0_112, %c0_113, %c0_114], %101 {strides = array<i32>} : memref<2x10x10x8xf32, #tpu.memory_space<vmem>>, vector<2x1x10x8xf32>,
    %c0_115 = arith.constant 0 : index
    %c9_116 = arith.constant 9 : index
    %c0_117 = arith.constant 0 : index
    %c0_118 = arith.constant 0 : index
    %104 = vector.load %arg8[%c0_115, %c9_116, %c0_117, %c0_118] : memref<2x10x10x8xf32, #tpu.memory_space<vmem>>, vector<2x1x10x8xf32>
    tpu.vector_store %arg8[%c0_115, %c9_116, %c0_117, %c0_118], %101 {strides = array<i32>} : memref<2x10x10x8xf32, #tpu.memory_space<vmem>>, vector<2x1x10x8xf32>,
    %c0_119 = arith.constant 0 : index
    %c0_120 = arith.constant 0 : index
    %c0_121 = arith.constant 0 : index
    %c0_122 = arith.constant 0 : index
    %105 = vector.load %arg8[%c0_119, %c0_120, %c0_121, %c0_122] : memref<2x10x10x8xf32, #tpu.memory_space<vmem>>, vector<2x10x1x8xf32>
    tpu.vector_store %arg8[%c0_119, %c0_120, %c0_121, %c0_122], %102 {strides = array<i32>} : memref<2x10x10x8xf32, #tpu.memory_space<vmem>>, vector<2x10x1x8xf32>,
    %c0_123 = arith.constant 0 : index
    %c0_124 = arith.constant 0 : index
    %c9_125 = arith.constant 9 : index
    %c0_126 = arith.constant 0 : index
    %106 = vector.load %arg8[%c0_123, %c0_124, %c9_125, %c0_126] : memref<2x10x10x8xf32, #tpu.memory_space<vmem>>, vector<2x10x1x8xf32>
    tpu.vector_store %arg8[%c0_123, %c0_124, %c9_125, %c0_126], %102 {strides = array<i32>} : memref<2x10x10x8xf32, #tpu.memory_space<vmem>>, vector<2x10x1x8xf32>,
    %107 = vector.shape_cast %100 : vector<128x8xf32> to vector<2x8x8x8xf32>
    %c0_127 = arith.constant 0 : index
    %c1_128 = arith.constant 1 : index
    %c1_129 = arith.constant 1 : index
    %c0_130 = arith.constant 0 : index
    %108 = vector.load %arg8[%c0_127, %c1_128, %c1_129, %c0_130] : memref<2x10x10x8xf32, #tpu.memory_space<vmem>>, vector<2x8x8x8xf32>
    tpu.vector_store %arg8[%c0_127, %c1_128, %c1_129, %c0_130], %107 {strides = array<i32>} : memref<2x10x10x8xf32, #tpu.memory_space<vmem>>, vector<2x8x8x8xf32>,
    %cst_131 = arith.constant 0.000000e+00 : f32
    %109 = vector.broadcast %cst_131 : f32 to vector<128x8xf32>
    %c0_132 = arith.constant 0 : index
    %c0_133 = arith.constant 0 : index
    %c0_134 = arith.constant 0 : index
    %c0_135 = arith.constant 0 : index
    %110 = vector.load %arg8[%c0_132, %c0_133, %c0_134, %c0_135] : memref<2x10x10x8xf32, #tpu.memory_space<vmem>>, vector<2x8x8x8xf32>
    %111 = vector.shape_cast %110 : vector<2x8x8x8xf32> to vector<128x8xf32>
    %112 = arith.truncf %111 : vector<128x8xf32> to vector<128x8xbf16>
    %c0_136 = arith.constant 0 : index
    %c0_137 = arith.constant 0 : index
    %c0_138 = arith.constant 0 : index
    %c0_139 = arith.constant 0 : index
    %113 = vector.load %arg4[%c0_136, %c0_137, %c0_138, %c0_139] : memref<1x9x8x8xbf16, #tpu.memory_space<vmem>>, vector<1x1x8x8xbf16>
    %114 = vector.shape_cast %113 : vector<1x1x8x8xbf16> to vector<8x8xbf16>
    %cst_140 = arith.constant dense<0.000000e+00> : vector<128x8xf32>
    %115 = tpu.matmul %112, %114, %cst_140 {dimension_numbers = #tpu.dot_dimension_numbers<[1], [0], [0], [1], [0, 0, 1, 1], [], []>} : vector<128x8xbf16>, vector<8x8xbf16>, vector<128x8xf32> -> vector<128x8xf32>
    %116 = arith.addf %109, %115 : vector<128x8xf32>
    %c0_141 = arith.constant 0 : index
    %c0_142 = arith.constant 0 : index
    %c1_143 = arith.constant 1 : index
    %c0_144 = arith.constant 0 : index
    %117 = vector.load %arg8[%c0_141, %c0_142, %c1_143, %c0_144] : memref<2x10x10x8xf32, #tpu.memory_space<vmem>>, vector<2x8x8x8xf32>
    %118 = vector.shape_cast %117 : vector<2x8x8x8xf32> to vector<128x8xf32>
    %119 = arith.truncf %118 : vector<128x8xf32> to vector<128x8xbf16>
    %c0_145 = arith.constant 0 : index
    %c1_146 = arith.constant 1 : index
    %c0_147 = arith.constant 0 : index
    %c0_148 = arith.constant 0 : index
    %120 = vector.load %arg4[%c0_145, %c1_146, %c0_147, %c0_148] : memref<1x9x8x8xbf16, #tpu.memory_space<vmem>>, vector<1x1x8x8xbf16>
    %121 = vector.shape_cast %120 : vector<1x1x8x8xbf16> to vector<8x8xbf16>
    %cst_149 = arith.constant dense<0.000000e+00> : vector<128x8xf32>
    %122 = tpu.matmul %119, %121, %cst_149 {dimension_numbers = #tpu.dot_dimension_numbers<[1], [0], [0], [1], [0, 0, 1, 1], [], []>} : vector<128x8xbf16>, vector<8x8xbf16>, vector<128x8xf32> -> vector<128x8xf32>
    %123 = arith.addf %116, %122 : vector<128x8xf32>
    %c0_150 = arith.constant 0 : index
    %c0_151 = arith.constant 0 : index
    %c2_152 = arith.constant 2 : index
    %c0_153 = arith.constant 0 : index
    %124 = vector.load %arg8[%c0_150, %c0_151, %c2_152, %c0_153] : memref<2x10x10x8xf32, #tpu.memory_space<vmem>>, vector<2x8x8x8xf32>
    %125 = vector.shape_cast %124 : vector<2x8x8x8xf32> to vector<128x8xf32>
    %126 = arith.truncf %125 : vector<128x8xf32> to vector<128x8xbf16>
    %c0_154 = arith.constant 0 : index
    %c2_155 = arith.constant 2 : index
    %c0_156 = arith.constant 0 : index
    %c0_157 = arith.constant 0 : index
    %127 = vector.load %arg4[%c0_154, %c2_155, %c0_156, %c0_157] : memref<1x9x8x8xbf16, #tpu.memory_space<vmem>>, vector<1x1x8x8xbf16>
    %128 = vector.shape_cast %127 : vector<1x1x8x8xbf16> to vector<8x8xbf16>
    %cst_158 = arith.constant dense<0.000000e+00> : vector<128x8xf32>
    %129 = tpu.matmul %126, %128, %cst_158 {dimension_numbers = #tpu.dot_dimension_numbers<[1], [0], [0], [1], [0, 0, 1, 1], [], []>} : vector<128x8xbf16>, vector<8x8xbf16>, vector<128x8xf32> -> vector<128x8xf32>
    %130 = arith.addf %123, %129 : vector<128x8xf32>
    %c0_159 = arith.constant 0 : index
    %c1_160 = arith.constant 1 : index
    %c0_161 = arith.constant 0 : index
    %c0_162 = arith.constant 0 : index
    %131 = vector.load %arg8[%c0_159, %c1_160, %c0_161, %c0_162] : memref<2x10x10x8xf32, #tpu.memory_space<vmem>>, vector<2x8x8x8xf32>
    %132 = vector.shape_cast %131 : vector<2x8x8x8xf32> to vector<128x8xf32>
    %133 = arith.truncf %132 : vector<128x8xf32> to vector<128x8xbf16>
    %c0_163 = arith.constant 0 : index
    %c3_164 = arith.constant 3 : index
    %c0_165 = arith.constant 0 : index
    %c0_166 = arith.constant 0 : index
    %134 = vector.load %arg4[%c0_163, %c3_164, %c0_165, %c0_166] : memref<1x9x8x8xbf16, #tpu.memory_space<vmem>>, vector<1x1x8x8xbf16>
    %135 = vector.shape_cast %134 : vector<1x1x8x8xbf16> to vector<8x8xbf16>
    %cst_167 = arith.constant dense<0.000000e+00> : vector<128x8xf32>
    %136 = tpu.matmul %133, %135, %cst_167 {dimension_numbers = #tpu.dot_dimension_numbers<[1], [0], [0], [1], [0, 0, 1, 1], [], []>} : vector<128x8xbf16>, vector<8x8xbf16>, vector<128x8xf32> -> vector<128x8xf32>
    %137 = arith.addf %130, %136 : vector<128x8xf32>
    %c0_168 = arith.constant 0 : index
    %c1_169 = arith.constant 1 : index
    %c1_170 = arith.constant 1 : index
    %c0_171 = arith.constant 0 : index
    %138 = vector.load %arg8[%c0_168, %c1_169, %c1_170, %c0_171] : memref<2x10x10x8xf32, #tpu.memory_space<vmem>>, vector<2x8x8x8xf32>
    %139 = vector.shape_cast %138 : vector<2x8x8x8xf32> to vector<128x8xf32>
    %140 = arith.truncf %139 : vector<128x8xf32> to vector<128x8xbf16>
    %c0_172 = arith.constant 0 : index
    %c4_173 = arith.constant 4 : index
    %c0_174 = arith.constant 0 : index
    %c0_175 = arith.constant 0 : index
    %141 = vector.load %arg4[%c0_172, %c4_173, %c0_174, %c0_175] : memref<1x9x8x8xbf16, #tpu.memory_space<vmem>>, vector<1x1x8x8xbf16>
    %142 = vector.shape_cast %141 : vector<1x1x8x8xbf16> to vector<8x8xbf16>
    %cst_176 = arith.constant dense<0.000000e+00> : vector<128x8xf32>
    %143 = tpu.matmul %140, %142, %cst_176 {dimension_numbers = #tpu.dot_dimension_numbers<[1], [0], [0], [1], [0, 0, 1, 1], [], []>} : vector<128x8xbf16>, vector<8x8xbf16>, vector<128x8xf32> -> vector<128x8xf32>
    %144 = arith.addf %137, %143 : vector<128x8xf32>
    %c0_177 = arith.constant 0 : index
    %c1_178 = arith.constant 1 : index
    %c2_179 = arith.constant 2 : index
    %c0_180 = arith.constant 0 : index
    %145 = vector.load %arg8[%c0_177, %c1_178, %c2_179, %c0_180] : memref<2x10x10x8xf32, #tpu.memory_space<vmem>>, vector<2x8x8x8xf32>
    %146 = vector.shape_cast %145 : vector<2x8x8x8xf32> to vector<128x8xf32>
    %147 = arith.truncf %146 : vector<128x8xf32> to vector<128x8xbf16>
    %c0_181 = arith.constant 0 : index
    %c5_182 = arith.constant 5 : index
    %c0_183 = arith.constant 0 : index
    %c0_184 = arith.constant 0 : index
    %148 = vector.load %arg4[%c0_181, %c5_182, %c0_183, %c0_184] : memref<1x9x8x8xbf16, #tpu.memory_space<vmem>>, vector<1x1x8x8xbf16>
    %149 = vector.shape_cast %148 : vector<1x1x8x8xbf16> to vector<8x8xbf16>
    %cst_185 = arith.constant dense<0.000000e+00> : vector<128x8xf32>
    %150 = tpu.matmul %147, %149, %cst_185 {dimension_numbers = #tpu.dot_dimension_numbers<[1], [0], [0], [1], [0, 0, 1, 1], [], []>} : vector<128x8xbf16>, vector<8x8xbf16>, vector<128x8xf32> -> vector<128x8xf32>
    %151 = arith.addf %144, %150 : vector<128x8xf32>
    %c0_186 = arith.constant 0 : index
    %c2_187 = arith.constant 2 : index
    %c0_188 = arith.constant 0 : index
    %c0_189 = arith.constant 0 : index
    %152 = vector.load %arg8[%c0_186, %c2_187, %c0_188, %c0_189] : memref<2x10x10x8xf32, #tpu.memory_space<vmem>>, vector<2x8x8x8xf32>
    %153 = vector.shape_cast %152 : vector<2x8x8x8xf32> to vector<128x8xf32>
    %154 = arith.truncf %153 : vector<128x8xf32> to vector<128x8xbf16>
    %c0_190 = arith.constant 0 : index
    %c6_191 = arith.constant 6 : index
    %c0_192 = arith.constant 0 : index
    %c0_193 = arith.constant 0 : index
    %155 = vector.load %arg4[%c0_190, %c6_191, %c0_192, %c0_193] : memref<1x9x8x8xbf16, #tpu.memory_space<vmem>>, vector<1x1x8x8xbf16>
    %156 = vector.shape_cast %155 : vector<1x1x8x8xbf16> to vector<8x8xbf16>
    %cst_194 = arith.constant dense<0.000000e+00> : vector<128x8xf32>
    %157 = tpu.matmul %154, %156, %cst_194 {dimension_numbers = #tpu.dot_dimension_numbers<[1], [0], [0], [1], [0, 0, 1, 1], [], []>} : vector<128x8xbf16>, vector<8x8xbf16>, vector<128x8xf32> -> vector<128x8xf32>
    %158 = arith.addf %151, %157 : vector<128x8xf32>
    %c0_195 = arith.constant 0 : index
    %c2_196 = arith.constant 2 : index
    %c1_197 = arith.constant 1 : index
    %c0_198 = arith.constant 0 : index
    %159 = vector.load %arg8[%c0_195, %c2_196, %c1_197, %c0_198] : memref<2x10x10x8xf32, #tpu.memory_space<vmem>>, vector<2x8x8x8xf32>
    %160 = vector.shape_cast %159 : vector<2x8x8x8xf32> to vector<128x8xf32>
    %161 = arith.truncf %160 : vector<128x8xf32> to vector<128x8xbf16>
    %c0_199 = arith.constant 0 : index
    %c7_200 = arith.constant 7 : index
    %c0_201 = arith.constant 0 : index
    %c0_202 = arith.constant 0 : index
    %162 = vector.load %arg4[%c0_199, %c7_200, %c0_201, %c0_202] : memref<1x9x8x8xbf16, #tpu.memory_space<vmem>>, vector<1x1x8x8xbf16>
    %163 = vector.shape_cast %162 : vector<1x1x8x8xbf16> to vector<8x8xbf16>
    %cst_203 = arith.constant dense<0.000000e+00> : vector<128x8xf32>
    %164 = tpu.matmul %161, %163, %cst_203 {dimension_numbers = #tpu.dot_dimension_numbers<[1], [0], [0], [1], [0, 0, 1, 1], [], []>} : vector<128x8xbf16>, vector<8x8xbf16>, vector<128x8xf32> -> vector<128x8xf32>
    %165 = arith.addf %158, %164 : vector<128x8xf32>
    %c0_204 = arith.constant 0 : index
    %c2_205 = arith.constant 2 : index
    %c2_206 = arith.constant 2 : index
    %c0_207 = arith.constant 0 : index
    %166 = vector.load %arg8[%c0_204, %c2_205, %c2_206, %c0_207] : memref<2x10x10x8xf32, #tpu.memory_space<vmem>>, vector<2x8x8x8xf32>
    %167 = vector.shape_cast %166 : vector<2x8x8x8xf32> to vector<128x8xf32>
    %168 = arith.truncf %167 : vector<128x8xf32> to vector<128x8xbf16>
    %c0_208 = arith.constant 0 : index
    %c8_209 = arith.constant 8 : index
    %c0_210 = arith.constant 0 : index
    %c0_211 = arith.constant 0 : index
    %169 = vector.load %arg4[%c0_208, %c8_209, %c0_210, %c0_211] : memref<1x9x8x8xbf16, #tpu.memory_space<vmem>>, vector<1x1x8x8xbf16>
    %170 = vector.shape_cast %169 : vector<1x1x8x8xbf16> to vector<8x8xbf16>
    %cst_212 = arith.constant dense<0.000000e+00> : vector<128x8xf32>
    %171 = tpu.matmul %168, %170, %cst_212 {dimension_numbers = #tpu.dot_dimension_numbers<[1], [0], [0], [1], [0, 0, 1, 1], [], []>} : vector<128x8xbf16>, vector<8x8xbf16>, vector<128x8xf32> -> vector<128x8xf32>
    %172 = arith.addf %165, %171 : vector<128x8xf32>
    %c0_213 = arith.constant 0 : index
    %c0_214 = arith.constant 0 : index
    %c0_215 = arith.constant 0 : index
    %173 = vector.load %arg5[%c0_213, %c0_214, %c0_215] : memref<1x1x8xf32, #tpu.memory_space<vmem>>, vector<1x1x8xf32>
    %174 = vector.shape_cast %173 : vector<1x1x8xf32> to vector<1x8xf32>
    %175 = vector.broadcast %174 : vector<1x8xf32> to vector<128x8xf32>
    %176 = arith.addf %172, %175 : vector<128x8xf32>
    %cst_216 = arith.constant 0.000000e+00 : f32
    %177 = vector.broadcast %cst_216 : f32 to vector<128x8xf32>
    %178 = arith.maximumf %176, %177 : vector<128x8xf32>
    %c0_217 = arith.constant 0 : index
    %c0_218 = arith.constant 0 : index
    %c0_219 = arith.constant 0 : index
    %179 = vector.load %arg6[%c0_217, %c0_218, %c0_219] : memref<1x128x8xf32, #tpu.memory_space<vmem>>, vector<1x128x8xf32>
    %180 = vector.shape_cast %179 : vector<1x128x8xf32> to vector<128x8xf32>
    %181 = vector.shape_cast %178 : vector<128x8xf32> to vector<1x128x8xf32>
    tpu.vector_store %arg6[%c0_217, %c0_218, %c0_219], %181 {strides = array<i32>} : memref<1x128x8xf32, #tpu.memory_space<vmem>>, vector<1x128x8xf32>,
    return
  }
  func.func @transform_0(%arg0: i32) -> (i32, i32, i32, i32, i32) {
    %c0_i32 = arith.constant 0 : i32
    %c0_i32_0 = arith.constant 0 : i32
    %c0_i32_1 = arith.constant 0 : i32
    %c0_i32_2 = arith.constant 0 : i32
    %c0_i32_3 = arith.constant 0 : i32
    return %arg0, %c0_i32, %c0_i32_0, %c0_i32_1, %c0_i32_2 : i32, i32, i32, i32, i32
  }
  func.func @transform_1(%arg0: i32) -> (i32, i32, i32, i32) {
    %c0_i32 = arith.constant 0 : i32
    %c0_i32_0 = arith.constant 0 : i32
    %c0_i32_1 = arith.constant 0 : i32
    %c0_i32_2 = arith.constant 0 : i32
    return %arg0, %c0_i32, %c0_i32_0, %c0_i32_1 : i32, i32, i32, i32
  }
  func.func @transform_2(%arg0: i32) -> (i32, i32, i32) {
    %c0_i32 = arith.constant 0 : i32
    %c0_i32_0 = arith.constant 0 : i32
    %c0_i32_1 = arith.constant 0 : i32
    return %arg0, %c0_i32, %c0_i32_0 : i32, i32, i32
  }
  func.func @transform_3(%arg0: i32) -> (i32, i32, i32, i32) {
    %c0_i32 = arith.constant 0 : i32
    %c0_i32_0 = arith.constant 0 : i32
    %c0_i32_1 = arith.constant 0 : i32
    %c0_i32_2 = arith.constant 0 : i32
    return %arg0, %c0_i32, %c0_i32_0, %c0_i32_1 : i32, i32, i32, i32
  }
  func.func @transform_4(%arg0: i32) -> (i32, i32, i32) {
    %c0_i32 = arith.constant 0 : i32
    %c0_i32_0 = arith.constant 0 : i32
    %c0_i32_1 = arith.constant 0 : i32
    return %arg0, %c0_i32, %c0_i32_0 : i32, i32, i32
  }
  func.func @transform_5(%arg0: i32) -> (i32, i32, i32) {
    %c0_i32 = arith.constant 0 : i32
    %c0_i32_0 = arith.constant 0 : i32
    %c0_i32_1 = arith.constant 0 : i32
    return %arg0, %c0_i32, %c0_i32_0 : i32, i32, i32
  }
}

</mosaic_0001>

<bundles_post_ra>
// kernel: down_forward.1
= control target key start
LH: loop header
LB: loop body
LE: loop exit
PB: predicated region body
PF: predicated region fallthrough
CT: control target
= control target key end

     0   :  { %s4593_s18 = smov 0   ;;  %s6284_s0 = inlined_call_operand.vmem [shape: f32[2,16,2,8,8], index: 0, kind: input, shape index: {}]   ;;  %s6285_s1 = inlined_call_operand.vmem [shape: bf16[2,9,4,8], index: 1, kind: input, shape index: {}]   ;;  %s6286_s2 = inlined_call_operand.vmem [shape: f32[2,1,8], index: 2, kind: input, shape index: {}]   ;;  %s6287_s3 = inlined_call_operand.vmem [shape: bf16[2,9,8,8], index: 3, kind: input, shape index: {}]   ;;  %s6288_s4 = inlined_call_operand.vmem [shape: f32[2,1,8], index: 4, kind: input, shape index: {}]   ;;  %s6289_s5 = inlined_call_operand.vmem [shape: f32[2,128,8], index: 5, kind: output, shape index: {}]  }
   0x1 LB: > { %s4599_s19 = sadd.s32 4294967295, %s4559_s18   ;;  %p3848_p0 = scmp.ge.s32.totalorder %s4559_s18, 1  ;;  %s4559_s18 = sphi %s4593_s18, %s15_s18  }
   0x2   : > { %p223_p1 = scmp.lt.s32.totalorder %s4559_s18, 3 }
   0x4   : > { %p224_p2 = pnand %p3848_p0, %p223_p1 }
   0x6   : > { %227 = sbr.rel (%p224_p2) target bundleno = 881 (0x371), region = 40 }
   0xb   : > { %p267_p3 = scmp.lt.s32.totalorder %s4599_s19, 1  ;;  %vm589_vm0 = vcmask 31744   ;;  %vm591_vm1 = vcmask 25600   ;;  %v4561_v3 = vmov 0.0   ;;  %vm600_vm2 = vcmask 24576   ;;  %s4562_s25 = smov 124  }
   0xc   : > { %590 = vst.msk [vmem:[#allocation2] sm:$0xff] %vm589_vm0, %v4561_v3  ;;  %593 = vst.msk [vmem:[#allocation2 + $0xa0] sm:$0xff] %vm589_vm0, %v4561_v3  ;;  %vm733_vm3 = vcmask 1041408   ;;  %p535_p4 = scmp.eq.s32.totalorder %s4599_s19, 0  ;;  %vm2304_vm4 = vcmask 1043456   ;;  %vm2160_vm5 = vcmask 64512  }
   0xd   : > { %s4605_s20 = scalar_select %p267_p3, %s4599_s19, 1  ;;  %592 = vst.msk [vmem:[#allocation2 + $0x8] sm:$0x3] %vm591_vm1, %v4561_v3  ;;  %594 = vst.msk [vmem:[#allocation2 + $0xa8] sm:$0x3] %vm591_vm1, %v4561_v3  ;;  %vm2171_vm6 = vcmask 57344  }
   0xe   : > { %596 = vst.msk [vmem:[#allocation2 + $0x90] sm:$0xff] %vm589_vm0, %v4561_v3  ;;  %598 = vst.msk [vmem:[#allocation2 + $0x130] sm:$0xff] %vm589_vm0, %v4561_v3  ;;  %s536_s30 = scalar_select %p535_p4, 1, 0  ;;  %vm2162_vm7 = vcmask 58368  }
   0xf   : > { %s4035_s21 = sshll.u32 %s4605_s20, 8  ;;  %597 = vst.msk [vmem:[#allocation2 + $0x98] sm:$0x3] %vm591_vm1, %v4561_v3  ;;  %599 = vst.msk [vmem:[#allocation2 + $0x138] sm:$0x3] %vm591_vm1, %v4561_v3  ;;  %s4541_s26 = smul.u32 18, %s4605_s20 }
  0x10   : > { %s4611_s24 = scalar_lea.vmem %s6284_s0, %s4035_s21  ;;  %621 = vst.msk [vmem:[#allocation2 + $0x9] sm:$0x1] %vm600_vm2, %v4561_v3  ;;  %601 = vst.msk [vmem:[#allocation2] sm:$0x1] %vm600_vm2, %v4561_v3  ;;  %s537_s6 = scvt.s32.f32 %s536_s30 }
  0x11   : > { %v4614_v0 = vld [vmem:[%s4611_s24 + $0x20] sm:$0xff]  ;;  %v3857_v1 = vld [vmem:[%s4611_s24 + $0x28] sm:$0xff]  ;;  %v295_v6 = vld [vmem:[%s4611_s24 + $0x10] sm:$0xff]  ;;  %602 = vst.msk [vmem:[#allocation2 + $0x10] sm:$0x1] %vm600_vm2, %v4561_v3  ;;  %s4743_s29 = scalar_lea.vmem %s6285_s1, %s4541_s26  ;;  %s4542_s8 = smul.u32 36, %s4605_s20 }
  0x12   : > { %v294_v2 = vld [vmem:[%s4611_s24] sm:$0xff]  ;;  %v4631_v4 = vadd.f32 %v3857_v1, %v4614_v0  ;;  %v3855_v5 = vld [vmem:[%s4611_s24 + $0x8] sm:$0xff]  ;;  %v3856_v7 = vld [vmem:[%s4611_s24 + $0x18] sm:$0xff]  ;;  %603 = vst.msk [vmem:[#allocation2 + $0x20] sm:$0x1] %vm600_vm2, %v4561_v3  ;;  %v4727_v11 = vmax.f32 %v4614_v0, %v3857_v1  ;;  %s555_s7 = ssub.f32 1.0, %s537_s6  ;;  %s279_s14 = scalar_lea.vmem %s6286_s2, %s4605_s20 }
  0x13   : > { %604 = vst.msk [vmem:[#allocation2 + $0x30] sm:$0x1] %vm600_vm2, %v4561_v3  ;;  %605 = vst.msk [vmem:[#allocation2 + $0x40] sm:$0x1] %vm600_vm2, %v4561_v3  ;;  %v4716_v8 = vadd.f32 %v3855_v5, %v294_v2  ;;  %v4720_v9 = vmax.f32 %v294_v2, %v3855_v5  ;;  %v4724_v10 = vadd.f32 %v3856_v7, %v295_v6  ;;  %v298_v13 = vld [vmem:[%s4611_s24 + $0x40] sm:$0xff]  ;;  %v3859_v14 = vld [vmem:[%s4611_s24 + $0x48] sm:$0xff]  ;;  %s5289_s11 = scalar_lea.vmem %s6287_s3, %s4542_s8  ;;  %s287_s17 = scalar_lea.vmem %s6288_s4, %s4605_s20 }
  0x14   : > { %606 = vst.msk [vmem:[#allocation2 + $0x50] sm:$0x1] %vm600_vm2, %v4561_v3  ;;  %607 = vst.msk [vmem:[#allocation2 + $0x60] sm:$0x1] %vm600_vm2, %v4561_v3  ;;  %459 = vrot.lane.b32.xlu1 %v4631_v4, %s4562_s25  ;;  %v4734_v12 = vmax.f32 %v295_v6, %v3856_v7  ;;  %v297_v15 = vld [vmem:[%s4611_s24 + $0x30] sm:$0xff]  ;;  %v3858_v16 = vld [vmem:[%s4611_s24 + $0x38] sm:$0xff]  ;;  %v4748_v18 = vadd.f32 %v3859_v14, %v298_v13  ;;  %v4773_v29 = vmax.f32 %v298_v13, %v3859_v14 }
  0x15   : > { %608 = vst.msk [vmem:[#allocation2 + $0x70] sm:$0x1] %vm600_vm2, %v4561_v3  ;;  %609 = vst.msk [vmem:[#allocation2 + $0x80] sm:$0x1] %vm600_vm2, %v4561_v3  ;;  %455 = vrot.lane.b32.xlu0 %v4716_v8, %s4562_s25  ;;  %v3871_v17 = vld [vmem:[%s4743_s29 + $0x2] sm:$0x3]  ;;  %v4753_v20 = vadd.f32 %v3858_v16, %v297_v15  ;;  %v4777_v30 = vmax.f32 %v297_v15, %v3858_v16 }
  0x16   : > { %612 = vst.msk [vmem:[#allocation2 + $0xb0] sm:$0x1] %vm600_vm2, %v4561_v3  ;;  %613 = vst.msk [vmem:[#allocation2 + $0xc0] sm:$0x1] %vm600_vm2, %v4561_v3  ;;  %v682_v19 = vld [vmem:[%s4743_s29] sm:$0x3]  ;;  %4523 = vmatprep.subr.msk.bf16.mxu0 %vm733_vm3, %v3871_v17 }
  0x17   : > { %614 = vst.msk [vmem:[#allocation2 + $0xd0] sm:$0x1] %vm600_vm2, %v4561_v3  ;;  %615 = vst.msk [vmem:[#allocation2 + $0xe0] sm:$0x1] %vm600_vm2, %v4561_v3  ;;  %v300_v21 = vld [vmem:[%s4611_s24 + $0x60] sm:$0xff]  ;;  %v3861_v22 = vld [vmem:[%s4611_s24 + $0x68] sm:$0xff]  ;;  %4524 = vmatprep.subr.msk.bf16.mxu1 %vm733_vm3, %v682_v19 }
  0x18   : > { %616 = vst.msk [vmem:[#allocation2 + $0xf0] sm:$0x1] %vm600_vm2, %v4561_v3  ;;  %617 = vst.msk [vmem:[#allocation2 + $0x100] sm:$0x1] %vm600_vm2, %v4561_v3  ;;  %375 = vrot.lane.b32.xlu1 %v4720_v9, %s4562_s25  ;;  %v735_v23 = vsel %vm733_vm3, %v3871_v17, 0  ;;  %v859_v24 = vsel %vm733_vm3, %v682_v19, 0  ;;  %v4765_v27 = vadd.f32 %v3861_v22, %v300_v21  ;;  %v4781_v31 = vmax.f32 %v300_v21, %v3861_v22 }
  0x19   : > { %618 = vst.msk [vmem:[#allocation2 + $0x110] sm:$0x1] %vm600_vm2, %v4561_v3  ;;  %619 = vst.msk [vmem:[#allocation2 + $0x120] sm:$0x1] %vm600_vm2, %v4561_v3  ;;  %457 = vrot.lane.b32.xlu0 %v4724_v10, %s4562_s25  ;;  %v299_v25 = vld [vmem:[%s4611_s24 + $0x50] sm:$0xff]  ;;  %v3860_v26 = vld [vmem:[%s4611_s24 + $0x58] sm:$0xff]  ;;  %4200 = vmatpush3.bf16.msra.mxu0 %v735_v23  ;;  %v4891_v19 = vstv %s555_s7 }
  0x1a   : > { %622 = vst.msk [vmem:[#allocation2 + $0x19] sm:$0x1] %vm600_vm2, %v4561_v3  ;;  %623 = vst.msk [vmem:[#allocation2 + $0x29] sm:$0x1] %vm600_vm2, %v4561_v3  ;;  %4218 = vmatpush3.bf16.msra.mxu1 %v859_v24  ;;  %v4769_v28 = vadd.f32 %v3860_v26, %v299_v25  ;;  %v4785_v32 = vmax.f32 %v299_v25, %v3860_v26  ;;  %v303_v33 = vld [vmem:[%s4611_s24 + $0x90] sm:$0xff]  ;;  %v3864_v34 = vld [vmem:[%s4611_s24 + $0x98] sm:$0xff]  ;;  %v4893_v22 = vstv %s537_s6 }
  0x1b   : > { %624 = vst.msk [vmem:[#allocation2 + $0x39] sm:$0x1] %vm600_vm2, %v4561_v3  ;;  %625 = vst.msk [vmem:[#allocation2 + $0x49] sm:$0x1] %vm600_vm2, %v4561_v3  ;;  %v302_v35 = vld [vmem:[%s4611_s24 + $0x80] sm:$0xff]  ;;  %v3863_v36 = vld [vmem:[%s4611_s24 + $0x88] sm:$0xff]  ;;  %v4793_v37 = vadd.f32 %v3864_v34, %v303_v33  ;;  %v4818_v45 = vmax.f32 %v303_v33, %v3864_v34 }
  0x1c   : > { %626 = vst.msk [vmem:[#allocation2 + $0x59] sm:$0x1] %vm600_vm2, %v4561_v3  ;;  %627 = vst.msk [vmem:[#allocation2 + $0x69] sm:$0x1] %vm600_vm2, %v4561_v3  ;;  %379 = vrot.lane.b32.xlu1 %v4727_v11, %s4562_s25  ;;  %v4797_v38 = vadd.f32 %v3863_v36, %v302_v35  ;;  %v304_v39 = vld [vmem:[%s4611_s24 + $0xa0] sm:$0xff]  ;;  %v3865_v40 = vld [vmem:[%s4611_s24 + $0xa8] sm:$0xff]  ;;  %v4803_v41 = vmax.f32 %v302_v35, %v3863_v36 }
  0x1d   : > { %628 = vst.msk [vmem:[#allocation2 + $0x79] sm:$0x1] %vm600_vm2, %v4561_v3  ;;  %629 = vst.msk [vmem:[#allocation2 + $0x89] sm:$0x1] %vm600_vm2, %v4561_v3  ;;  %377 = vrot.lane.b32.xlu0 %v4734_v12, %s4562_s25  ;;  %v4807_v42 = vadd.f32 %v3865_v40, %v304_v39  ;;  %v4811_v43 = vmax.f32 %v304_v39, %v3865_v40  ;;  %v4814_v44 = vld [vmem:[%s4743_s29 + $0x4] sm:$0x3] }
  0x1e   : > { %632 = vst.msk [vmem:[#allocation2 + $0xb9] sm:$0x1] %vm600_vm2, %v4561_v3  ;;  %633 = vst.msk [vmem:[#allocation2 + $0xc9] sm:$0x1] %vm600_vm2, %v4561_v3  ;;  %v306_v46 = vld [vmem:[%s4611_s24 + $0xc0] sm:$0xff]  ;;  %v3867_v47 = vld [vmem:[%s4611_s24 + $0xc8] sm:$0xff]  ;;  %4525 = vmatprep.subr.msk.bf16.mxu0 %vm733_vm3, %v4814_v44 }
  0x1f   : > { %634 = vst.msk [vmem:[#allocation2 + $0xd9] sm:$0x1] %vm600_vm2, %v4561_v3  ;;  %635 = vst.msk [vmem:[#allocation2 + $0xe9] sm:$0x1] %vm600_vm2, %v4561_v3  ;;  %v305_v48 = vld [vmem:[%s4611_s24 + $0xb0] sm:$0xff]  ;;  %v3866_v49 = vld [vmem:[%s4611_s24 + $0xb8] sm:$0xff]  ;;  %v4828_v50 = vadd.f32 %v3867_v47, %v306_v46  ;;  %v4848_v58 = vmax.f32 %v306_v46, %v3867_v47 }
  0x20   : > { %636 = vst.msk [vmem:[#allocation2 + $0xf9] sm:$0x1] %vm600_vm2, %v4561_v3  ;;  %637 = vst.msk [vmem:[#allocation2 + $0x109] sm:$0x1] %vm600_vm2, %v4561_v3  ;;  %463 = vrot.lane.b32.xlu1 %v4748_v18, %s4562_s25  ;;  %v4832_v51 = vadd.f32 %v3866_v49, %v305_v48  ;;  %v308_v52 = vld [vmem:[%s4611_s24 + $0xe0] sm:$0xff]  ;;  %v3869_v53 = vld [vmem:[%s4611_s24 + $0xe8] sm:$0xff]  ;;  %v4852_v59 = vmax.f32 %v305_v48, %v3866_v49 }
  0x21   : > { %638 = vst.msk [vmem:[#allocation2 + $0x119] sm:$0x1] %vm600_vm2, %v4561_v3  ;;  %639 = vst.msk [vmem:[#allocation2 + $0x129] sm:$0x1] %vm600_vm2, %v4561_v3  ;;  %461 = vrot.lane.b32.xlu0 %v4753_v20, %s4562_s25  ;;  %v307_v54 = vld [vmem:[%s4611_s24 + $0xd0] sm:$0xff]  ;;  %v3868_v55 = vld [vmem:[%s4611_s24 + $0xd8] sm:$0xff]  ;;  %v4840_v56 = vadd.f32 %v3869_v53, %v308_v52  ;;  %v4856_v60 = vmax.f32 %v308_v52, %v3869_v53 }
  0x22   : > { %610 = vst.msk [vmem:[#allocation2 + $0x90] sm:$0x1] %vm600_vm2, %v4561_v3  ;;  %611 = vst.msk [vmem:[#allocation2 + $0xa0] sm:$0x1] %vm600_vm2, %v4561_v3  ;;  %v4844_v57 = vadd.f32 %v3868_v55, %v307_v54  ;;  %v4860_v61 = vmax.f32 %v307_v54, %v3868_v55  ;;  %v301_v62 = vld [vmem:[%s4611_s24 + $0x70] sm:$0xff]  ;;  %v3862_v63 = vld [vmem:[%s4611_s24 + $0x78] sm:$0xff] }
  0x23   : > { %620 = vst.msk [vmem:[#allocation2 + $0x130] sm:$0x1] %vm600_vm2, %v4561_v3  ;;  %630 = vst.msk [vmem:[#allocation2 + $0x99] sm:$0x1] %vm600_vm2, %v4561_v3  ;;  %v4866_v0 = vmax.f32 %v301_v62, %v3862_v63  ;;  %v4870_v1 = vadd.f32 %v3862_v63, %v301_v62  ;;  %v309_v2 = vld [vmem:[%s4611_s24 + $0xf0] sm:$0xff]  ;;  %v3870_v5 = vld [vmem:[%s4611_s24 + $0xf8] sm:$0xff] }
  0x24   : > { %631 = vst.msk [vmem:[#allocation2 + $0xa9] sm:$0x1] %vm600_vm2, %v4561_v3  ;;  %640 = vst.msk [vmem:[#allocation2 + $0x139] sm:$0x1] %vm600_vm2, %v4561_v3  ;;  %467 = vrot.lane.b32.xlu1 %v4765_v27, %s4562_s25  ;;  %v4876_v6 = vmax.f32 %v309_v2, %v3870_v5  ;;  %v4880_v7 = vadd.f32 %v3870_v5, %v309_v2  ;;  %v3897_v13 = vld [vmem:[%s4743_s29 + $0x6] sm:$0x3] }
  0x25   : > { %465 = vrot.lane.b32.xlu0 %v4769_v28, %s4562_s25  ;;  %4526 = vmatprep.subr.msk.bf16.mxu1 %vm733_vm3, %v3897_v13  ;;  %v683_v62 = vld [vmem:[#allocation2 + $0x1] sm:$0xff]  ;;  %2161 = vst.msk [vmem:[#allocation3] sm:$0xff] %vm2160_vm5, %v4561_v3  ;;  %2164 = vst.msk [vmem:[#allocation3 + $0xa0] sm:$0xff] %vm2160_vm5, %v4561_v3  ;;  %s4036_s19 = sshll.u32 %s4605_s20, 7 }
  0x26   : > { %v658_v63 = vld [vmem:[#allocation2] sm:$0xff]  ;;  %2167 = vst.msk [vmem:[#allocation3 + $0x90] sm:$0xff] %vm2160_vm5, %v4561_v3  ;;  %2169 = vst.msk [vmem:[#allocation3 + $0x130] sm:$0xff] %vm2160_vm5, %v4561_v3  ;;  %s6189_s22 = scalar_lea.vmem %s6289_s5, %s4036_s19 }
  0x27   : > { %2172 = vst.msk [vmem:[#allocation3] sm:$0x1] %vm2171_vm6, %v4561_v3  ;;  %2173 = vst.msk [vmem:[#allocation3 + $0x10] sm:$0x1] %vm2171_vm6, %v4561_v3 }
  0x28   : > { %383 = vrot.lane.b32.xlu1 %v4773_v29, %s4562_s25  ;;  %2174 = vst.msk [vmem:[#allocation3 + $0x20] sm:$0x1] %vm2171_vm6, %v4561_v3  ;;  %2175 = vst.msk [vmem:[#allocation3 + $0x30] sm:$0x1] %vm2171_vm6, %v4561_v3 }
  0x29   : > { %381 = vrot.lane.b32.xlu0 %v4777_v30, %s4562_s25  ;;  %2176 = vst.msk [vmem:[#allocation3 + $0x40] sm:$0x1] %vm2171_vm6, %v4561_v3  ;;  %2177 = vst.msk [vmem:[#allocation3 + $0x50] sm:$0x1] %vm2171_vm6, %v4561_v3 }
  0x2a   : > { %2178 = vst.msk [vmem:[#allocation3 + $0x60] sm:$0x1] %vm2171_vm6, %v4561_v3  ;;  %2179 = vst.msk [vmem:[#allocation3 + $0x70] sm:$0x1] %vm2171_vm6, %v4561_v3 }
  0x2b   : > { %2180 = vst.msk [vmem:[#allocation3 + $0x80] sm:$0x1] %vm2171_vm6, %v4561_v3  ;;  %2181 = vst.msk [vmem:[#allocation3 + $0x90] sm:$0x1] %vm2171_vm6, %v4561_v3 }
  0x2c   : > { %387 = vrot.lane.b32.xlu1 %v4781_v31, %s4562_s25  ;;  %2182 = vst.msk [vmem:[#allocation3 + $0xa0] sm:$0x1] %vm2171_vm6, %v4561_v3  ;;  %2183 = vst.msk [vmem:[#allocation3 + $0xb0] sm:$0x1] %vm2171_vm6, %v4561_v3 }
  0x2d   : > { %385 = vrot.lane.b32.xlu0 %v4785_v32, %s4562_s25  ;;  %2184 = vst.msk [vmem:[#allocation3 + $0xc0] sm:$0x1] %vm2171_vm6, %v4561_v3  ;;  %2185 = vst.msk [vmem:[#allocation3 + $0xd0] sm:$0x1] %vm2171_vm6, %v4561_v3 }
  0x2e   : > { %2186 = vst.msk [vmem:[#allocation3 + $0xe0] sm:$0x1] %vm2171_vm6, %v4561_v3  ;;  %2187 = vst.msk [vmem:[#allocation3 + $0xf0] sm:$0x1] %vm2171_vm6, %v4561_v3 }
  0x2f   : > { %2188 = vst.msk [vmem:[#allocation3 + $0x100] sm:$0x1] %vm2171_vm6, %v4561_v3  ;;  %2189 = vst.msk [vmem:[#allocation3 + $0x110] sm:$0x1] %vm2171_vm6, %v4561_v3 }
  0x30   : > { %473 = vrot.lane.b32.xlu1 %v4793_v37, %s4562_s25  ;;  %2190 = vst.msk [vmem:[#allocation3 + $0x120] sm:$0x1] %vm2171_vm6, %v4561_v3  ;;  %2191 = vst.msk [vmem:[#allocation3 + $0x130] sm:$0x1] %vm2171_vm6, %v4561_v3 }
  0x31   : > { %471 = vrot.lane.b32.xlu0 %v4797_v38, %s4562_s25  ;;  %2193 = vst.msk [vmem:[#allocation3 + $0x19] sm:$0x1] %vm2171_vm6, %v4561_v3  ;;  %2194 = vst.msk [vmem:[#allocation3 + $0x29] sm:$0x1] %vm2171_vm6, %v4561_v3 }
  0x32   : > { %2195 = vst.msk [vmem:[#allocation3 + $0x39] sm:$0x1] %vm2171_vm6, %v4561_v3  ;;  %2196 = vst.msk [vmem:[#allocation3 + $0x49] sm:$0x1] %vm2171_vm6, %v4561_v3 }
  0x33   : > { %2197 = vst.msk [vmem:[#allocation3 + $0x59] sm:$0x1] %vm2171_vm6, %v4561_v3  ;;  %2198 = vst.msk [vmem:[#allocation3 + $0x69] sm:$0x1] %vm2171_vm6, %v4561_v3 }
  0x34   : > { %391 = vrot.lane.b32.xlu1 %v4803_v41, %s4562_s25  ;;  %2199 = vst.msk [vmem:[#allocation3 + $0x79] sm:$0x1] %vm2171_vm6, %v4561_v3  ;;  %2200 = vst.msk [vmem:[#allocation3 + $0x89] sm:$0x1] %vm2171_vm6, %v4561_v3 }
  0x35   : > { %475 = vrot.lane.b32.xlu0 %v4807_v42, %s4562_s25  ;;  %2203 = vst.msk [vmem:[#allocation3 + $0xb9] sm:$0x1] %vm2171_vm6, %v4561_v3  ;;  %2204 = vst.msk [vmem:[#allocation3 + $0xc9] sm:$0x1] %vm2171_vm6, %v4561_v3 }
  0x36   : > { %2205 = vst.msk [vmem:[#allocation3 + $0xd9] sm:$0x1] %vm2171_vm6, %v4561_v3  ;;  %2206 = vst.msk [vmem:[#allocation3 + $0xe9] sm:$0x1] %vm2171_vm6, %v4561_v3 }
  0x37   : > { %2207 = vst.msk [vmem:[#allocation3 + $0xf9] sm:$0x1] %vm2171_vm6, %v4561_v3  ;;  %2208 = vst.msk [vmem:[#allocation3 + $0x109] sm:$0x1] %vm2171_vm6, %v4561_v3 }
  0x38   : > { %395 = vrot.lane.b32.xlu1 %v4811_v43, %s4562_s25  ;;  %2209 = vst.msk [vmem:[#allocation3 + $0x119] sm:$0x1] %vm2171_vm6, %v4561_v3  ;;  %2210 = vst.msk [vmem:[#allocation3 + $0x129] sm:$0x1] %vm2171_vm6, %v4561_v3 }
  0x39   : > { %393 = vrot.lane.b32.xlu0 %v4818_v45, %s4562_s25  ;;  %2163 = vst.msk [vmem:[#allocation3 + $0x8] sm:$0x3] %vm2162_vm7, %v4561_v3  ;;  %2165 = vst.msk [vmem:[#allocation3 + $0xa8] sm:$0x3] %vm2162_vm7, %v4561_v3 }
  0x3a   : > { %2168 = vst.msk [vmem:[#allocation3 + $0x98] sm:$0x3] %vm2162_vm7, %v4561_v3  ;;  %2170 = vst.msk [vmem:[#allocation3 + $0x138] sm:$0x3] %vm2162_vm7, %v4561_v3 }
  0x3b   : > { %2192 = vst.msk [vmem:[#allocation3 + $0x9] sm:$0x1] %vm2171_vm6, %v4561_v3  ;;  %2201 = vst.msk [vmem:[#allocation3 + $0x99] sm:$0x1] %vm2171_vm6, %v4561_v3 }
  0x3c   : > { %479 = vrot.lane.b32.xlu1 %v4828_v50, %s4562_s25  ;;  %2202 = vst.msk [vmem:[#allocation3 + $0xa9] sm:$0x1] %vm2171_vm6, %v4561_v3  ;;  %2211 = vst.msk [vmem:[#allocation3 + $0x139] sm:$0x1] %vm2171_vm6, %v4561_v3 }
  0x3d   : > { %477 = vrot.lane.b32.xlu0 %v4832_v51, %s4562_s25 }
  0x40   : > { %483 = vrot.lane.b32.xlu1 %v4840_v56, %s4562_s25 }
  0x41   : > { %481 = vrot.lane.b32.xlu0 %v4844_v57, %s4562_s25 }
  0x44   : > { %399 = vrot.lane.b32.xlu1 %v4848_v58, %s4562_s25 }
  0x45   : > { %397 = vrot.lane.b32.xlu0 %v4852_v59, %s4562_s25 }
  0x48   : > { %403 = vrot.lane.b32.xlu1 %v4856_v60, %s4562_s25 }
  0x49   : > { %401 = vrot.lane.b32.xlu0 %v4860_v61, %s4562_s25 }
  0x4c   : > { %389 = vrot.lane.b32.xlu1 %v4866_v0, %s4562_s25 }
  0x4d   : > { %469 = vrot.lane.b32.xlu0 %v4870_v1, %s4562_s25 }
  0x50   : > { %405 = vrot.lane.b32.xlu1 %v4876_v6, %s4562_s25 }
  0x51   : > { %485 = vrot.lane.b32.xlu0 %v4880_v7, %s4562_s25 }
  0x86   : > { %v460_v14 = vpop.permute.xlu1 %459 }
  0x87   : > { %v456_v15 = vpop.permute.xlu0 %455  ;;  %v505_v17 = vadd.f32 %v460_v14, %v4631_v4 }
  0x88   : > { %v503_v16 = vadd.f32 %v456_v15, %v4716_v8 }
  0x89   : > { %v521_v33 = vmul.f32 0.25, %v505_v17 }
  0x8a   : > { %v519_v21 = vmul.f32 0.25, %v503_v16  ;;  %v376_v23 = vpop.permute.xlu1 %375 }
  0x8b   : > { %v458_v24 = vpop.permute.xlu0 %457  ;;  %v423_v25 = vmax.f32 %v4720_v9, %v376_v23  ;;  %v559_v47 = vmul.f32 %v4891_v19, %v521_v33 }
  0x8c   : > { %v504_v26 = vadd.f32 %v458_v24, %v4724_v10  ;;  %v557_v34 = vmul.f32 %v4891_v19, %v519_v21 }
  0x8d   : > { %v539_v35 = vmul.f32 %v4893_v22, %v423_v25 }
  0x8e   : > { %v520_v36 = vmul.f32 0.25, %v504_v26  ;;  %v380_v8 = vpop.permute.xlu1 %379 }
  0x8f   : > { %v573_v39 = vadd.f32 %v557_v34, %v539_v35  ;;  %v378_v4 = vpop.permute.xlu0 %377  ;;  %v425_v40 = vmax.f32 %v4727_v11, %v380_v8 }
  0x90   : > { %v424_v46 = vmax.f32 %v4734_v12, %v378_v4  ;;  %v558_v10 = vmul.f32 %v4891_v19, %v520_v36 }
  0x91   : > { %642 = vst.msk [vmem:[#allocation2 + $0x11] sm:$0xff] %vm589_vm0, %v573_v39  ;;  %v541_v9 = vmul.f32 %v4893_v22, %v425_v40 }
  0x92   : > { %v540_v48 = vmul.f32 %v4893_v22, %v424_v46  ;;  %v464_v49 = vpop.permute.xlu1 %463 }
  0x93   : > { %v575_v52 = vadd.f32 %v559_v47, %v541_v9  ;;  %v462_v53 = vpop.permute.xlu0 %461  ;;  %v507_v55 = vadd.f32 %v464_v49, %v4748_v18 }
  0x94   : > { %v574_v54 = vadd.f32 %v558_v10, %v540_v48  ;;  %v506_v11 = vadd.f32 %v462_v53, %v4753_v20  ;;  %v4947_v48 = vld [vmem:[%s4743_s29 + $0x8] sm:$0x3] }
  0x95   : > { %644 = vst.msk [vmem:[#allocation2 + $0x31] sm:$0xff] %vm589_vm0, %v575_v52  ;;  %v523_v5 = vmul.f32 0.25, %v507_v55  ;;  %v4952_v52 = vld [vmem:[%s4743_s29 + $0xa] sm:$0x3] }
  0x96   : > { %643 = vst.msk [vmem:[#allocation2 + $0x21] sm:$0xff] %vm589_vm0, %v574_v54  ;;  %v468_v12 = vpop.permute.xlu1 %467  ;;  %v522_v16 = vmul.f32 0.25, %v506_v11 }
  0x97   : > { %v466_v2 = vpop.permute.xlu0 %465  ;;  %v509_v17 = vadd.f32 %v468_v12, %v4765_v27  ;;  %v1009_v27 = vsel %vm733_vm3, %v4814_v44, 0 }
  0x98   : > { %v4910_v14 = vld [vmem:[#allocation2 + $0x11] sm:$0xff]  ;;  %v508_v20 = vadd.f32 %v466_v2, %v4769_v28  ;;  %v1175_v28 = vsel %vm733_vm3, %v3897_v13, 0  ;;  %v560_v35 = vmul.f32 %v4891_v19, %v522_v16 }
  0x99   : > { %v4912_v15 = vld [vmem:[#allocation2 + $0x10] sm:$0xff]  ;;  %v699_v18 = vpack.c.bf16 %v4910_v14, %v683_v62  ;;  %v525_v36 = vmul.f32 0.25, %v509_v17 }
  0x9a   : > { %v674_v21 = vpack.c.bf16 %v4912_v15, %v658_v63  ;;  %v384_v23 = vpop.permute.xlu1 %383  ;;  %v524_v4 = vmul.f32 0.25, %v508_v20 }
  0x9b   : > { %v382_v24 = vpop.permute.xlu0 %381  ;;  %v427_v25 = vmax.f32 %v4773_v29, %v384_v23  ;;  %4201 = vmatprep.mubr.msk.bf16.mxu0 %vm589_vm0, %v699_v18  ;;  %v561_v29 = vmul.f32 %v4891_v19, %v523_v5  ;;  %v563_v55 = vmul.f32 %v4891_v19, %v525_v36 }
  0x9c   : > { %4219 = vmatprep.mubr.msk.bf16.mxu1 %vm589_vm0, %v674_v21  ;;  %v426_v26 = vmax.f32 %v4777_v30, %v382_v24  ;;  %v4922_v33 = vld [vmem:[#allocation2 + $0x31] sm:$0xff]  ;;  %v562_v11 = vmul.f32 %v4891_v19, %v524_v4 }
  0x9d   : > { %v4924_v34 = vld [vmem:[#allocation2 + $0x30] sm:$0xff]  ;;  %v543_v8 = vmul.f32 %v4893_v22, %v427_v25  ;;  %v4932_v39 = vld [vmem:[#allocation2 + $0x21] sm:$0xff] }
  0x9e   : > { %v4934_v30 = vld [vmem:[#allocation2 + $0x20] sm:$0xff]  ;;  %v542_v40 = vmul.f32 %v4893_v22, %v426_v26  ;;  %v388_v46 = vpop.permute.xlu1 %387  ;;  %v4939_v44 = vpack.c.bf16 %v4922_v33, %v4932_v39  ;;  %v1306_v49 = vpack.c.bf16 %v4932_v39, %v4910_v14 }
  0x9f   : > { %v4943_v13 = vpack.c.bf16 %v4924_v34, %v4934_v30  ;;  %v577_v47 = vadd.f32 %v561_v29, %v543_v8  ;;  %v386_v9 = vpop.permute.xlu0 %385  ;;  %v429_v10 = vmax.f32 %v4781_v31, %v388_v46 }
  0xa0   : > { %v576_v53 = vadd.f32 %v560_v35, %v542_v40  ;;  %v428_v54 = vmax.f32 %v4785_v32, %v386_v9  ;;  %4202 = vmatmul.mubr.msk.bf16.vlgmr.msra.gmra.mxu0 %vm589_vm0, %v4939_v44 }
  0xa1   : > { %4220 = vmatmul.mubr.msk.bf16.vlgmr.msra.gmra.mxu1 %vm589_vm0, %v4943_v13  ;;  %646 = vst.msk [vmem:[#allocation2 + $0x51] sm:$0xff] %vm589_vm0, %v577_v47  ;;  %v545_v31 = vmul.f32 %v4893_v22, %v429_v10  ;;  %4236 = vmatpush3.bf16.msra.mxu0 %v1009_v27 }
  0xa2   : > { %4254 = vmatpush3.bf16.msra.mxu1 %v1175_v28  ;;  %645 = vst.msk [vmem:[#allocation2 + $0x41] sm:$0xff] %vm589_vm0, %v576_v53  ;;  %v544_v32 = vmul.f32 %v4893_v22, %v428_v54  ;;  %v474_v12 = vpop.permute.xlu1 %473  ;;  %4527 = vmatprep.subr.msk.bf16.mxu0 %vm733_vm3, %v4947_v48 }
  0xa3   : > { %4528 = vmatprep.subr.msk.bf16.mxu1 %vm733_vm3, %v4952_v52  ;;  %v579_v62 = vadd.f32 %v563_v55, %v545_v31  ;;  %v472_v63 = vpop.permute.xlu0 %471  ;;  %v512_v17 = vadd.f32 %v474_v12, %v4793_v37 }
  0xa4   : > { %v578_v2 = vadd.f32 %v562_v11, %v544_v32  ;;  %v511_v5 = vadd.f32 %v472_v63, %v4797_v38 }
  0xa5   : > { %648 = vst.msk [vmem:[#allocation2 + $0x71] sm:$0xff] %vm589_vm0, %v579_v62  ;;  %v528_v35 = vmul.f32 0.25, %v512_v17 }
  0xa6   : > { %647 = vst.msk [vmem:[#allocation2 + $0x61] sm:$0xff] %vm589_vm0, %v578_v2  ;;  %v527_v16 = vmul.f32 0.25, %v511_v5  ;;  %v392_v18 = vpop.permute.xlu1 %391 }
  0xa7   : > { %v476_v21 = vpop.permute.xlu0 %475  ;;  %v431_v20 = vmax.f32 %v4803_v41, %v392_v18  ;;  %v691_v18 = vld [vmem:[#allocation2 + $0xa1] sm:$0xff] }
  0xa8   : > { %v513_v23 = vadd.f32 %v476_v21, %v4807_v42  ;;  %v4975_v24 = vld [vmem:[#allocation2 + $0x51] sm:$0xff]  ;;  %v565_v26 = vmul.f32 %v4891_v19, %v527_v16  ;;  %v666_v21 = vld [vmem:[#allocation2 + $0xa0] sm:$0xff] }
  0xa9   : > { %v4977_v25 = vld [vmem:[#allocation2 + $0x50] sm:$0xff]  ;;  %v547_v38 = vmul.f32 %v4893_v22, %v431_v20  ;;  %v4981_v27 = vld [vmem:[#allocation2 + $0x41] sm:$0xff] }
  0xaa   : > { %v4983_v28 = vld [vmem:[#allocation2 + $0x40] sm:$0xff]  ;;  %v529_v37 = vmul.f32 0.25, %v513_v23  ;;  %v396_v29 = vpop.permute.xlu1 %395  ;;  %v4987_v41 = vpack.c.bf16 %v4975_v24, %v4981_v27  ;;  %v1307_v40 = vpack.c.bf16 %v4981_v27, %v4922_v33 }
  0xab   : > { %v4991_v42 = vpack.c.bf16 %v4977_v25, %v4983_v28  ;;  %v581_v36 = vadd.f32 %v565_v26, %v547_v38  ;;  %v394_v8 = vpop.permute.xlu0 %393  ;;  %v433_v4 = vmax.f32 %v4811_v43, %v396_v29 }
  0xac   : > { %v432_v46 = vmax.f32 %v4818_v45, %v394_v8  ;;  %4205 = vmatprep.mubr.msk.bf16.mxu0 %vm589_vm0, %v4987_v41  ;;  %v5001_v47 = vld [vmem:[#allocation2 + $0x71] sm:$0xff]  ;;  %v567_v10 = vmul.f32 %v4891_v19, %v529_v37  ;;  %v566_v45 = vmul.f32 %v4891_v19, %v528_v35 }
  0xad   : > { %4223 = vmatprep.mubr.msk.bf16.mxu1 %vm589_vm0, %v4991_v42  ;;  %v5003_v9 = vld [vmem:[#allocation2 + $0x70] sm:$0xff]  ;;  %650 = vst.msk [vmem:[#allocation2 + $0xb1] sm:$0xff] %vm589_vm0, %v581_v36  ;;  %v549_v43 = vmul.f32 %v4893_v22, %v433_v4  ;;  %v5008_v53 = vld [vmem:[#allocation2 + $0x61] sm:$0xff] }
  0xae   : > { %v5010_v54 = vld [vmem:[#allocation2 + $0x60] sm:$0xff]  ;;  %v548_v55 = vmul.f32 %v4893_v22, %v432_v46  ;;  %v480_v31 = vpop.permute.xlu1 %479  ;;  %v5016_v11 = vpack.c.bf16 %v5001_v47, %v5008_v53  ;;  %v1308_v63 = vpack.c.bf16 %v5008_v53, %v4975_v24 }
  0xaf   : > { %v5020_v32 = vpack.c.bf16 %v5003_v9, %v5010_v54  ;;  %v583_v12 = vadd.f32 %v567_v10, %v549_v43  ;;  %v478_v62 = vpop.permute.xlu0 %477  ;;  %v515_v5 = vadd.f32 %v480_v31, %v4828_v50 }
  0xb0   : > { %v582_v2 = vadd.f32 %v566_v45, %v548_v55  ;;  %4206 = vmatmul.mubr.msk.bf16.gmra.mxu0 %vm589_vm0, %v5016_v11  ;;  %v514_v16 = vadd.f32 %v478_v62, %v4832_v51 }
  0xb1   : > { %4224 = vmatmul.mubr.msk.bf16.gmra.mxu1 %vm589_vm0, %v5020_v32  ;;  %652 = vst.msk [vmem:[#allocation2 + $0xd1] sm:$0xff] %vm589_vm0, %v583_v12  ;;  %v531_v23 = vmul.f32 0.25, %v515_v5 }
  0xb2   : > { %651 = vst.msk [vmem:[#allocation2 + $0xc1] sm:$0xff] %vm589_vm0, %v582_v2  ;;  %v484_v17 = vpop.permute.xlu1 %483  ;;  %v530_v38 = vmul.f32 0.25, %v514_v16 }
  0xb3   : > { %v482_v20 = vpop.permute.xlu0 %481  ;;  %v517_v35 = vadd.f32 %v484_v17, %v4840_v56  ;;  %v569_v45 = vmul.f32 %v4891_v19, %v531_v23 }
  0xb4   : > { %v5032_v26 = vld [vmem:[#allocation2 + $0xb1] sm:$0xff]  ;;  %v516_v51 = vadd.f32 %v482_v20, %v4844_v57  ;;  %v568_v56 = vmul.f32 %v4891_v19, %v530_v38 }
  0xb5   : > { %v5034_v50 = vld [vmem:[#allocation2 + $0xb0] sm:$0xff]  ;;  %v703_v37 = vpack.c.bf16 %v5032_v26, %v691_v18  ;;  %v533_v55 = vmul.f32 0.25, %v517_v35 }
  0xb6   : > { %v678_v29 = vpack.c.bf16 %v5034_v50, %v666_v21  ;;  %v400_v36 = vpop.permute.xlu1 %399  ;;  %v532_v12 = vmul.f32 0.25, %v516_v51 }
  0xb7   : > { %v398_v8 = vpop.permute.xlu0 %397  ;;  %v435_v4 = vmax.f32 %v4848_v58, %v400_v36  ;;  %4209 = vmatprep.mubr.msk.bf16.mxu0 %vm589_vm0, %v703_v37  ;;  %v571_v38 = vmul.f32 %v4891_v19, %v533_v55 }
  0xb8   : > { %4227 = vmatprep.mubr.msk.bf16.mxu1 %vm589_vm0, %v678_v29  ;;  %v434_v46 = vmax.f32 %v4852_v59, %v398_v8  ;;  %v5044_v10 = vld [vmem:[#allocation2 + $0xd1] sm:$0xff] }
  0xb9   : > { %v5046_v43 = vld [vmem:[#allocation2 + $0xd0] sm:$0xff]  ;;  %v551_v57 = vmul.f32 %v4893_v22, %v435_v4  ;;  %v5051_v31 = vld [vmem:[#allocation2 + $0xc1] sm:$0xff] }
  0xba   : > { %v5053_v58 = vld [vmem:[#allocation2 + $0xc0] sm:$0xff]  ;;  %v550_v62 = vmul.f32 %v4893_v22, %v434_v46  ;;  %v404_v2 = vpop.permute.xlu1 %403  ;;  %v5058_v59 = vpack.c.bf16 %v5044_v10, %v5051_v31  ;;  %v1310_v21 = vpack.c.bf16 %v5051_v31, %v5032_v26 }
  0xbb   : > { %v5062_v5 = vpack.c.bf16 %v5046_v43, %v5053_v58  ;;  %v585_v16 = vadd.f32 %v569_v45, %v551_v57  ;;  %v402_v17 = vpop.permute.xlu0 %401  ;;  %v437_v18 = vmax.f32 %v4856_v60, %v404_v2  ;;  %v570_v60 = vmul.f32 %v4891_v19, %v532_v12 }
  0xbc   : > { %v584_v20 = vadd.f32 %v568_v56, %v550_v62  ;;  %v436_v23 = vmax.f32 %v4860_v61, %v402_v17  ;;  %4210 = vmatmul.mubr.msk.bf16.gmra.mxu0 %vm589_vm0, %v5058_v59 }
  0xbd   : > { %4228 = vmatmul.mubr.msk.bf16.gmra.mxu1 %vm589_vm0, %v5062_v5  ;;  %654 = vst.msk [vmem:[#allocation2 + $0xf1] sm:$0xff] %vm589_vm0, %v585_v16  ;;  %v553_v35 = vmul.f32 %v4893_v22, %v437_v18 }
  0xbe   : > { %653 = vst.msk [vmem:[#allocation2 + $0xe1] sm:$0xff] %vm589_vm0, %v584_v20  ;;  %v552_v37 = vmul.f32 %v4893_v22, %v436_v23  ;;  %v390_v29 = vpop.permute.xlu1 %389 }
  0xbf   : > { %v587_v61 = vadd.f32 %v571_v38, %v553_v35  ;;  %v470_v51 = vpop.permute.xlu0 %469  ;;  %v430_v36 = vmax.f32 %v4866_v0, %v390_v29 }
  0xc0   : > { %v586_v8 = vadd.f32 %v570_v60, %v552_v37  ;;  %v510_v4 = vadd.f32 %v470_v51, %v4870_v1  ;;  %v5113_v60 = vld [vmem:[#allocation2 + $0x12] sm:$0xff] }
  0xc1   : > { %656 = vst.msk [vmem:[#allocation2 + $0x111] sm:$0xff] %vm589_vm0, %v587_v61  ;;  %v546_v56 = vmul.f32 %v4893_v22, %v430_v36 }
  0xc2   : > { %655 = vst.msk [vmem:[#allocation2 + $0x101] sm:$0xff] %vm589_vm0, %v586_v8  ;;  %v526_v46 = vmul.f32 0.25, %v510_v4  ;;  %v406_v45 = vpop.permute.xlu1 %405  ;;  %v1140_v8 = vpack.c.bf16 %v4934_v30, %v4912_v15  ;;  %v960_v4 = vld [vmem:[#allocation2 + $0x22] sm:$0xff]  ;;  %v1141_v15 = vpack.c.bf16 %v4983_v28, %v4924_v34  ;;  %v1341_v30 = vsel %vm733_vm3, %v4947_v48, 0  ;;  %v965_v48 = vld [vmem:[#allocation2 + $0x72] sm:$0xff] }
  0xc3   : > { %v486_v55 = vpop.permute.xlu0 %485  ;;  %v438_v57 = vmax.f32 %v4876_v6, %v406_v45  ;;  %v963_v45 = vld [vmem:[#allocation2 + $0x52] sm:$0xff]  ;;  %v964_v34 = vld [vmem:[#allocation2 + $0x62] sm:$0xff] }
  0xc4   : > { %v564_v12 = vmul.f32 %v4891_v19, %v526_v46  ;;  %v518_v62 = vadd.f32 %v486_v55, %v4880_v7  ;;  %v5086_v2 = vld [vmem:[#allocation2 + $0xf1] sm:$0xff]  ;;  %v958_v7 = vld [vmem:[#allocation2 + $0x2] sm:$0xff] }
  0xc5   : > { %v5088_v0 = vld [vmem:[#allocation2 + $0xf0] sm:$0xff]  ;;  %v554_v1 = vmul.f32 %v4893_v22, %v438_v57  ;;  %v5091_v16 = vld [vmem:[#allocation2 + $0xe1] sm:$0xff]  ;;  %v974_v36 = vpack.c.bf16 %v5113_v60, %v958_v7 }
  0xc6   : > { %v5093_v17 = vld [vmem:[#allocation2 + $0xe0] sm:$0xff]  ;;  %v580_v18 = vadd.f32 %v564_v12, %v546_v56  ;;  %v534_v20 = vmul.f32 0.25, %v518_v62  ;;  %v5097_v23 = vpack.c.bf16 %v5086_v2, %v5091_v16  ;;  %v961_v46 = vld [vmem:[#allocation2 + $0x32] sm:$0xff]  ;;  %v1507_v12 = vsel %vm733_vm3, %v4952_v52, 0 }
  0xc7   : > { %v5101_v6 = vpack.c.bf16 %v5088_v0, %v5093_v17  ;;  %v962_v56 = vld [vmem:[#allocation2 + $0x42] sm:$0xff]  ;;  %v5134_v55 = vpack.c.bf16 %v961_v46, %v960_v4  ;;  %v1142_v62 = vpack.c.bf16 %v5010_v54, %v4977_v25  ;;  %v5158_v25 = vpack.c.bf16 %v965_v48, %v964_v34 }
  0xc8   : > { %649 = vst.msk [vmem:[#allocation2 + $0x81] sm:$0xff] %vm589_vm0, %v580_v18  ;;  %v572_v38 = vmul.f32 %v4891_v19, %v534_v20  ;;  %4213 = vmatprep.mubr.msk.bf16.mxu0 %vm589_vm0, %v5097_v23  ;;  %v5109_v22 = vld [vmem:[#allocation2 + $0x111] sm:$0xff]  ;;  %v5140_v57 = vpack.c.bf16 %v963_v45, %v962_v56  ;;  %v3933_v18 = vld [vmem:[%s4743_s29 + $0xe] sm:$0x3]  ;;  %v966_v28 = vld [vmem:[#allocation2 + $0xa2] sm:$0xff]  ;;  %v1311_v24 = vpack.c.bf16 %v5091_v16, %v5044_v10 }
  0xc9   : > { %4231 = vmatprep.mubr.msk.bf16.mxu1 %vm589_vm0, %v5101_v6  ;;  %v5111_v35 = vld [vmem:[#allocation2 + $0x110] sm:$0xff]  ;;  %v5115_v37 = vld [vmem:[#allocation2 + $0x101] sm:$0xff] }
  0xca   : > { %v672_v29 = vld [vmem:[#allocation2 + $0x100] sm:$0xff]  ;;  %v588_v61 = vadd.f32 %v572_v38, %v554_v1  ;;  %v5119_v51 = vpack.c.bf16 %v5109_v22, %v5115_v37  ;;  %v3924_v1 = vld [vmem:[%s4743_s29 + $0xc] sm:$0x3]  ;;  %v967_v20 = vld [vmem:[#allocation2 + $0xb2] sm:$0xff]  ;;  %v1144_v38 = vpack.c.bf16 %v5053_v58, %v5034_v50 }
  0xcb   : > { %v5122_v19 = vpack.c.bf16 %v5111_v35, %v672_v29  ;;  %v978_v7 = vpack.c.bf16 %v967_v20, %v966_v28  ;;  %v1146_v50 = vpack.c.bf16 %v672_v29, %v5088_v0  ;;  %v972_v58 = vld [vmem:[#allocation2 + $0x102] sm:$0xff]  ;;  %v1473_v29 = vpack.c.bf16 %v962_v56, %v961_v46 }
  0xcc   : > { %657 = vst.msk [vmem:[#allocation2 + $0x121] sm:$0xff] %vm589_vm0, %v588_v61  ;;  %4214 = vmatmul.mubr.msk.bf16.gmra.mxu0 %vm589_vm0, %v5119_v51  ;;  %v968_v61 = vld [vmem:[#allocation2 + $0xc2] sm:$0xff] }
  0xcd   : > { %4232 = vmatmul.mubr.msk.bf16.gmra.mxu1 %vm589_vm0, %v5122_v19  ;;  %4237 = vmatprep.mubr.msk.bf16.mxu0 %vm589_vm0, %v974_v36  ;;  %v969_v36 = vld [vmem:[#allocation2 + $0xd2] sm:$0xff]  ;;  %v1476_v27 = vpack.c.bf16 %v968_v61, %v967_v20 }
  0xce   : > { %4255 = vmatprep.mubr.msk.bf16.mxu1 %vm589_vm0, %v1140_v8  ;;  %v970_v8 = vld [vmem:[#allocation2 + $0xe2] sm:$0xff] }
  0xcf   : > { %v5154_v52 = vld [vmem:[#allocation2 + $0x80] sm:$0xff] }
  0xd0   : > { %v1143_v54 = vpack.c.bf16 %v5154_v52, %v5003_v9  ;;  %v1145_v9 = vpack.c.bf16 %v5093_v17, %v5046_v43  ;;  %v1472_v17 = vpack.c.bf16 %v960_v4, %v5113_v60  ;;  %v3942_v60 = vld [vmem:[%s4743_s29 + $0x10] sm:$0x3]  ;;  %v1297_v14 = vld [vmem:[#allocation2 + $0x81] sm:$0xff] }
  0xd1   : > { %v1463_v39 = vld [vmem:[#allocation2 + $0x82] sm:$0xff]  ;;  %v1309_v33 = vpack.c.bf16 %v1297_v14, %v5001_v47  ;;  %v1312_v47 = vpack.c.bf16 %v5115_v37, %v5086_v2  ;;  %v2006_v10 = vsel %vm733_vm3, %v3942_v60, 0  ;;  %v1630_v2 = vld [vmem:[#allocation2 + $0x90] sm:$0xff] }
  0xd2   : > { %v1642_v16 = vpack.c.bf16 %v1630_v2, %v5154_v52 }
  0xd3   : > { %v5182_v28 = vld [vmem:[#allocation2 + $0x120] sm:$0xff] }
  0xd4   : > { %4238 = vmatmul.mubr.msk.bf16.vlgmr.msra.gmra.mxu0 %vm589_vm0, %v5134_v55  ;;  %v1147_v0 = vpack.c.bf16 %v5182_v28, %v5111_v35  ;;  %v1474_v35 = vpack.c.bf16 %v964_v34, %v963_v45  ;;  %v1471_v26 = vld [vmem:[#allocation2 + $0x122] sm:$0xff] }
  0xd5   : > { %4256 = vmatmul.mubr.msk.bf16.vlgmr.msra.gmra.mxu1 %vm589_vm0, %v1141_v15  ;;  %4272 = vmatpush3.bf16.msra.mxu0 %v1341_v30  ;;  %v971_v15 = vld [vmem:[#allocation2 + $0xf2] sm:$0xff]  ;;  %v5169_v30 = vpack.c.bf16 %v969_v36, %v968_v61 }
  0xd6   : > { %4241 = vmatprep.mubr.msk.bf16.mxu0 %vm589_vm0, %v5140_v57  ;;  %4259 = vmatprep.mubr.msk.bf16.mxu1 %vm589_vm0, %v1142_v62  ;;  %v973_v62 = vld [vmem:[#allocation2 + $0x112] sm:$0xff]  ;;  %v1478_v53 = vpack.c.bf16 %v972_v58, %v971_v15 }
  0xd7   : > { %4290 = vmatpush3.bf16.msra.mxu1 %v1507_v12  ;;  %4529 = vmatprep.subr.msk.bf16.mxu0 %vm733_vm3, %v3924_v1  ;;  %v5173_v12 = vpack.c.bf16 %v971_v15, %v970_v8  ;;  %v5184_v43 = vpack.c.bf16 %v973_v62, %v972_v58 }
  0xd8   : > { %4530 = vmatprep.subr.msk.bf16.mxu1 %vm733_vm3, %v3933_v18 }
  0xdc   : > { %4242 = vmatmul.mubr.msk.bf16.gmra.mxu0 %vm589_vm0, %v5158_v25 }
  0xdd   : > { %4260 = vmatmul.mubr.msk.bf16.gmra.mxu1 %vm589_vm0, %v1143_v54  ;;  %4245 = vmatprep.mubr.msk.bf16.mxu0 %vm589_vm0, %v978_v7  ;;  %v1674_v54 = vsel %vm733_vm3, %v3924_v1, 0  ;;  %v1840_v7 = vsel %vm733_vm3, %v3933_v18, 0 }
  0xde   : > { %4263 = vmatprep.mubr.msk.bf16.mxu1 %vm589_vm0, %v1144_v38 }
  0xe4   : > { %4246 = vmatmul.mubr.msk.bf16.gmra.mxu0 %vm589_vm0, %v5169_v30 }
  0xe5   : > { %4264 = vmatmul.mubr.msk.bf16.gmra.mxu1 %vm589_vm0, %v1145_v9  ;;  %4249 = vmatprep.mubr.msk.bf16.mxu0 %vm589_vm0, %v5173_v12 }
  0xe6   : > { %4267 = vmatprep.mubr.msk.bf16.mxu1 %vm589_vm0, %v1146_v50 }
  0xec   : > { %4250 = vmatmul.mubr.msk.bf16.gmra.mxu0 %vm589_vm0, %v5184_v43 }
  0xed   : > { %4268 = vmatmul.mubr.msk.bf16.gmra.mxu1 %vm589_vm0, %v1147_v0  ;;  %4273 = vmatprep.mubr.msk.bf16.mxu0 %vm589_vm0, %v1306_v49  ;;  %v1475_v49 = vpack.c.bf16 %v1463_v39, %v965_v48  ;;  %v3952_v48 = vld [vmem:[%s5289_s11 + $0x4] sm:$0xf] }
  0xee   : > { %4291 = vmatprep.mubr.msk.bf16.mxu1 %vm589_vm0, %v1472_v17  ;;  %v2306_v20 = vsel %vm2304_vm4, %v3952_v48, 0 }
  0xf4   : > { %4274 = vmatmul.mubr.msk.bf16.vlgmr.msra.gmra.mxu0 %vm589_vm0, %v1307_v40  ;;  %v1477_v40 = vpack.c.bf16 %v970_v8, %v969_v36 }
  0xf5   : > { %4292 = vmatmul.mubr.msk.bf16.vlgmr.msra.gmra.mxu1 %vm589_vm0, %v1473_v29  ;;  %4308 = vmatpush3.bf16.msra.mxu0 %v1674_v54  ;;  %v2253_v54 = vld [vmem:[%s5289_s11] sm:$0xf] }
  0xf6   : > { %4277 = vmatprep.mubr.msk.bf16.mxu0 %vm589_vm0, %v1308_v63  ;;  %4295 = vmatprep.mubr.msk.bf16.mxu1 %vm589_vm0, %v1474_v35  ;;  %v1305_v63 = vld [vmem:[#allocation2 + $0x121] sm:$0xff] }
  0xf7   : > { %4326 = vmatpush3.bf16.msra.mxu1 %v1840_v7  ;;  %4531 = vmatprep.subr.msk.bf16.mxu0 %vm733_vm3, %v3942_v60  ;;  %v1313_v31 = vpack.c.bf16 %v1305_v63, %v5109_v22  ;;  %v2430_v7 = vsel %vm2304_vm4, %v2253_v54, 0 }
  0xf8   : > { %4532 = vmatprep.subr.msk.bf16.mxu1 %vm2304_vm4, %v3952_v48 }
  0xfc   : > { %4278 = vmatmul.mubr.msk.bf16.gmra.mxu0 %vm589_vm0, %v1309_v33 }
  0xfd   : > { %4296 = vmatmul.mubr.msk.bf16.gmra.mxu1 %vm589_vm0, %v1475_v49  ;;  %4281 = vmatprep.mubr.msk.bf16.mxu0 %vm589_vm0, %v1310_v21  ;;  %v1479_v21 = vpack.c.bf16 %v1471_v26, %v973_v62 }
  0xfe   : > { %4299 = vmatprep.mubr.msk.bf16.mxu1 %vm589_vm0, %v1476_v27 }
 0x104   : > { %4282 = vmatmul.mubr.msk.bf16.gmra.mxu0 %vm589_vm0, %v1311_v24 }
 0x105   : > { %4300 = vmatmul.mubr.msk.bf16.gmra.mxu1 %vm589_vm0, %v1477_v40  ;;  %4285 = vmatprep.mubr.msk.bf16.mxu0 %vm589_vm0, %v1312_v47 }
 0x106   : > { %4303 = vmatprep.mubr.msk.bf16.mxu1 %vm589_vm0, %v1478_v53  ;;  %v5410_v53 = vld [vmem:[%s5289_s11 + $0x8] sm:$0xf] }
 0x107   : > { %6292 = vst [vmem:[#allocation4_spill] sm:$0xff] %v5410_v53 }
 0x10c   : > { %4286 = vmatmul.mubr.msk.bf16.gmra.mxu0 %vm589_vm0, %v1313_v31 }
 0x10d   : > { %4304 = vmatmul.mubr.msk.bf16.gmra.mxu1 %vm589_vm0, %v1479_v21  ;;  %4309 = vmatprep.mubr.msk.bf16.mxu0 %vm589_vm0, %v4943_v13  ;;  %v1796_v13 = vld [vmem:[#allocation2 + $0x91] sm:$0xff] }
 0x10e   : > { %4327 = vmatprep.mubr.msk.bf16.mxu1 %vm589_vm0, %v4939_v44  ;;  %v1808_v44 = vpack.c.bf16 %v1796_v13, %v1297_v14 }
 0x114   : > { %4310 = vmatmul.mubr.msk.bf16.vlgmr.msra.gmra.mxu0 %vm589_vm0, %v4991_v42  ;;  %v1804_v42 = vld [vmem:[#allocation2 + $0x131] sm:$0xff] }
 0x115   : > { %4328 = vmatmul.mubr.msk.bf16.vlgmr.msra.gmra.mxu1 %vm589_vm0, %v4987_v41  ;;  %4344 = vmatpush3.bf16.msra.mxu0 %v2006_v10  ;;  %v1638_v41 = vld [vmem:[#allocation2 + $0x130] sm:$0xff] }
 0x116   : > { %4313 = vmatprep.mubr.msk.bf16.mxu0 %vm589_vm0, %v5020_v32  ;;  %4331 = vmatprep.mubr.msk.bf16.mxu1 %vm589_vm0, %v5016_v11  ;;  %v1646_v11 = vpack.c.bf16 %v1638_v41, %v5182_v28  ;;  %v1812_v32 = vpack.c.bf16 %v1804_v42, %v1305_v63 }
 0x117   : > { %4362 = vmatpush3.bf16.msra.mxu1 %v2306_v20  ;;  %4533 = vmatprep.subr.msk.bf16.mxu0 %vm2304_vm4, %v2253_v54 }
 0x118   : > { %4534 = vmatprep.subr.msk.bf16.mxu1 %vm2304_vm4, %v5410_v53 }
 0x11c   : > { %4314 = vmatmul.mubr.msk.bf16.gmra.mxu0 %vm589_vm0, %v1642_v16 }
 0x11d   : > { %4332 = vmatmul.mubr.msk.bf16.gmra.mxu1 %vm589_vm0, %v1808_v44  ;;  %4317 = vmatprep.mubr.msk.bf16.mxu0 %vm589_vm0, %v5062_v5 }
 0x11e   : > { %4335 = vmatprep.mubr.msk.bf16.mxu1 %vm589_vm0, %v5058_v59  ;;  %v1962_v59 = vld [vmem:[#allocation2 + $0x92] sm:$0xff] }
 0x11f   : > { %v1974_v5 = vpack.c.bf16 %v1962_v59, %v1463_v39 }
 0x124   : > { %4318 = vmatmul.mubr.msk.bf16.gmra.mxu0 %vm589_vm0, %v5101_v6 }
 0x125   : > { %4336 = vmatmul.mubr.msk.bf16.gmra.mxu1 %vm589_vm0, %v5097_v23  ;;  %4321 = vmatprep.mubr.msk.bf16.mxu0 %vm589_vm0, %v5122_v19  ;;  %v1970_v23 = vld [vmem:[#allocation2 + $0x132] sm:$0xff] }
 0x126   : > { %4339 = vmatprep.mubr.msk.bf16.mxu1 %vm589_vm0, %v5119_v51  ;;  %v1978_v6 = vpack.c.bf16 %v1970_v23, %v1471_v26 }
 0x12c   : > { %4322 = vmatmul.mubr.msk.bf16.gmra.mxu0 %vm589_vm0, %v1646_v11 }
 0x12d   : > { %4340 = vmatmul.mubr.msk.bf16.gmra.mxu1 %vm589_vm0, %v1812_v32  ;;  %4345 = vmatprep.mubr.msk.bf16.mxu0 %vm589_vm0, %v5134_v55 }
 0x134   : > { %4346 = vmatmul.mubr.msk.bf16.vlgmr.msra.gmra.mxu0 %vm589_vm0, %v5140_v57 }
 0x135   : > { %4349 = vmatprep.mubr.msk.bf16.mxu0 %vm589_vm0, %v5158_v25  ;;  %4380 = vmatpush3.bf16.msra.mxu0 %v2430_v7 }
 0x13c   : > { %4350 = vmatmul.mubr.msk.bf16.gmra.mxu0 %vm589_vm0, %v1974_v5 }
 0x13d   : > { %4353 = vmatprep.mubr.msk.bf16.mxu0 %vm589_vm0, %v5169_v30 }
 0x144   : > { %4354 = vmatmul.mubr.msk.bf16.gmra.mxu0 %vm589_vm0, %v5173_v12 }
 0x145   : > { %4357 = vmatprep.mubr.msk.bf16.mxu0 %vm589_vm0, %v5184_v43 }
 0x14c   : > { %4358 = vmatmul.mubr.msk.bf16.gmra.mxu0 %vm589_vm0, %v1978_v6 }
 0x160   : > { %v4203_v22 = vpop.f32.mrf.mxu0 }
 0x161   : > { %v4221_v37 = vpop.f32.mrf.mxu1 }
 0x162   : > { %v5275_v51 = vadd.f32 %v4221_v37, %v4203_v22  ;;  %v771_v19 = vpop.f32.mrf.mxu0 }
 0x163   : > { %v895_v4 = vpop.f32.mrf.mxu1 }
 0x164   : > { %v5277_v46 = vadd.f32 %v895_v4, %v771_v19  ;;  %v4204_v56 = vpop.f32.mrf.mxu0 }
 0x165   : > { %v4222_v45 = vpop.f32.mrf.mxu1 }
 0x166   : > { %v5279_v55 = vadd.f32 %v4222_v45, %v4204_v56  ;;  %v5282_v57 = vpop.f32.mrf.mxu0 }
 0x167   : > { %v5284_v1 = vpop.f32.mrf.mxu1 }
 0x170   : > { %v4207_v18 = vpop.f32.mrf.mxu0 }
 0x171   : > { %v4225_v34 = vpop.f32.mrf.mxu1 }
 0x172   : > { %v5292_v52 = vadd.f32 %v4225_v34, %v4207_v18  ;;  %v787_v25 = vpop.f32.mrf.mxu0  ;;  %v5462_v34 = vld [vmem:[%s5289_s11 + $0xc] sm:$0xf] }
 0x173   : > { %v911_v38 = vpop.f32.mrf.mxu1  ;;  %6293 = vst [vmem:[#allocation5_spill] sm:$0xff] %v5462_v34  ;;  %4535 = vmatprep.subr.msk.bf16.mxu0 %vm2304_vm4, %v5462_v34 }
 0x174   : > { %v5296_v61 = vadd.f32 %v911_v38, %v787_v25  ;;  %v4208_v36 = vpop.f32.mrf.mxu0 }
 0x175   : > { %v4226_v8 = vpop.f32.mrf.mxu1 }
 0x176   : > { %v5298_v15 = vadd.f32 %v4226_v8, %v4208_v36  ;;  %v5300_v30 = vpop.f32.mrf.mxu0 }
 0x177   : > { %v5302_v9 = vpop.f32.mrf.mxu1 }
 0x17c   : > { %v4211_v12 = vpop.f32.mrf.mxu0 }
 0x17d   : > { %v4229_v50 = vpop.f32.mrf.mxu1 }
 0x17e   : > { %v5312_v58 = vadd.f32 %v4229_v50, %v4211_v12  ;;  %v803_v62 = vpop.f32.mrf.mxu0 }
 0x17f   : > { %v927_v28 = vpop.f32.mrf.mxu1 }
 0x180   : > { %v928_v43 = vadd.f32 %v927_v28, %v803_v62  ;;  %v4212_v0 = vpop.f32.mrf.mxu0 }
 0x181   : > { %v4230_v17 = vpop.f32.mrf.mxu1 }
 0x182   : > { %v939_v29 = vadd.f32 %v4230_v17, %v4212_v0  ;;  %v5405_v35 = vpop.f32.mrf.mxu0 }
 0x183   : > { %v5407_v60 = vpop.f32.mrf.mxu1 }
 0x18c   : > { %v4215_v14 = vpop.f32.mrf.mxu0 }
 0x18d   : > { %v4233_v39 = vpop.f32.mrf.mxu1 }
 0x18e   : > { %v952_v33 = vadd.f32 %v4233_v39, %v4215_v14  ;;  %v819_v49 = vpop.f32.mrf.mxu0 }
 0x18f   : > { %v943_v27 = vpop.f32.mrf.mxu1 }
 0x190   : > { %v944_v3 = vadd.f32 %v943_v27, %v819_v49  ;;  %v4216_v24 = vpop.f32.mrf.mxu0 }
 0x191   : > { %v4234_v40 = vpop.f32.mrf.mxu1 }
 0x192   : > { %v955_v47 = vadd.f32 %v4234_v40, %v4216_v24  ;;  %v5412_v63 = vpop.f32.mrf.mxu0 }
 0x193   : > { %v5414_v26 = vpop.f32.mrf.mxu1 }
 0x194   : > { %v4239_v31 = vpop.f32.mrf.mxu0 }
 0x195   : > { %v5418_v21 = vpop.f32.mrf.mxu1  ;;  %v5421_v10 = vadd.f32 %v4239_v31, %v5275_v51 }
 0x196   : > { %v1045_v2 = vpop.f32.mrf.mxu0 }
 0x197   : > { %v5423_v13 = vpop.f32.mrf.mxu1  ;;  %v5426_v16 = vadd.f32 %v1045_v2, %v5277_v46 }
 0x198   : > { %v4240_v44 = vpop.f32.mrf.mxu0 }
 0x199   : > { %v5428_v41 = vpop.f32.mrf.mxu1  ;;  %v5431_v42 = vadd.f32 %v4240_v44, %v5279_v55 }
 0x19a   : > { %v5433_v11 = vpop.f32.mrf.mxu0 }
 0x19b   : > { %v5435_v32 = vpop.f32.mrf.mxu1 }
 0x19c   : > { %v4243_v59 = vpop.f32.mrf.mxu0 }
 0x19d   : > { %v5437_v5 = vpop.f32.mrf.mxu1  ;;  %v5440_v23 = vadd.f32 %v4243_v59, %v5292_v52 }
 0x19e   : > { %v1061_v6 = vpop.f32.mrf.mxu0 }
 0x19f   : > { %v5442_v22 = vpop.f32.mrf.mxu1  ;;  %v5445_v37 = vadd.f32 %v1061_v6, %v5296_v61 }
 0x1a0   : > { %v4244_v51 = vpop.f32.mrf.mxu0 }
 0x1a1   : > { %v5447_v19 = vpop.f32.mrf.mxu1  ;;  %v5450_v4 = vadd.f32 %v4244_v51, %v5298_v15 }
 0x1a2   : > { %v5452_v46 = vpop.f32.mrf.mxu0 }
 0x1a3   : > { %v5454_v56 = vpop.f32.mrf.mxu1 }
 0x1a4   : > { %v4247_v45 = vpop.f32.mrf.mxu0 }
 0x1a5   : > { %v5456_v55 = vpop.f32.mrf.mxu1  ;;  %v5459_v18 = vadd.f32 %v4247_v45, %v5312_v58 }
 0x1a6   : > { %v1077_v48 = vpop.f32.mrf.mxu0 }
 0x1a7   : > { %v5464_v52 = vpop.f32.mrf.mxu1  ;;  %v5468_v20 = vadd.f32 %v1077_v48, %v928_v43 }
 0x1a8   : > { %v4248_v25 = vpop.f32.mrf.mxu0 }
 0x1a9   : > { %v5470_v38 = vpop.f32.mrf.mxu1  ;;  %v5472_v61 = vadd.f32 %v4248_v25, %v939_v29 }
 0x1aa   : > { %v5474_v36 = vpop.f32.mrf.mxu0 }
 0x1ab   : > { %v5476_v8 = vpop.f32.mrf.mxu1 }
 0x1ac   : > { %v4251_v15 = vpop.f32.mrf.mxu0 }
 0x1ad   : > { %v5478_v12 = vpop.f32.mrf.mxu1  ;;  %v5480_v50 = vadd.f32 %v4251_v15, %v952_v33 }
 0x1ae   : > { %6294 = vst [vmem:[#allocation6_spill] sm:$0xff] %v5478_v12  ;;  %v1093_v58 = vpop.f32.mrf.mxu0 }
 0x1af   : > { %6295 = vst [vmem:[#allocation7_spill] sm:$0xff] %v5480_v50  ;;  %v5482_v62 = vpop.f32.mrf.mxu1  ;;  %v5484_v28 = vadd.f32 %v1093_v58, %v944_v3  ;;  %v899_v50 = vadd.f32 %v5284_v1, %v5282_v57 }
 0x1b0   : > { %6296 = vst [vmem:[#allocation8_spill] sm:$0xff] %v5482_v62  ;;  %v4252_v43 = vpop.f32.mrf.mxu0 }
 0x1b1   : > { %6297 = vst [vmem:[#allocation9_spill] sm:$0xff] %v5484_v28  ;;  %v5486_v0 = vpop.f32.mrf.mxu1  ;;  %v5488_v17 = vadd.f32 %v4252_v43, %v955_v47 }
 0x1b2   : > { %6298 = vst [vmem:[#allocation10_spill] sm:$0xff] %v5486_v0  ;;  %v5490_v29 = vpop.f32.mrf.mxu0 }
 0x1b3   : > { %6299 = vst [vmem:[#allocation11_spill] sm:$0xff] %v5488_v17  ;;  %6300 = vst [vmem:[#allocation12_spill] sm:$0xff] %v5490_v29  ;;  %v5492_v54 = vpop.f32.mrf.mxu1 }
 0x1b4   : > { %6301 = vst [vmem:[#allocation13_spill] sm:$0xff] %v5492_v54  ;;  %v4275_v7 = vpop.f32.mrf.mxu0 }
 0x1b5   : > { %v4293_v14 = vpop.f32.mrf.mxu1 }
 0x1b6   : > { %v1377_v39 = vpop.f32.mrf.mxu0 }
 0x1b7   : > { %v1543_v49 = vpop.f32.mrf.mxu1 }
 0x1b8   : > { %v4276_v33 = vpop.f32.mrf.mxu0 }
 0x1b9   : > { %v5494_v27 = vpop.f32.mrf.mxu1 }
 0x1ba   : > { %v1380_v24 = vpop.f32.mrf.mxu0 }
 0x1bb   : > { %v5496_v40 = vpop.f32.mrf.mxu1 }
 0x1bc   : > { %v5498_v3 = vpop.f32.mrf.mxu0 }
 0x1bd   : > { %v5500_v31 = vpop.f32.mrf.mxu1 }
 0x1be   : > { %v5502_v47 = vpop.f32.mrf.mxu0 }
 0x1bf   : > { %v5504_v2 = vpop.f32.mrf.mxu1 }
 0x1c0   : > { %v5506_v44 = vpop.f32.mrf.mxu0 }
 0x1c1   : > { %v5508_v59 = vpop.f32.mrf.mxu1 }
 0x1c2   : > { %6302 = vst [vmem:[#allocation14_spill] sm:$0xff] %v5508_v59  ;;  %v5510_v6 = vpop.f32.mrf.mxu0 }
 0x1c3   : > { %v5512_v51 = vpop.f32.mrf.mxu1 }
 0x1c4   : > { %6303 = vst [vmem:[#allocation15_spill] sm:$0xff] %v5512_v51  ;;  %v5514_v45 = vpop.f32.mrf.mxu0 }
 0x1c5   : > { %6304 = vst [vmem:[#allocation16_spill] sm:$0xff] %v5514_v45  ;;  %v5516_v48 = vpop.f32.mrf.mxu1  ;;  %v1276_v45 = vadd.f32 %v5418_v21, %v5421_v10 }
 0x1c6   : > { %6305 = vst [vmem:[#allocation17_spill] sm:$0xff] %v5516_v48  ;;  %v5518_v25 = vpop.f32.mrf.mxu0 }
 0x1c7   : > { %6306 = vst [vmem:[#allocation18_spill] sm:$0xff] %v5518_v25  ;;  %v5520_v15 = vpop.f32.mrf.mxu1 }
 0x1c8   : > { %6307 = vst [vmem:[#allocation19_spill] sm:$0xff] %v5520_v15  ;;  %v5522_v58 = vpop.f32.mrf.mxu0 }
 0x1c9   : > { %6308 = vst [vmem:[#allocation20_spill] sm:$0xff] %v5522_v58  ;;  %v5524_v43 = vpop.f32.mrf.mxu1 }
 0x1ca   : > { %6309 = vst [vmem:[#allocation21_spill] sm:$0xff] %v5524_v43  ;;  %v5526_v34 = vpop.f32.mrf.mxu0 }
 0x1cb   : > { %6310 = vst [vmem:[#allocation22_spill] sm:$0xff] %v5526_v34  ;;  %v5528_v53 = vpop.f32.mrf.mxu1 }
 0x1cc   : > { %6311 = vst [vmem:[#allocation23_spill] sm:$0xff] %v5528_v53  ;;  %v5530_v54 = vpop.f32.mrf.mxu0 }
 0x1cd   : > { %6312 = vst [vmem:[#allocation24_spill] sm:$0xff] %v5530_v54  ;;  %v5532_v0 = vpop.f32.mrf.mxu1 }
 0x1ce   : > { %6313 = vst [vmem:[#allocation25_spill] sm:$0xff] %v5532_v0  ;;  %v5534_v17 = vpop.f32.mrf.mxu0 }
 0x1cf   : > { %6314 = vst [vmem:[#allocation26_spill] sm:$0xff] %v5534_v17  ;;  %v5536_v29 = vpop.f32.mrf.mxu1 }
 0x1d0   : > { %6315 = vst [vmem:[#allocation27_spill] sm:$0xff] %v5536_v29  ;;  %v5538_v48 = vpop.f32.mrf.mxu0 }
 0x1d1   : > { %6316 = vst [vmem:[#allocation28_spill] sm:$0xff] %v5538_v48  ;;  %v5540_v62 = vpop.f32.mrf.mxu1 }
 0x1d2   : > { %6317 = vst [vmem:[#allocation29_spill] sm:$0xff] %v5540_v62  ;;  %v5542_v15 = vpop.f32.mrf.mxu0 }
 0x1d3   : > { %6318 = vst [vmem:[#allocation30_spill] sm:$0xff] %v5542_v15  ;;  %v5544_v58 = vpop.f32.mrf.mxu1 }
 0x1d4   : > { %6319 = vst [vmem:[#allocation31_spill] sm:$0xff] %v5544_v58  ;;  %v4311_v43 = vpop.f32.mrf.mxu0 }
 0x1d5   : > { %v4329_v34 = vpop.f32.mrf.mxu1 }
 0x1d6   : > { %v1710_v28 = vpop.f32.mrf.mxu0 }
 0x1d7   : > { %v1876_v53 = vpop.f32.mrf.mxu1 }
 0x1d8   : > { %v4312_v25 = vpop.f32.mrf.mxu0 }
 0x1d9   : > { %v5546_v51 = vpop.f32.mrf.mxu1 }
 0x1da   : > { %v1713_v54 = vpop.f32.mrf.mxu0 }
 0x1db   : > { %v5550_v29 = vpop.f32.mrf.mxu1 }
 0x1dc   : > { %v4315_v0 = vpop.f32.mrf.mxu0  ;;  %6321 = vst [vmem:[#allocation33_spill] sm:$0xff] %v5550_v29 }
 0x1dd   : > { %v5556_v15 = vpop.f32.mrf.mxu1 }
 0x1de   : > { %v5548_v17 = vpop.f32.mrf.mxu0  ;;  %6324 = vst [vmem:[#allocation36_spill] sm:$0xff] %v5556_v15  ;;  %v1442_v15 = vadd.f32 %v4275_v7, %v1276_v45 }
 0x1df   : > { %6320 = vst [vmem:[#allocation32_spill] sm:$0xff] %v5548_v17  ;;  %v5566_v59 = vpop.f32.mrf.mxu1 }
 0x1e0   : > { %v5552_v48 = vpop.f32.mrf.mxu0  ;;  %v1608_v10 = vadd.f32 %v4293_v14, %v1442_v15 }
 0x1e1   : > { %6322 = vst [vmem:[#allocation34_spill] sm:$0xff] %v5552_v48  ;;  %v1274_v48 = vadd.f32 %v5423_v13, %v5426_v16  ;;  %v5577_v57 = vpop.f32.mrf.mxu1  ;;  %v915_v13 = vadd.f32 %v5302_v9, %v5300_v30  ;;  %v1280_v16 = vadd.f32 %v5437_v5, %v5440_v23  ;;  %v931_v5 = vadd.f32 %v5407_v60, %v5405_v35 }
 0x1e2   : > { %v5554_v62 = vpop.f32.mrf.mxu0  ;;  %v1281_v23 = vadd.f32 %v5447_v19, %v5450_v4 }
 0x1e3   : > { %6323 = vst [vmem:[#allocation35_spill] sm:$0xff] %v5554_v62  ;;  %v1109_v62 = vadd.f32 %v5433_v11, %v899_v50  ;;  %v5588_v7 = vpop.f32.mrf.mxu1  ;;  %v1117_v35 = vadd.f32 %v5474_v36, %v931_v5 }
 0x1e4   : > { %v5558_v58 = vpop.f32.mrf.mxu0  ;;  %v1447_v19 = vadd.f32 %v5506_v44, %v1281_v23  ;;  %v6338_v23 = vld [vmem:[#allocation9_spill] sm:$0xff] }
 0x1e5   : > { %6325 = vst [vmem:[#allocation37_spill] sm:$0xff] %v5558_v58  ;;  %v1440_v58 = vadd.f32 %v1377_v39, %v1274_v48  ;;  %v1275_v21 = vadd.f32 %v5435_v32, %v1109_v62  ;;  %v1278_v39 = vadd.f32 %v5442_v22, %v5445_v37  ;;  %v1113_v32 = vadd.f32 %v5452_v46, %v915_v13 }
 0x1e6   : > { %v5560_v12 = vpop.f32.mrf.mxu0  ;;  %v947_v46 = vadd.f32 %v5414_v26, %v5412_v63  ;;  %v1284_v63 = vadd.f32 %v5456_v55, %v5459_v18  ;;  %v1283_v18 = vadd.f32 %v5476_v8, %v1117_v35  ;;  %v6330_v48 = vld [vmem:[#allocation32_spill] sm:$0xff] }
 0x1e7   : > { %6326 = vst [vmem:[#allocation38_spill] sm:$0xff] %v5560_v12  ;;  %v1277_v12 = vadd.f32 %v5428_v41, %v5431_v42  ;;  %v1606_v50 = vadd.f32 %v1543_v49, %v1440_v58  ;;  %v1441_v41 = vadd.f32 %v1380_v24, %v1275_v21  ;;  %v1775_v42 = vadd.f32 %v4311_v43, %v1608_v10  ;;  %v5611_v49 = vpop.f32.mrf.mxu1  ;;  %v6333_v43 = vld [vmem:[#allocation6_spill] sm:$0xff]  ;;  %v6334_v10 = vld [vmem:[#allocation15_spill] sm:$0xff] }
 0x1e8   : > { %v5568_v17 = vpop.f32.mrf.mxu0  ;;  %v1444_v22 = vadd.f32 %v5502_v47, %v1278_v39  ;;  %v1285_v47 = vadd.f32 %v5470_v38, %v5472_v61  ;;  %v6337_v39 = vld [vmem:[#allocation34_spill] sm:$0xff] }
 0x1e9   : > { %6327 = vst [vmem:[#allocation39_spill] sm:$0xff] %v5568_v17  ;;  %v1443_v17 = vadd.f32 %v4276_v33, %v1277_v12  ;;  %v1446_v12 = vadd.f32 %v5498_v3, %v1280_v16  ;;  %v1773_v9 = vadd.f32 %v1710_v28, %v1606_v50  ;;  %v1941_v28 = vadd.f32 %v4329_v34, %v1775_v42  ;;  %v5628_v45 = vpop.f32.mrf.mxu1  ;;  %v6335_v16 = vld [vmem:[#allocation18_spill] sm:$0xff]  ;;  %v6336_v50 = vld [vmem:[#allocation36_spill] sm:$0xff] }
 0x1ea   : > { %v5573_v29 = vpop.f32.mrf.mxu0  ;;  %v1279_v33 = vadd.f32 %v5454_v56, %v1113_v32  ;;  %v1610_v56 = vadd.f32 %v5504_v2, %v1444_v22  ;;  %v6339_v22 = vld [vmem:[#allocation8_spill] sm:$0xff] }
 0x1eb   : > { %v1609_v30 = vadd.f32 %v5494_v27, %v1443_v17  ;;  %v1607_v17 = vadd.f32 %v5496_v40, %v1441_v41  ;;  %v1612_v60 = vadd.f32 %v5500_v31, %v1446_v12  ;;  %v5617_v27 = vld [vmem:[%s279_s14] ss:$0 sm:$0xff]  ;;  %v1939_v26 = vadd.f32 %v1876_v53, %v1773_v9  ;;  %v5643_v12 = vpop.f32.mrf.mxu1 }
 0x1ec   : > { %v5579_v1 = vpop.f32.mrf.mxu0  ;;  %v1282_v40 = vadd.f32 %v5464_v52, %v5468_v20  ;;  %v1445_v36 = vadd.f32 %v5510_v6, %v1279_v33  ;;  %v6329_v20 = vld [vmem:[#allocation16_spill] sm:$0xff]  ;;  %v1777_v6 = vadd.f32 %v6330_v48, %v1610_v56  ;;  %v6347_v48 = vld [vmem:[#allocation11_spill] sm:$0xff] }
 0x1ed   : > { %v1776_v14 = vadd.f32 %v4312_v25, %v1609_v30  ;;  %v1774_v24 = vadd.f32 %v1713_v54, %v1607_v17  ;;  %v1779_v3 = vadd.f32 %v4315_v0, %v1612_v60  ;;  %v6328_v54 = vld [vmem:[#allocation14_spill] sm:$0xff]  ;;  %v1450_v2 = vadd.f32 %v6329_v20, %v1284_v63  ;;  %v6331_v25 = vld [vmem:[#allocation33_spill] sm:$0xff]  ;;  %v6341_v33 = vld [vmem:[#allocation20_spill] sm:$0xff] }
 0x1ee   : > { %v5586_v11 = vpop.f32.mrf.mxu0  ;;  %v1613_v52 = vadd.f32 %v6328_v54, %v1447_v19  ;;  %v1611_v13 = vadd.f32 %v6334_v10, %v1445_v36  ;;  %v1448_v8 = vadd.f32 %v6335_v16, %v1282_v40  ;;  %v1286_v17 = vadd.f32 %v6339_v22, %v6338_v23  ;;  %v6343_v40 = vld [vmem:[#allocation12_spill] sm:$0xff]  ;;  %v6344_v36 = vld [vmem:[#allocation19_spill] sm:$0xff]  ;;  %v1911_v54 = vpop.f32.mrf.mxu1 }
 0x1ef   : > { %v1942_v44 = vadd.f32 %v5546_v51, %v1776_v14  ;;  %v1940_v15 = vadd.f32 %v6331_v25, %v1774_v24  ;;  %v6332_v51 = vld [vmem:[#allocation7_spill] sm:$0xff]  ;;  %v1945_v41 = vadd.f32 %v6336_v50, %v1779_v3  ;;  %v1451_v35 = vadd.f32 %v6341_v33, %v1285_v47 }
 0x1f0   : > { %v5594_v62 = vpop.f32.mrf.mxu0  ;;  %v1288_v21 = vadd.f32 %v6333_v43, %v6332_v51  ;;  %v1780_v32 = vadd.f32 %v6337_v39, %v1613_v52  ;;  %v1943_v60 = vadd.f32 %v5566_v59, %v1777_v6  ;;  %v1121_v56 = vadd.f32 %v6343_v40, %v947_v46  ;;  %v6348_v6 = vld [vmem:[#allocation10_spill] sm:$0xff]  ;;  %v6349_v46 = vld [vmem:[#allocation21_spill] sm:$0xff] }
 0x1f1   : > { %v1614_v3 = vadd.f32 %v6344_v36, %v1448_v8  ;;  %v1617_v25 = vadd.f32 %v6349_v46, %v1451_v35  ;;  %v6353_v8 = vld [vmem:[#allocation23_spill] sm:$0xff]  ;;  %v6357_v35 = vld [vmem:[#allocation28_spill] sm:$0xff] }
 0x1f2   : > { %v5606_v37 = vpop.f32.mrf.mxu0  ;;  %v1946_v59 = vadd.f32 %v5577_v57, %v1780_v32  ;;  %v2254_v32 = vld [vmem:[#allocation3 + $0x1] sm:$0xff] }
 0x1f4   : > { %v4347_v4 = vpop.f32.mrf.mxu0 }
 0x1f5   : > { %v2107_v34 = vadd.f32 %v4347_v4, %v1941_v28  ;;  %v6340_v28 = vld [vmem:[#allocation17_spill] sm:$0xff]  ;;  %v6342_v4 = vld [vmem:[#allocation35_spill] sm:$0xff] }
 0x1f6   : > { %v2042_v31 = vpop.f32.mrf.mxu0  ;;  %v1616_v14 = vadd.f32 %v6340_v28, %v1450_v2  ;;  %v1778_v63 = vadd.f32 %v6342_v4, %v1611_v13  ;;  %v6352_v13 = vld [vmem:[#allocation13_spill] sm:$0xff]  ;;  %v2229_v28 = vld [vmem:[#allocation3] sm:$0xff] }
 0x1f7   : > { %v2130_v53 = vadd.f32 %v5617_v27, %v2107_v34  ;;  %v2105_v55 = vadd.f32 %v2042_v31, %v1939_v26  ;;  %v6345_v31 = vld [vmem:[#allocation22_spill] sm:$0xff]  ;;  %v1287_v16 = vadd.f32 %v6352_v13, %v1121_v56  ;;  %v6358_v56 = vld [vmem:[#allocation27_spill] sm:$0xff]  ;;  %v6363_v13 = vld [vmem:[#allocation5_spill] sm:$0xff] }
 0x1f8   : > { %v4348_v0 = vpop.f32.mrf.mxu0  ;;  %v1944_v51 = vadd.f32 %v5588_v7, %v1778_v63 }
 0x1f9   : > { %v2146_v58 = vmax.f32 %v2130_v53, 0.0  ;;  %v2128_v38 = vadd.f32 %v5617_v27, %v2105_v55  ;;  %v2108_v61 = vadd.f32 %v4348_v0, %v1942_v44  ;;  %v1449_v44 = vadd.f32 %v6345_v31, %v1283_v18  ;;  %v6346_v53 = vld [vmem:[#allocation37_spill] sm:$0xff]  ;;  %v6351_v18 = vld [vmem:[#allocation38_spill] sm:$0xff] }
 0x1fa   : > { %v2045_v42 = vpop.f32.mrf.mxu0  ;;  %v1783_v55 = vadd.f32 %v6346_v53, %v1616_v14  ;;  %v1289_v0 = vadd.f32 %v6348_v6, %v6347_v48  ;;  %v6356_v14 = vld [vmem:[#allocation25_spill] sm:$0xff] }
 0x1fb   : > { %2215 = vst.msk [vmem:[#allocation3 + $0x31] sm:$0xff] %vm2160_vm5, %v2146_v58  ;;  %v2144_v30 = vmax.f32 %v2128_v38, 0.0  ;;  %v2131_v9 = vadd.f32 %v5617_v27, %v2108_v61  ;;  %v2106_v5 = vadd.f32 %v2045_v42, %v1940_v15  ;;  %v6350_v15 = vld [vmem:[#allocation24_spill] sm:$0xff]  ;;  %v1781_v38 = vadd.f32 %v6351_v18, %v1614_v3  ;;  %v6359_v3 = vld [vmem:[#allocation30_spill] sm:$0xff] }
 0x1fc   : > { %v4351_v19 = vpop.f32.mrf.mxu0  ;;  %v1454_v58 = vadd.f32 %v6350_v15, %v1288_v21  ;;  %v1615_v50 = vadd.f32 %v6353_v8, %v1449_v44  ;;  %v1949_v39 = vadd.f32 %v5611_v49, %v1783_v55  ;;  %v1453_v31 = vadd.f32 %v6359_v3, %v1287_v16  ;;  %v5723_v8 = vld [vmem:[%s5289_s11 + $0x10] sm:$0xf] }
 0x1fd   : > { %2213 = vst.msk [vmem:[#allocation3 + $0x11] sm:$0xff] %vm2160_vm5, %v2144_v30  ;;  %v2147_v26 = vmax.f32 %v2131_v9, 0.0  ;;  %v2129_v24 = vadd.f32 %v5617_v27, %v2106_v5  ;;  %v2111_v34 = vadd.f32 %v4351_v19, %v1945_v41  ;;  %v6354_v41 = vld [vmem:[#allocation26_spill] sm:$0xff]  ;;  %v6355_v30 = vld [vmem:[#allocation39_spill] sm:$0xff]  ;;  %v4341_v5 = vpop.f32.mrf.mxu1  ;;  %v2746_v16 = vsel %vm2304_vm4, %v6363_v13, 0 }
 0x1fe   : > { %v2058_v47 = vpop.f32.mrf.mxu0  ;;  %v1452_v42 = vadd.f32 %v6354_v41, %v1286_v17  ;;  %v1784_v9 = vadd.f32 %v6355_v30, %v1617_v25  ;;  %v1620_v33 = vadd.f32 %v6356_v14, %v1454_v58  ;;  %v1947_v17 = vadd.f32 %v5628_v45, %v1781_v38  ;;  %v6361_v25 = vld [vmem:[#allocation4_spill] sm:$0xff] }
 0x1ff   : > { %2216 = vst.msk [vmem:[#allocation3 + $0x41] sm:$0xff] %vm2160_vm5, %v2147_v26  ;;  %v2145_v52 = vmax.f32 %v2129_v24, 0.0  ;;  %v2134_v20 = vadd.f32 %v5617_v27, %v2111_v34  ;;  %v2109_v2 = vadd.f32 %v2058_v47, %v1943_v60  ;;  %v1455_v60 = vadd.f32 %v6357_v35, %v1289_v0  ;;  %v1924_v55 = vpop.f32.mrf.mxu1 }
 0x200   : > { %v4352_v61 = vpop.f32.mrf.mxu0  ;;  %v1782_v49 = vadd.f32 %v5573_v29, %v1615_v50  ;;  %v1618_v36 = vadd.f32 %v6358_v56, %v1452_v42  ;;  %v1787_v45 = vadd.f32 %v5579_v1, %v1620_v33  ;;  %v1950_v53 = vadd.f32 %v5643_v12, %v1784_v9 }
 0x201   : > { %2214 = vst.msk [vmem:[#allocation3 + $0x21] sm:$0xff] %vm2160_vm5, %v2145_v52  ;;  %v2150_v57 = vmax.f32 %v2134_v20, 0.0  ;;  %v2132_v43 = vadd.f32 %v5617_v27, %v2109_v2  ;;  %v2112_v10 = vadd.f32 %v4352_v61, %v1946_v59  ;;  %v6360_v20 = vld [vmem:[#allocation29_spill] sm:$0xff]  ;;  %v2580_v15 = vsel %vm2304_vm4, %v6361_v25, 0  ;;  %v6362_v61 = vld [vmem:[#allocation31_spill] sm:$0xff]  ;;  %v4342_v41 = vpop.f32.mrf.mxu1 }
 0x202   : > { %v2061_v21 = vpop.f32.mrf.mxu0  ;;  %v1621_v2 = vadd.f32 %v6360_v20, %v1455_v60  ;;  %v1948_v48 = vadd.f32 %v1911_v54, %v1782_v49  ;;  %v1785_v6 = vadd.f32 %v5586_v11, %v1618_v36  ;;  %v5701_v12 = vld [vmem:[#allocation3 + $0x31] sm:$0xff] }
 0x203   : > { %2219 = vst.msk [vmem:[#allocation3 + $0x71] sm:$0xff] %vm2160_vm5, %v2150_v57  ;;  %v2148_v7 = vmax.f32 %v2132_v43, 0.0  ;;  %v2135_v23 = vadd.f32 %v5617_v27, %v2112_v10  ;;  %v2110_v22 = vadd.f32 %v2061_v21, %v1944_v51  ;;  %v5713_v38 = vld [vmem:[#allocation3 + $0x30] sm:$0xff]  ;;  %v1619_v51 = vadd.f32 %v6362_v61, %v1453_v31  ;;  %v1927_v49 = vpop.f32.mrf.mxu1 }
 0x204   : > { %v4355_v19 = vpop.f32.mrf.mxu0  ;;  %v5681_v4 = vld [vmem:[#allocation3 + $0x11] sm:$0xff]  ;;  %v1953_v57 = vadd.f32 %v4341_v5, %v1787_v45  ;;  %v1788_v50 = vadd.f32 %v5594_v62, %v1621_v2  ;;  %v1951_v30 = vadd.f32 %v1924_v55, %v1785_v6 }
 0x205   : > { %v5683_v63 = vld [vmem:[#allocation3 + $0x10] sm:$0xff]  ;;  %2217 = vst.msk [vmem:[#allocation3 + $0x51] sm:$0xff] %vm2160_vm5, %v2148_v7  ;;  %v2151_v26 = vmax.f32 %v2135_v23, 0.0  ;;  %v2133_v24 = vadd.f32 %v5617_v27, %v2110_v22  ;;  %v2115_v34 = vadd.f32 %v4355_v19, %v1949_v39  ;;  %v2270_v40 = vpack.c.bf16 %v5681_v4, %v2254_v32 }
 0x206   : > { %v2074_v29 = vpop.f32.mrf.mxu0  ;;  %v2245_v44 = vpack.c.bf16 %v5683_v63, %v2229_v28  ;;  %v5731_v32 = vld [vmem:[%s5289_s11 + $0x14] sm:$0xf]  ;;  %v1786_v9 = vadd.f32 %v5606_v37, %v1619_v51  ;;  %v5736_v5 = vld [vmem:[#allocation3 + $0x41] sm:$0xff] }
 0x207   : > { %2220 = vst.msk [vmem:[#allocation3 + $0x81] sm:$0xff] %vm2160_vm5, %v2151_v26  ;;  %v2149_v47 = vmax.f32 %v2133_v24, 0.0  ;;  %v2138_v59 = vadd.f32 %v5617_v27, %v2115_v34  ;;  %v2113_v52 = vadd.f32 %v2074_v29, %v1947_v17  ;;  %4363 = vmatprep.mubr.msk.bf16.mxu1 %vm2160_vm5, %v2270_v40  ;;  %v5748_v33 = vld [vmem:[#allocation3 + $0x40] sm:$0xff]  ;;  %v1954_v17 = vadd.f32 %v4342_v41, %v1788_v50 }
 0x208   : > { %4381 = vmatprep.mubr.msk.bf16.mxu0 %vm2160_vm5, %v2245_v44  ;;  %v4356_v1 = vpop.f32.mrf.mxu0  ;;  %v5699_v0 = vld [vmem:[#allocation3 + $0x21] sm:$0xff]  ;;  %v1952_v34 = vadd.f32 %v1927_v49, %v1786_v9 }
 0x209   : > { %v5703_v46 = vld [vmem:[#allocation3 + $0x20] sm:$0xff]  ;;  %2218 = vst.msk [vmem:[#allocation3 + $0x61] sm:$0xff] %vm2160_vm5, %v2149_v47  ;;  %v2154_v58 = vmax.f32 %v2138_v59, 0.0  ;;  %v2136_v54 = vadd.f32 %v5617_v27, %v2113_v52  ;;  %v2116_v18 = vadd.f32 %v4356_v1, %v1950_v53  ;;  %v5711_v11 = vpack.c.bf16 %v5701_v12, %v5699_v0 }
 0x20a   : > { %v2077_v43 = vpop.f32.mrf.mxu0  ;;  %v5718_v10 = vpack.c.bf16 %v5713_v38, %v5703_v46  ;;  %v5766_v36 = vld [vmem:[#allocation3 + $0x71] sm:$0xff]  ;;  %v2262_v59 = vld [vmem:[#allocation3 + $0xa1] sm:$0xff] }
 0x20b   : > { %2223 = vst.msk [vmem:[#allocation3 + $0xd1] sm:$0xff] %vm2160_vm5, %v2154_v58  ;;  %v2152_v42 = vmax.f32 %v2136_v54, 0.0  ;;  %v2139_v39 = vadd.f32 %v5617_v27, %v2116_v18  ;;  %v2114_v21 = vadd.f32 %v2077_v43, %v1948_v48  ;;  %4364 = vmatmul.mubr.msk.bf16.vlgmr.msra.gmra.mxu1 %vm2160_vm5, %v5711_v11  ;;  %v5776_v53 = vld [vmem:[#allocation3 + $0x70] sm:$0xff]  ;;  %v2237_v52 = vld [vmem:[#allocation3 + $0xa0] sm:$0xff] }
 0x20c   : > { %4382 = vmatmul.mubr.msk.bf16.vlgmr.msra.gmra.mxu0 %vm2160_vm5, %v5718_v10  ;;  %4398 = vmatpush3.bf16.msra.mxu1 %v2580_v15  ;;  %v4359_v62 = vpop.f32.mrf.mxu0  ;;  %v5738_v7 = vld [vmem:[#allocation3 + $0x51] sm:$0xff]  ;;  %v2529_v9 = vld [vmem:[#allocation3 + $0x2] sm:$0xff] }
 0x20d   : > { %v5740_v23 = vld [vmem:[#allocation3 + $0x50] sm:$0xff]  ;;  %2221 = vst.msk [vmem:[#allocation3 + $0xb1] sm:$0xff] %vm2160_vm5, %v2152_v42  ;;  %v2155_v22 = vmax.f32 %v2139_v39, 0.0  ;;  %v2137_v28 = vadd.f32 %v5617_v27, %v2114_v21  ;;  %v2119_v14 = vadd.f32 %v4359_v62, %v1953_v57  ;;  %v5746_v37 = vpack.c.bf16 %v5738_v7, %v5736_v5  ;;  %4416 = vmatpush3.bf16.msra.mxu0 %v2746_v16 }
 0x20e   : > { %4536 = vmatprep.subr.msk.bf16.mxu1 %vm2304_vm4, %v5723_v8  ;;  %v2090_v35 = vpop.f32.mrf.mxu0  ;;  %v5754_v60 = vpack.c.bf16 %v5740_v23, %v5748_v33  ;;  %4537 = vmatprep.subr.msk.bf16.mxu0 %vm2304_vm4, %v5731_v32  ;;  %v5839_v62 = vld [vmem:[#allocation3 + $0x12] sm:$0xff] }
 0x20f   : > { %2224 = vst.msk [vmem:[#allocation3 + $0xe1] sm:$0xff] %vm2160_vm5, %v2155_v22  ;;  %v2153_v19 = vmax.f32 %v2137_v28, 0.0  ;;  %v2142_v26 = vadd.f32 %v5617_v27, %v2119_v14  ;;  %v2117_v24 = vadd.f32 %v2090_v35, %v1951_v30  ;;  %4367 = vmatprep.mubr.msk.bf16.mxu1 %vm2160_vm5, %v5746_v37  ;;  %v2545_v49 = vpack.c.bf16 %v5839_v62, %v2529_v9 }
 0x210   : > { %4385 = vmatprep.mubr.msk.bf16.mxu0 %vm2160_vm5, %v5754_v60  ;;  %v4360_v40 = vpop.f32.mrf.mxu0  ;;  %v5764_v56 = vld [vmem:[#allocation3 + $0x61] sm:$0xff] }
 0x211   : > { %v5768_v3 = vld [vmem:[#allocation3 + $0x60] sm:$0xff]  ;;  %2222 = vst.msk [vmem:[#allocation3 + $0xc1] sm:$0xff] %vm2160_vm5, %v2153_v19  ;;  %v2158_v31 = vmax.f32 %v2142_v26, 0.0  ;;  %v2140_v45 = vadd.f32 %v5617_v27, %v2117_v24  ;;  %v2120_v29 = vadd.f32 %v4360_v40, %v1954_v17  ;;  %v5774_v44 = vpack.c.bf16 %v5766_v36, %v5764_v56  ;;  %v5861_v24 = vld [vmem:[#allocation3 + $0x32] sm:$0xff] }
 0x212   : > { %v2093_v55 = vpop.f32.mrf.mxu0  ;;  %v5780_v47 = vpack.c.bf16 %v5776_v53, %v5768_v3  ;;  %v5799_v61 = vld [vmem:[#allocation3 + $0xd1] sm:$0xff]  ;;  %v2711_v19 = vpack.c.bf16 %v5703_v46, %v5683_v63  ;;  %v2531_v26 = vld [vmem:[#allocation3 + $0x22] sm:$0xff]  ;;  %v2712_v63 = vpack.c.bf16 %v5748_v33, %v5713_v38 }
 0x213   : > { %2227 = vst.msk [vmem:[#allocation3 + $0x111] sm:$0xff] %vm2160_vm5, %v2158_v31  ;;  %v2156_v20 = vmax.f32 %v2140_v45, 0.0  ;;  %v2143_v2 = vadd.f32 %v5617_v27, %v2120_v29  ;;  %v2118_v48 = vadd.f32 %v2093_v55, %v1952_v34  ;;  %4368 = vmatmul.mubr.msk.bf16.gmra.mxu1 %vm2160_vm5, %v5774_v44  ;;  %v5803_v43 = vld [vmem:[#allocation3 + $0xd0] sm:$0xff]  ;;  %v5866_v40 = vpack.c.bf16 %v5861_v24, %v2531_v26  ;;  %v2533_v46 = vld [vmem:[#allocation3 + $0x42] sm:$0xff] }
 0x214   : > { %4386 = vmatmul.mubr.msk.bf16.gmra.mxu0 %vm2160_vm5, %v5780_v47  ;;  %v5788_v6 = vld [vmem:[#allocation3 + $0xb1] sm:$0xff]  ;;  %v2912_v31 = vsel %vm2304_vm4, %v5723_v8, 0  ;;  %v2713_v29 = vpack.c.bf16 %v5768_v3, %v5740_v23  ;;  %v3078_v55 = vsel %vm2304_vm4, %v5731_v32, 0  ;;  %v4014_v8 = vld [vmem:[%s5289_s11 + $0x1c] sm:$0xf]  ;;  %v2535_v38 = vld [vmem:[#allocation3 + $0x62] sm:$0xff] }
 0x215   : > { %v5790_v1 = vld [vmem:[#allocation3 + $0xb0] sm:$0xff]  ;;  %2225 = vst.msk [vmem:[#allocation3 + $0xf1] sm:$0xff] %vm2160_vm5, %v2156_v20  ;;  %v2159_v25 = vmax.f32 %v2143_v2, 0.0  ;;  %v2141_v15 = vadd.f32 %v5617_v27, %v2118_v48  ;;  %v2274_v58 = vpack.c.bf16 %v5788_v6, %v2262_v59  ;;  %v4005_v59 = vld [vmem:[%s5289_s11 + $0x18] sm:$0xf]  ;;  %v5888_v33 = vld [vmem:[#allocation3 + $0x80] sm:$0xff] }
 0x216   : > { %v2249_v54 = vpack.c.bf16 %v5790_v1, %v2237_v52  ;;  %v5815_v16 = vld [vmem:[#allocation3 + $0xe1] sm:$0xff]  ;;  %v5863_v34 = vld [vmem:[#allocation3 + $0x52] sm:$0xff]  ;;  %v2714_v20 = vpack.c.bf16 %v5888_v33, %v5776_v53 }
 0x217   : > { %2228 = vst.msk [vmem:[#allocation3 + $0x121] sm:$0xff] %vm2160_vm5, %v2159_v25  ;;  %v2157_v18 = vmax.f32 %v2141_v15, 0.0  ;;  %4371 = vmatprep.mubr.msk.bf16.mxu1 %vm2160_vm5, %v2274_v58  ;;  %v5821_v41 = vld [vmem:[#allocation3 + $0xe0] sm:$0xff]  ;;  %v5875_v45 = vpack.c.bf16 %v5863_v34, %v2533_v46  ;;  %v2538_v3 = vld [vmem:[#allocation3 + $0xb2] sm:$0xff] }
 0x218   : > { %4389 = vmatprep.mubr.msk.bf16.mxu0 %vm2160_vm5, %v2249_v54  ;;  %v5801_v51 = vld [vmem:[#allocation3 + $0xc1] sm:$0xff]  ;;  %v2536_v32 = vld [vmem:[#allocation3 + $0x72] sm:$0xff]  ;;  %v2716_v53 = vpack.c.bf16 %v5821_v41, %v5803_v43 }
 0x219   : > { %v2239_v57 = vld [vmem:[#allocation3 + $0xc0] sm:$0xff]  ;;  %2226 = vst.msk [vmem:[#allocation3 + $0x101] sm:$0xff] %vm2160_vm5, %v2157_v18  ;;  %v5808_v27 = vpack.c.bf16 %v5799_v61, %v5801_v51  ;;  %v5891_v52 = vpack.c.bf16 %v2536_v32, %v2535_v38  ;;  %v2540_v58 = vld [vmem:[#allocation3 + $0xd2] sm:$0xff] }
 0x21a   : > { %v5811_v13 = vpack.c.bf16 %v5803_v43, %v2239_v57  ;;  %v5837_v30 = vld [vmem:[#allocation3 + $0x111] sm:$0xff]  ;;  %v2537_v23 = vld [vmem:[#allocation3 + $0xa2] sm:$0xff]  ;;  %v2715_v48 = vpack.c.bf16 %v2239_v57, %v5790_v1 }
 0x21b   : > { %4372 = vmatmul.mubr.msk.bf16.gmra.mxu1 %vm2160_vm5, %v5808_v27  ;;  %v5843_v14 = vld [vmem:[#allocation3 + $0x110] sm:$0xff]  ;;  %v2549_v2 = vpack.c.bf16 %v2538_v3, %v2537_v23  ;;  %v2539_v25 = vld [vmem:[#allocation3 + $0xc2] sm:$0xff] }
 0x21c   : > { %4390 = vmatmul.mubr.msk.bf16.gmra.mxu0 %vm2160_vm5, %v5811_v13  ;;  %v5819_v50 = vld [vmem:[#allocation3 + $0xf1] sm:$0xff]  ;;  %v5901_v54 = vpack.c.bf16 %v2540_v58, %v2539_v25  ;;  %v2541_v18 = vld [vmem:[#allocation3 + $0xe2] sm:$0xff] }
 0x21d   : > { %v5823_v42 = vld [vmem:[#allocation3 + $0xf0] sm:$0xff]  ;;  %v5827_v39 = vpack.c.bf16 %v5819_v50, %v5815_v16 }
 0x21e   : > { %v5831_v21 = vpack.c.bf16 %v5823_v42, %v5821_v41  ;;  %v2542_v15 = vld [vmem:[#allocation3 + $0xf2] sm:$0xff] }
 0x21f   : > { %4375 = vmatprep.mubr.msk.bf16.mxu1 %vm2160_vm5, %v5827_v39  ;;  %v5905_v9 = vpack.c.bf16 %v2542_v15, %v2541_v18 }
 0x220   : > { %4393 = vmatprep.mubr.msk.bf16.mxu0 %vm2160_vm5, %v5831_v21  ;;  %v5841_v22 = vld [vmem:[#allocation3 + $0x101] sm:$0xff] }
 0x221   : > { %v2243_v28 = vld [vmem:[#allocation3 + $0x100] sm:$0xff]  ;;  %v5847_v35 = vpack.c.bf16 %v5837_v30, %v5841_v22 }
 0x222   : > { %v5850_v17 = vpack.c.bf16 %v5843_v14, %v2243_v28  ;;  %v2717_v1 = vpack.c.bf16 %v2243_v28, %v5823_v42  ;;  %v2543_v57 = vld [vmem:[#allocation3 + $0x102] sm:$0xff]  ;;  %v2877_v42 = vpack.c.bf16 %v5699_v0, %v5681_v4  ;;  %v3043_v28 = vpack.c.bf16 %v2531_v26, %v5839_v62 }
 0x223   : > { %4376 = vmatmul.mubr.msk.bf16.gmra.mxu1 %vm2160_vm5, %v5847_v35  ;;  %v2879_v4 = vpack.c.bf16 %v5764_v56, %v5738_v7  ;;  %v3045_v0 = vpack.c.bf16 %v2535_v38, %v5863_v34  ;;  %v3411_v62 = vsel %vm2304_vm4, %v4014_v8, 0  ;;  %v4023_v26 = vld [vmem:[%s5289_s11 + $0x20] sm:$0xf]  ;;  %v2881_v56 = vpack.c.bf16 %v5801_v51, %v5788_v6 }
 0x224   : > { %4394 = vmatmul.mubr.msk.bf16.gmra.mxu0 %vm2160_vm5, %v5850_v17  ;;  %4399 = vmatprep.mubr.msk.bf16.mxu1 %vm2160_vm5, %v2545_v49  ;;  %v5914_v49 = vld [vmem:[#allocation3 + $0x120] sm:$0xff]  ;;  %v3047_v34 = vpack.c.bf16 %v2539_v25, %v2538_v3 }
 0x225   : > { %4417 = vmatprep.mubr.msk.bf16.mxu0 %vm2160_vm5, %v2711_v19  ;;  %v2544_v19 = vld [vmem:[#allocation3 + $0x112] sm:$0xff]  ;;  %v2718_v41 = vpack.c.bf16 %v5914_v49, %v5843_v14  ;;  %v3044_v14 = vpack.c.bf16 %v2533_v46, %v5861_v24  ;;  %v2882_v46 = vpack.c.bf16 %v5815_v16, %v5799_v61  ;;  %v2876_v6 = vld [vmem:[#allocation3 + $0x121] sm:$0xff]  ;;  %v3577_v61 = vsel %vm2304_vm4, %v4023_v26, 0 }
 0x226   : > { %v5916_v43 = vpack.c.bf16 %v2544_v19, %v2543_v57  ;;  %v3042_v51 = vld [vmem:[#allocation3 + $0x122] sm:$0xff]  ;;  %v3201_v16 = vld [vmem:[#allocation3 + $0x90] sm:$0xff] }
 0x22b   : > { %4400 = vmatmul.mubr.msk.bf16.vlgmr.msra.gmra.mxu1 %vm2160_vm5, %v5866_v40 }
 0x22c   : > { %4418 = vmatmul.mubr.msk.bf16.vlgmr.msra.gmra.mxu0 %vm2160_vm5, %v2712_v63  ;;  %4434 = vmatpush3.bf16.msra.mxu1 %v2912_v31  ;;  %v2878_v31 = vpack.c.bf16 %v5736_v5, %v5701_v12  ;;  %v3245_v63 = vsel %vm2304_vm4, %v4005_v59, 0  ;;  %v2868_v12 = vld [vmem:[#allocation3 + $0x81] sm:$0xff] }
 0x22d   : > { %4403 = vmatprep.mubr.msk.bf16.mxu1 %vm2160_vm5, %v5875_v45  ;;  %4421 = vmatprep.mubr.msk.bf16.mxu0 %vm2160_vm5, %v2713_v29  ;;  %v3034_v5 = vld [vmem:[#allocation3 + $0x82] sm:$0xff]  ;;  %v2880_v24 = vpack.c.bf16 %v2868_v12, %v5766_v36  ;;  %v3048_v29 = vpack.c.bf16 %v2541_v18, %v2540_v58  ;;  %v2883_v36 = vpack.c.bf16 %v5841_v22, %v5819_v50 }
 0x22e   : > { %4452 = vmatpush3.bf16.msra.mxu0 %v3078_v55  ;;  %4538 = vmatprep.subr.msk.bf16.mxu1 %vm2304_vm4, %v4005_v59  ;;  %v3046_v7 = vpack.c.bf16 %v3034_v5, %v2536_v32  ;;  %v3049_v55 = vpack.c.bf16 %v2543_v57, %v2542_v15  ;;  %v2884_v59 = vpack.c.bf16 %v2876_v6, %v5837_v30 }
 0x22f   : > { %4539 = vmatprep.subr.msk.bf16.mxu0 %vm2304_vm4, %v4014_v8  ;;  %v3050_v8 = vpack.c.bf16 %v3042_v51, %v2544_v19  ;;  %v3213_v50 = vpack.c.bf16 %v3201_v16, %v5888_v33 }
 0x233   : > { %4404 = vmatmul.mubr.msk.bf16.gmra.mxu1 %vm2160_vm5, %v5891_v52 }
 0x234   : > { %4422 = vmatmul.mubr.msk.bf16.gmra.mxu0 %vm2160_vm5, %v2714_v20  ;;  %4407 = vmatprep.mubr.msk.bf16.mxu1 %vm2160_vm5, %v2549_v2 }
 0x235   : > { %4425 = vmatprep.mubr.msk.bf16.mxu0 %vm2160_vm5, %v2715_v48 }
 0x23b   : > { %4408 = vmatmul.mubr.msk.bf16.gmra.mxu1 %vm2160_vm5, %v5901_v54 }
 0x23c   : > { %4426 = vmatmul.mubr.msk.bf16.gmra.mxu0 %vm2160_vm5, %v2716_v53  ;;  %4411 = vmatprep.mubr.msk.bf16.mxu1 %vm2160_vm5, %v5905_v9 }
 0x23d   : > { %4429 = vmatprep.mubr.msk.bf16.mxu0 %vm2160_vm5, %v2717_v1 }
 0x243   : > { %4412 = vmatmul.mubr.msk.bf16.gmra.mxu1 %vm2160_vm5, %v5916_v43 }
 0x244   : > { %4430 = vmatmul.mubr.msk.bf16.gmra.mxu0 %vm2160_vm5, %v2718_v41  ;;  %4435 = vmatprep.mubr.msk.bf16.mxu1 %vm2160_vm5, %v2877_v42 }
 0x245   : > { %4453 = vmatprep.mubr.msk.bf16.mxu0 %vm2160_vm5, %v3043_v28 }
 0x24b   : > { %4436 = vmatmul.mubr.msk.bf16.vlgmr.msra.gmra.mxu1 %vm2160_vm5, %v2878_v31 }
 0x24c   : > { %4454 = vmatmul.mubr.msk.bf16.vlgmr.msra.gmra.mxu0 %vm2160_vm5, %v3044_v14  ;;  %4470 = vmatpush3.bf16.msra.mxu1 %v3245_v63 }
 0x24d   : > { %4439 = vmatprep.mubr.msk.bf16.mxu1 %vm2160_vm5, %v2879_v4  ;;  %4457 = vmatprep.mubr.msk.bf16.mxu0 %vm2160_vm5, %v3045_v0 }
 0x24e   : > { %4488 = vmatpush3.bf16.msra.mxu0 %v3411_v62  ;;  %4540 = vmatprep.subr.msk.bf16.mxu1 %vm2304_vm4, %v4023_v26 }
 0x253   : > { %4440 = vmatmul.mubr.msk.bf16.gmra.mxu1 %vm2160_vm5, %v2880_v24 }
 0x254   : > { %4458 = vmatmul.mubr.msk.bf16.gmra.mxu0 %vm2160_vm5, %v3046_v7  ;;  %4443 = vmatprep.mubr.msk.bf16.mxu1 %vm2160_vm5, %v2881_v56 }
 0x255   : > { %4461 = vmatprep.mubr.msk.bf16.mxu0 %vm2160_vm5, %v3047_v34 }
 0x25b   : > { %4444 = vmatmul.mubr.msk.bf16.gmra.mxu1 %vm2160_vm5, %v2882_v46 }
 0x25c   : > { %4462 = vmatmul.mubr.msk.bf16.gmra.mxu0 %vm2160_vm5, %v3048_v29  ;;  %4447 = vmatprep.mubr.msk.bf16.mxu1 %vm2160_vm5, %v2883_v36 }
 0x25d   : > { %4465 = vmatprep.mubr.msk.bf16.mxu0 %vm2160_vm5, %v3049_v55 }
 0x263   : > { %4448 = vmatmul.mubr.msk.bf16.gmra.mxu1 %vm2160_vm5, %v2884_v59 }
 0x264   : > { %4466 = vmatmul.mubr.msk.bf16.gmra.mxu0 %vm2160_vm5, %v3050_v8  ;;  %4471 = vmatprep.mubr.msk.bf16.mxu1 %vm2160_vm5, %v5718_v10  ;;  %v3367_v10 = vld [vmem:[#allocation3 + $0x91] sm:$0xff] }
 0x265   : > { %4489 = vmatprep.mubr.msk.bf16.mxu0 %vm2160_vm5, %v5711_v11  ;;  %v3379_v11 = vpack.c.bf16 %v3367_v10, %v2868_v12 }
 0x26b   : > { %4472 = vmatmul.mubr.msk.bf16.vlgmr.msra.gmra.mxu1 %vm2160_vm5, %v5754_v60  ;;  %v3375_v60 = vld [vmem:[#allocation3 + $0x131] sm:$0xff] }
 0x26c   : > { %4490 = vmatmul.mubr.msk.bf16.vlgmr.msra.gmra.mxu0 %vm2160_vm5, %v5746_v37  ;;  %4506 = vmatpush3.bf16.msra.mxu1 %v3577_v61  ;;  %v3209_v37 = vld [vmem:[#allocation3 + $0x130] sm:$0xff] }
 0x26d   : > { %4475 = vmatprep.mubr.msk.bf16.mxu1 %vm2160_vm5, %v5780_v47  ;;  %4493 = vmatprep.mubr.msk.bf16.mxu0 %vm2160_vm5, %v5774_v44  ;;  %v3217_v44 = vpack.c.bf16 %v3209_v37, %v5914_v49  ;;  %v3383_v47 = vpack.c.bf16 %v3375_v60, %v2876_v6 }
 0x273   : > { %4476 = vmatmul.mubr.msk.bf16.gmra.mxu1 %vm2160_vm5, %v3213_v50 }
 0x274   : > { %4494 = vmatmul.mubr.msk.bf16.gmra.mxu0 %vm2160_vm5, %v3379_v11  ;;  %4479 = vmatprep.mubr.msk.bf16.mxu1 %vm2160_vm5, %v5811_v13 }
 0x275   : > { %4497 = vmatprep.mubr.msk.bf16.mxu0 %vm2160_vm5, %v5808_v27  ;;  %v3533_v27 = vld [vmem:[#allocation3 + $0x92] sm:$0xff] }
 0x276   : > { %v3545_v13 = vpack.c.bf16 %v3533_v27, %v3034_v5 }
 0x27b   : > { %4480 = vmatmul.mubr.msk.bf16.gmra.mxu1 %vm2160_vm5, %v5831_v21 }
 0x27c   : > { %4498 = vmatmul.mubr.msk.bf16.gmra.mxu0 %vm2160_vm5, %v5827_v39  ;;  %4483 = vmatprep.mubr.msk.bf16.mxu1 %vm2160_vm5, %v5850_v17  ;;  %v3541_v39 = vld [vmem:[#allocation3 + $0x132] sm:$0xff] }
 0x27d   : > { %4501 = vmatprep.mubr.msk.bf16.mxu0 %vm2160_vm5, %v5847_v35  ;;  %v3549_v21 = vpack.c.bf16 %v3541_v39, %v3042_v51 }
 0x283   : > { %4484 = vmatmul.mubr.msk.bf16.gmra.mxu1 %vm2160_vm5, %v3217_v44 }
 0x284   : > { %4502 = vmatmul.mubr.msk.bf16.gmra.mxu0 %vm2160_vm5, %v3383_v47  ;;  %4507 = vmatprep.mubr.msk.bf16.mxu1 %vm2160_vm5, %v5866_v40 }
 0x28b   : > { %4508 = vmatmul.mubr.msk.bf16.vlgmr.msra.gmra.mxu1 %vm2160_vm5, %v5875_v45 }
 0x28c   : > { %4511 = vmatprep.mubr.msk.bf16.mxu1 %vm2160_vm5, %v5891_v52 }
 0x293   : > { %4512 = vmatmul.mubr.msk.bf16.gmra.mxu1 %vm2160_vm5, %v3545_v13 }
 0x294   : > { %4515 = vmatprep.mubr.msk.bf16.mxu1 %vm2160_vm5, %v5901_v54 }
 0x29b   : > { %4516 = vmatmul.mubr.msk.bf16.gmra.mxu1 %vm2160_vm5, %v5905_v9 }
 0x29c   : > { %4519 = vmatprep.mubr.msk.bf16.mxu1 %vm2160_vm5, %v5916_v43 }
 0x2a3   : > { %4520 = vmatmul.mubr.msk.bf16.gmra.mxu1 %vm2160_vm5, %v3549_v21 }
 0x2cb   : > { %v4365_v30 = vpop.f32.mrf.mxu1 }
 0x2cc   : > { %v4383_v22 = vpop.f32.mrf.mxu0 }
 0x2cd   : > { %v2475_v35 = vadd.f32 %v4383_v22, %v4365_v30  ;;  %v2342_v17 = vpop.f32.mrf.mxu1 }
 0x2ce   : > { %v2466_v40 = vpop.f32.mrf.mxu0 }
 0x2cf   : > { %v2467_v45 = vadd.f32 %v2466_v40, %v2342_v17  ;;  %v4366_v38 = vpop.f32.mrf.mxu1 }
 0x2d0   : > { %v4384_v33 = vpop.f32.mrf.mxu0 }
 0x2d1   : > { %v2478_v23 = vadd.f32 %v4384_v33, %v4366_v38  ;;  %v2345_v3 = vpop.f32.mrf.mxu1 }
 0x2d2   : > { %v2469_v32 = vpop.f32.mrf.mxu0 }
 0x2d3   : > { %v2470_v52 = vadd.f32 %v2469_v32, %v2345_v3  ;;  %v4369_v20 = vpop.f32.mrf.mxu1 }
 0x2d4   : > { %v4387_v2 = vpop.f32.mrf.mxu0 }
 0x2d5   : > { %v2491_v48 = vadd.f32 %v4387_v2, %v4369_v20  ;;  %v2358_v25 = vpop.f32.mrf.mxu1 }
 0x2d6   : > { %v2482_v15 = vpop.f32.mrf.mxu0 }
 0x2d7   : > { %v2483_v58 = vadd.f32 %v2482_v15, %v2358_v25  ;;  %v4370_v54 = vpop.f32.mrf.mxu1 }
 0x2d8   : > { %v4388_v18 = vpop.f32.mrf.mxu0 }
 0x2d9   : > { %v2494_v53 = vadd.f32 %v4388_v18, %v4370_v54  ;;  %v2361_v9 = vpop.f32.mrf.mxu1 }
 0x2da   : > { %v2485_v1 = vpop.f32.mrf.mxu0 }
 0x2db   : > { %v2486_v57 = vadd.f32 %v2485_v1, %v2361_v9  ;;  %v4373_v49 = vpop.f32.mrf.mxu1 }
 0x2dc   : > { %v4391_v19 = vpop.f32.mrf.mxu0 }
 0x2dd   : > { %v2507_v43 = vadd.f32 %v4391_v19, %v4373_v49  ;;  %v2374_v41 = vpop.f32.mrf.mxu1 }
 0x2de   : > { %v2498_v42 = vpop.f32.mrf.mxu0 }
 0x2df   : > { %v2499_v28 = vadd.f32 %v2498_v42, %v2374_v41  ;;  %v4374_v31 = vpop.f32.mrf.mxu1 }
 0x2e0   : > { %v4392_v63 = vpop.f32.mrf.mxu0 }
 0x2e1   : > { %v2510_v14 = vadd.f32 %v4392_v63, %v4374_v31  ;;  %v2377_v4 = vpop.f32.mrf.mxu1 }
 0x2e2   : > { %v2501_v0 = vpop.f32.mrf.mxu0 }
 0x2e3   : > { %v2502_v62 = vadd.f32 %v2501_v0, %v2377_v4  ;;  %v4377_v26 = vpop.f32.mrf.mxu1 }
 0x2e4   : > { %v4395_v12 = vpop.f32.mrf.mxu0 }
 0x2e5   : > { %v2523_v5 = vadd.f32 %v4395_v12, %v4377_v26  ;;  %v2390_v24 = vpop.f32.mrf.mxu1 }
 0x2e6   : > { %v2514_v7 = vpop.f32.mrf.mxu0 }
 0x2e7   : > { %v2515_v56 = vadd.f32 %v2514_v7, %v2390_v24  ;;  %v4378_v34 = vpop.f32.mrf.mxu1 }
 0x2e8   : > { %v4396_v46 = vpop.f32.mrf.mxu0 }
 0x2e9   : > { %v2526_v29 = vadd.f32 %v4396_v46, %v4378_v34  ;;  %v2393_v36 = vpop.f32.mrf.mxu1 }
 0x2ea   : > { %v2517_v55 = vpop.f32.mrf.mxu0 }
 0x2eb   : > { %v2518_v6 = vadd.f32 %v2517_v55, %v2393_v36  ;;  %v4401_v51 = vpop.f32.mrf.mxu1 }
 0x2ec   : > { %v6005_v59 = vadd.f32 %v4401_v51, %v2475_v35  ;;  %v6007_v8 = vpop.f32.mrf.mxu0 }
 0x2ed   : > { %v2616_v61 = vpop.f32.mrf.mxu1 }
 0x2ee   : > { %v6009_v16 = vadd.f32 %v2616_v61, %v2467_v45  ;;  %v6011_v10 = vpop.f32.mrf.mxu0 }
 0x2ef   : > { %v4402_v50 = vpop.f32.mrf.mxu1 }
 0x2f0   : > { %v6013_v11 = vadd.f32 %v4402_v50, %v2478_v23  ;;  %v6015_v37 = vpop.f32.mrf.mxu0 }
 0x2f1   : > { %v2619_v60 = vpop.f32.mrf.mxu1 }
 0x2f2   : > { %v6017_v44 = vadd.f32 %v2619_v60, %v2470_v52  ;;  %v6019_v47 = vpop.f32.mrf.mxu0 }
 0x2f3   : > { %v4405_v27 = vpop.f32.mrf.mxu1 }
 0x2f4   : > { %v6021_v13 = vadd.f32 %v4405_v27, %v2491_v48  ;;  %v6023_v39 = vpop.f32.mrf.mxu0 }
 0x2f5   : > { %v2632_v21 = vpop.f32.mrf.mxu1 }
 0x2f6   : > { %v6025_v30 = vadd.f32 %v2632_v21, %v2483_v58  ;;  %v6027_v22 = vpop.f32.mrf.mxu0 }
 0x2f7   : > { %v4406_v35 = vpop.f32.mrf.mxu1 }
 0x2f8   : > { %v6029_v17 = vadd.f32 %v4406_v35, %v2494_v53  ;;  %v6031_v40 = vpop.f32.mrf.mxu0 }
 0x2f9   : > { %v2635_v45 = vpop.f32.mrf.mxu1 }
 0x2fa   : > { %v6033_v38 = vadd.f32 %v2635_v45, %v2486_v57  ;;  %v6035_v33 = vpop.f32.mrf.mxu0 }
 0x2fb   : > { %v4409_v23 = vpop.f32.mrf.mxu1 }
 0x2fc   : > { %v6037_v3 = vadd.f32 %v4409_v23, %v2507_v43  ;;  %v6039_v32 = vpop.f32.mrf.mxu0 }
 0x2fd   : > { %v2648_v52 = vpop.f32.mrf.mxu1 }
 0x2fe   : > { %v6041_v20 = vadd.f32 %v2648_v52, %v2499_v28  ;;  %v6043_v2 = vpop.f32.mrf.mxu0 }
 0x2ff   : > { %v4410_v48 = vpop.f32.mrf.mxu1 }
 0x300   : > { %v6045_v25 = vadd.f32 %v4410_v48, %v2510_v14  ;;  %v6047_v15 = vpop.f32.mrf.mxu0 }
 0x301   : > { %v2651_v58 = vpop.f32.mrf.mxu1 }
 0x302   : > { %v6049_v54 = vadd.f32 %v2651_v58, %v2502_v62  ;;  %v6051_v18 = vpop.f32.mrf.mxu0 }
 0x303   : > { %v4413_v53 = vpop.f32.mrf.mxu1 }
 0x304   : > { %v6053_v9 = vadd.f32 %v4413_v53, %v2523_v5  ;;  %v6055_v1 = vpop.f32.mrf.mxu0 }
 0x305   : > { %6365 = vst [vmem:[#allocation16_spill] sm:$0xff] %v6055_v1  ;;  %v2664_v57 = vpop.f32.mrf.mxu1  ;;  %v2845_v1 = vadd.f32 %v6011_v10, %v6009_v16  ;;  %v2851_v16 = vadd.f32 %v6023_v39, %v6021_v13  ;;  %v2852_v13 = vadd.f32 %v6031_v40, %v6029_v17 }
 0x306   : > { %6364 = vst [vmem:[#allocation14_spill] sm:$0xff] %v6053_v9  ;;  %v6057_v49 = vadd.f32 %v2664_v57, %v2515_v56  ;;  %v6059_v19 = vpop.f32.mrf.mxu0 }
 0x307   : > { %6367 = vst [vmem:[#allocation33_spill] sm:$0xff] %v6059_v19  ;;  %v4414_v43 = vpop.f32.mrf.mxu1 }
 0x308   : > { %6366 = vst [vmem:[#allocation32_spill] sm:$0xff] %v6057_v49  ;;  %v6061_v41 = vadd.f32 %v4414_v43, %v2526_v29  ;;  %v6063_v42 = vpop.f32.mrf.mxu0 }
 0x309   : > { %6369 = vst [vmem:[#allocation6_spill] sm:$0xff] %v6063_v42  ;;  %v2667_v28 = vpop.f32.mrf.mxu1 }
 0x30a   : > { %6368 = vst [vmem:[#allocation7_spill] sm:$0xff] %v6061_v41  ;;  %v6065_v31 = vadd.f32 %v2667_v28, %v2518_v6  ;;  %v6067_v63 = vpop.f32.mrf.mxu0 }
 0x30b   : > { %6371 = vst [vmem:[#allocation18_spill] sm:$0xff] %v6067_v63  ;;  %v4437_v14 = vpop.f32.mrf.mxu1 }
 0x30c   : > { %6370 = vst [vmem:[#allocation15_spill] sm:$0xff] %v6065_v31  ;;  %v4455_v4 = vpop.f32.mrf.mxu0 }
 0x30d   : > { %v2948_v0 = vpop.f32.mrf.mxu1 }
 0x30e   : > { %v3114_v62 = vpop.f32.mrf.mxu0 }
 0x30f   : > { %v4438_v26 = vpop.f32.mrf.mxu1 }
 0x310   : > { %v6069_v12 = vpop.f32.mrf.mxu0 }
 0x311   : > { %v2951_v5 = vpop.f32.mrf.mxu1 }
 0x312   : > { %v6071_v24 = vpop.f32.mrf.mxu0 }
 0x313   : > { %v4441_v7 = vpop.f32.mrf.mxu1 }
 0x314   : > { %v6073_v56 = vpop.f32.mrf.mxu0 }
 0x315   : > { %v6075_v34 = vpop.f32.mrf.mxu1 }
 0x316   : > { %v6077_v46 = vpop.f32.mrf.mxu0 }
 0x317   : > { %v6079_v29 = vpop.f32.mrf.mxu1 }
 0x318   : > { %v6081_v36 = vpop.f32.mrf.mxu0 }
 0x319   : > { %v6083_v55 = vpop.f32.mrf.mxu1 }
 0x31a   : > { %v6085_v6 = vpop.f32.mrf.mxu0 }
 0x31b   : > { %v6087_v51 = vpop.f32.mrf.mxu1 }
 0x31c   : > { %v6089_v61 = vpop.f32.mrf.mxu0 }
 0x31d   : > { %6372 = vst [vmem:[#allocation36_spill] sm:$0xff] %v6089_v61  ;;  %v6091_v50 = vpop.f32.mrf.mxu1  ;;  %v3011_v61 = vadd.f32 %v2948_v0, %v2845_v1 }
 0x31e   : > { %v6093_v60 = vpop.f32.mrf.mxu0 }
 0x31f   : > { %6373 = vst [vmem:[#allocation34_spill] sm:$0xff] %v6093_v60  ;;  %v6095_v27 = vpop.f32.mrf.mxu1 }
 0x320   : > { %6374 = vst [vmem:[#allocation9_spill] sm:$0xff] %v6095_v27  ;;  %v6097_v21 = vpop.f32.mrf.mxu0 }
 0x321   : > { %6375 = vst [vmem:[#allocation8_spill] sm:$0xff] %v6097_v21  ;;  %v6099_v35 = vpop.f32.mrf.mxu1 }
 0x322   : > { %6376 = vst [vmem:[#allocation17_spill] sm:$0xff] %v6099_v35  ;;  %v6101_v45 = vpop.f32.mrf.mxu0 }
 0x323   : > { %6377 = vst [vmem:[#allocation20_spill] sm:$0xff] %v6101_v45  ;;  %v6103_v23 = vpop.f32.mrf.mxu1 }
 0x324   : > { %6378 = vst [vmem:[#allocation35_spill] sm:$0xff] %v6103_v23  ;;  %v6105_v52 = vpop.f32.mrf.mxu0 }
 0x325   : > { %6379 = vst [vmem:[#allocation12_spill] sm:$0xff] %v6105_v52  ;;  %v6107_v48 = vpop.f32.mrf.mxu1 }
 0x326   : > { %6380 = vst [vmem:[#allocation19_spill] sm:$0xff] %v6107_v48  ;;  %v6109_v58 = vpop.f32.mrf.mxu0 }
 0x327   : > { %6381 = vst [vmem:[#allocation22_spill] sm:$0xff] %v6109_v58  ;;  %v6111_v53 = vpop.f32.mrf.mxu1 }
 0x328   : > { %6382 = vst [vmem:[#allocation37_spill] sm:$0xff] %v6111_v53  ;;  %v6113_v57 = vpop.f32.mrf.mxu0 }
 0x329   : > { %6383 = vst [vmem:[#allocation11_spill] sm:$0xff] %v6113_v57  ;;  %v6115_v43 = vpop.f32.mrf.mxu1 }
 0x32a   : > { %6384 = vst [vmem:[#allocation10_spill] sm:$0xff] %v6115_v43  ;;  %v6117_v28 = vpop.f32.mrf.mxu0 }
 0x32b   : > { %6385 = vst [vmem:[#allocation21_spill] sm:$0xff] %v6117_v28  ;;  %v4473_v63 = vpop.f32.mrf.mxu1  ;;  %v2847_v28 = vadd.f32 %v6007_v8, %v6005_v59  ;;  %v2846_v59 = vadd.f32 %v6019_v47, %v6017_v44 }
 0x32c   : > { %v4491_v31 = vpop.f32.mrf.mxu0 }
 0x32d   : > { %v3281_v42 = vpop.f32.mrf.mxu1  ;;  %v3013_v9 = vadd.f32 %v4437_v14, %v2847_v28  ;;  %v3177_v14 = vadd.f32 %v3114_v62, %v3011_v61  ;;  %v3012_v28 = vadd.f32 %v2951_v5, %v2846_v59  ;;  %v3018_v62 = vadd.f32 %v6079_v29, %v2852_v13  ;;  %v6174_v5 = vld [vmem:[%s287_s17] ss:$0 sm:$0xff] }
 0x32e   : > { %v3447_v45 = vpop.f32.mrf.mxu0  ;;  %v2853_v61 = vadd.f32 %v6043_v2, %v6041_v20  ;;  %v2856_v20 = vadd.f32 %v6047_v15, %v6045_v25  ;;  %v6391_v25 = vld [vmem:[#allocation36_spill] sm:$0xff] }
 0x32f   : > { %v4474_v41 = vpop.f32.mrf.mxu1  ;;  %v3179_v8 = vadd.f32 %v4455_v4, %v3013_v9  ;;  %v3344_v47 = vadd.f32 %v3281_v42, %v3177_v14  ;;  %v2850_v4 = vadd.f32 %v6035_v33, %v6033_v38  ;;  %v6395_v13 = vld [vmem:[#allocation16_spill] sm:$0xff] }
 0x330   : > { %v4492_v21 = vpop.f32.mrf.mxu0 }
 0x331   : > { %v3284_v23 = vpop.f32.mrf.mxu1  ;;  %v3510_v17 = vadd.f32 %v3447_v45, %v3344_v47  ;;  %v3016_v38 = vadd.f32 %v6083_v55, %v2850_v4  ;;  %v6394_v47 = vld [vmem:[#allocation14_spill] sm:$0xff] }
 0x332   : > { %v3450_v48 = vpop.f32.mrf.mxu0 }
 0x333   : > { %v4477_v52 = vpop.f32.mrf.mxu1  ;;  %v3182_v2 = vadd.f32 %v6085_v6, %v3016_v38  ;;  %v6392_v6 = vld [vmem:[#allocation9_spill] sm:$0xff] }
 0x334   : > { %v6123_v53 = vpop.f32.mrf.mxu0 }
 0x335   : > { %v3297_v19 = vpop.f32.mrf.mxu1 }
 0x336   : > { %v6131_v35 = vpop.f32.mrf.mxu0 }
 0x337   : > { %v6119_v49 = vpop.f32.mrf.mxu1 }
 0x339   : > { %v6121_v58 = vpop.f32.mrf.mxu1 }
 0x33a   : > { %6386 = vst [vmem:[#allocation24_spill] sm:$0xff] %v6121_v58  ;;  %v2848_v58 = vadd.f32 %v6015_v37, %v6013_v11  ;;  %v2849_v11 = vadd.f32 %v6027_v22, %v6025_v30  ;;  %v3017_v37 = vadd.f32 %v4441_v7, %v2851_v16  ;;  %v3178_v30 = vadd.f32 %v6071_v24, %v3012_v28 }
 0x33b   : > { %v6125_v57 = vpop.f32.mrf.mxu1  ;;  %v3022_v16 = vadd.f32 %v6392_v6, %v2856_v20  ;;  %v6407_v20 = vld [vmem:[#allocation19_spill] sm:$0xff] }
 0x33c   : > { %6387 = vst [vmem:[#allocation38_spill] sm:$0xff] %v6125_v57  ;;  %v6141_v57 = vpop.f32.mrf.mxu0  ;;  %v3015_v39 = vadd.f32 %v6075_v34, %v2849_v11  ;;  %v3183_v42 = vadd.f32 %v6073_v56, %v3017_v37  ;;  %v3345_v40 = vadd.f32 %v3284_v23, %v3178_v30  ;;  %v6397_v30 = vld [vmem:[#allocation17_spill] sm:$0xff] }
 0x33d   : > { %v6127_v43 = vpop.f32.mrf.mxu1 }
 0x33e   : > { %6388 = vst [vmem:[#allocation13_spill] sm:$0xff] %v6127_v43  ;;  %v6153_v1 = vpop.f32.mrf.mxu0  ;;  %v3350_v33 = vadd.f32 %v4477_v52, %v3183_v42 }
 0x33f   : > { %v6133_v60 = vpop.f32.mrf.mxu1 }
 0x340   : > { %6389 = vst [vmem:[#allocation23_spill] sm:$0xff] %v6133_v60  ;;  %v3014_v60 = vadd.f32 %v4438_v26, %v2848_v58  ;;  %v6172_v26 = vpop.f32.mrf.mxu0 }
 0x341   : > { %v6137_v27 = vpop.f32.mrf.mxu1  ;;  %v6393_v28 = vld [vmem:[#allocation24_spill] sm:$0xff] }
 0x342   : > { %6390 = vst [vmem:[#allocation26_spill] sm:$0xff] %v6137_v27  ;;  %v3346_v27 = vadd.f32 %v4473_v63, %v3179_v8  ;;  %v3180_v44 = vadd.f32 %v6069_v12, %v3014_v60  ;;  %v3184_v60 = vadd.f32 %v6081_v36, %v3018_v62  ;;  %v3479_v23 = vpop.f32.mrf.mxu0  ;;  %v3516_v36 = vadd.f32 %v6123_v53, %v3350_v33  ;;  %v6402_v33 = vld [vmem:[#allocation35_spill] sm:$0xff] }
 0x343   : > { %v6143_v43 = vpop.f32.mrf.mxu1  ;;  %v2854_v8 = vadd.f32 %v6051_v18, %v6049_v54  ;;  %v2859_v54 = vadd.f32 %v6395_v13, %v6394_v47  ;;  %v6396_v18 = vld [vmem:[#allocation34_spill] sm:$0xff] }
 0x344   : > { %v3512_v22 = vadd.f32 %v4491_v31, %v3346_v27  ;;  %v3347_v63 = vadd.f32 %v4474_v41, %v3180_v44  ;;  %v2855_v31 = vadd.f32 %v6039_v32, %v6037_v3  ;;  %v3181_v41 = vadd.f32 %v6077_v46, %v3015_v39  ;;  %v4500_v53 = vpop.f32.mrf.mxu0  ;;  %v6414_v13 = vld [vmem:[#allocation22_spill] sm:$0xff] }
 0x345   : > { %v6149_v10 = vpop.f32.mrf.mxu1  ;;  %v3511_v32 = vadd.f32 %v3450_v48, %v3345_v40  ;;  %v3351_v52 = vadd.f32 %v6119_v49, %v3184_v60  ;;  %v3349_v49 = vadd.f32 %v6393_v28, %v3182_v2  ;;  %v6399_v40 = vld [vmem:[#allocation32_spill] sm:$0xff] }
 0x346   : > { %v3513_v56 = vadd.f32 %v4492_v21, %v3347_v63  ;;  %v3021_v27 = vadd.f32 %v6087_v51, %v2855_v31  ;;  %v3348_v45 = vadd.f32 %v3297_v19, %v3181_v41  ;;  %v3019_v19 = vadd.f32 %v6091_v50, %v2853_v61  ;;  %v6398_v63 = vld [vmem:[#allocation38_spill] sm:$0xff]  ;;  %v6401_v41 = vld [vmem:[#allocation8_spill] sm:$0xff] }
 0x347   : > { %v6155_v0 = vpop.f32.mrf.mxu1  ;;  %v3517_v42 = vadd.f32 %v6141_v57, %v3351_v52  ;;  %v3188_v38 = vadd.f32 %v6401_v41, %v3022_v16  ;;  %v3515_v57 = vadd.f32 %v6153_v1, %v3349_v49  ;;  %v6412_v16 = vld [vmem:[#allocation37_spill] sm:$0xff] }
 0x348   : > { %v3187_v15 = vadd.f32 %v6391_v25, %v3021_v27  ;;  %v3514_v50 = vadd.f32 %v6131_v35, %v3348_v45  ;;  %v3185_v39 = vadd.f32 %v6396_v18, %v3019_v19  ;;  %v6415_v18 = vld [vmem:[#allocation10_spill] sm:$0xff]  ;;  %v6417_v41 = vld [vmem:[#allocation21_spill] sm:$0xff] }
 0x349   : > { %v6165_v9 = vpop.f32.mrf.mxu1  ;;  %v6413_v49 = vld [vmem:[#allocation26_spill] sm:$0xff] }
 0x34a   : > { %v3354_v35 = vadd.f32 %v6398_v63, %v3187_v15  ;;  %v6411_v15 = vld [vmem:[#allocation12_spill] sm:$0xff] }
 0x34b   : > { %v4509_v12 = vpop.f32.mrf.mxu1 }
 0x34c   : > { %v3678_v7 = vadd.f32 %v4509_v12, %v3512_v22  ;;  %v3020_v22 = vadd.f32 %v6397_v30, %v2854_v8  ;;  %v3520_v19 = vadd.f32 %v6172_v26, %v3354_v35  ;;  %v6410_v8 = vld [vmem:[#allocation18_spill] sm:$0xff] }
 0x34d   : > { %v3613_v24 = vpop.f32.mrf.mxu1 }
 0x34e   : > { %v3701_v34 = vadd.f32 %v6174_v5, %v3678_v7  ;;  %v3676_v29 = vadd.f32 %v3613_v24, %v3510_v17  ;;  %v6400_v7 = vld [vmem:[#allocation33_spill] sm:$0xff]  ;;  %v3025_v24 = vadd.f32 %v6402_v33, %v2859_v54 }
 0x34f   : > { %v4510_v3 = vpop.f32.mrf.mxu1  ;;  %v2857_v31 = vadd.f32 %v6400_v7, %v6399_v40 }
 0x350   : > { %v3717_v46 = vmax.f32 %v3701_v34, 0.0  ;;  %v3699_v55 = vadd.f32 %v6174_v5, %v3676_v29  ;;  %v3679_v21 = vadd.f32 %v4510_v3, %v3513_v56  ;;  %v6403_v56 = vld [vmem:[#allocation13_spill] sm:$0xff]  ;;  %v3482_v29 = vpop.f32.mrf.mxu0  ;;  %v6404_v3 = vld [vmem:[#allocation7_spill] sm:$0xff]  ;;  %v3191_v6 = vadd.f32 %v6411_v15, %v3025_v24 }
 0x351   : > { %v3616_v51 = vpop.f32.mrf.mxu1  ;;  %v3352_v34 = vadd.f32 %v6403_v56, %v3185_v39  ;;  %v3023_v2 = vadd.f32 %v6407_v20, %v2857_v31 }
 0x352   : > { %3733 = vst.msk [vmem:[%s6189_s22 + $0x10] sm:$0xff] %vm2160_vm5, %v3717_v46  ;;  %v3715_v48 = vmax.f32 %v3699_v55, 0.0  ;;  %v3702_v58 = vadd.f32 %v6174_v5, %v3679_v21  ;;  %v3677_v59 = vadd.f32 %v3616_v51, %v3511_v32  ;;  %v6405_v32 = vld [vmem:[#allocation6_spill] sm:$0xff]  ;;  %v6406_v55 = vld [vmem:[#allocation20_spill] sm:$0xff]  ;;  %v6408_v51 = vld [vmem:[#allocation23_spill] sm:$0xff]  ;;  %v4503_v28 = vpop.f32.mrf.mxu0  ;;  %v3358_v30 = vadd.f32 %v6143_v43, %v3191_v6 }
 0x353   : > { %v4513_v14 = vpop.f32.mrf.mxu1  ;;  %v2860_v46 = vadd.f32 %v6405_v32, %v6404_v3  ;;  %v3186_v21 = vadd.f32 %v6406_v55, %v3020_v22  ;;  %v3355_v52 = vadd.f32 %v6408_v51, %v3188_v38  ;;  %v3189_v54 = vadd.f32 %v6414_v13, %v3023_v2 }
 0x354   : > { %3731 = vst.msk [vmem:[%s6189_s22] sm:$0xff] %vm2160_vm5, %v3715_v48  ;;  %v3718_v11 = vmax.f32 %v3702_v58, 0.0  ;;  %v3700_v37 = vadd.f32 %v6174_v5, %v3677_v59  ;;  %v3682_v44 = vadd.f32 %v4513_v14, %v3516_v36  ;;  %v6409_v59 = vld [vmem:[#allocation15_spill] sm:$0xff]  ;;  %v3518_v14 = vadd.f32 %v3479_v23, %v3352_v34 }
 0x355   : > { %v3629_v4 = vpop.f32.mrf.mxu1  ;;  %v2858_v25 = vadd.f32 %v6410_v8, %v6409_v59  ;;  %v3521_v63 = vadd.f32 %v4500_v53, %v3355_v52  ;;  %v3524_v33 = vadd.f32 %v4503_v28, %v3358_v30 }
 0x356   : > { %3734 = vst.msk [vmem:[%s6189_s22 + $0x18] sm:$0xff] %vm2160_vm5, %v3718_v11  ;;  %v3716_v62 = vmax.f32 %v3700_v37, 0.0  ;;  %v3705_v12 = vadd.f32 %v6174_v5, %v3682_v44  ;;  %v3680_v17 = vadd.f32 %v3629_v4, %v3514_v50  ;;  %v3026_v50 = vadd.f32 %v6412_v16, %v2860_v46 }
 0x357   : > { %v4514_v61 = vpop.f32.mrf.mxu1  ;;  %v3353_v11 = vadd.f32 %v6413_v49, %v3186_v21  ;;  %v3024_v39 = vadd.f32 %v6415_v18, %v2858_v25 }
 0x358   : > { %3732 = vst.msk [vmem:[%s6189_s22 + $0x8] sm:$0xff] %vm2160_vm5, %v3716_v62  ;;  %v3721_v60 = vmax.f32 %v3705_v12, 0.0  ;;  %v3703_v27 = vadd.f32 %v6174_v5, %v3680_v17  ;;  %v3683_v45 = vadd.f32 %v4514_v61, %v3517_v42  ;;  %v6416_v42 = vld [vmem:[#allocation11_spill] sm:$0xff]  ;;  %v3356_v12 = vadd.f32 %v6149_v10, %v3189_v54  ;;  %v3495_v17 = vpop.f32.mrf.mxu0 }
 0x359   : > { %v3632_v36 = vpop.f32.mrf.mxu1  ;;  %v3192_v62 = vadd.f32 %v6416_v42, %v3026_v50  ;;  %v3519_v7 = vadd.f32 %v3482_v29, %v3353_v11  ;;  %v3190_v38 = vadd.f32 %v6417_v41, %v3024_v39 }
 0x35a   : > { %3737 = vst.msk [vmem:[%s6189_s22 + $0x30] sm:$0xff] %vm2160_vm5, %v3721_v60  ;;  %v3719_v1 = vmax.f32 %v3703_v27, 0.0  ;;  %v3706_v48 = vadd.f32 %v6174_v5, %v3683_v45  ;;  %v3681_v58 = vadd.f32 %v3632_v36, %v3515_v57  ;;  %v3522_v61 = vadd.f32 %v3495_v17, %v3356_v12  ;;  %v4504_v57 = vpop.f32.mrf.mxu0 }
 0x35b   : > { %v4517_v26 = vpop.f32.mrf.mxu1  ;;  %v3359_v56 = vadd.f32 %v6155_v0, %v3192_v62  ;;  %v3357_v27 = vadd.f32 %v6165_v9, %v3190_v38 }
 0x35c   : > { %3735 = vst.msk [vmem:[%s6189_s22 + $0x20] sm:$0xff] %vm2160_vm5, %v3719_v1  ;;  %v3722_v37 = vmax.f32 %v3706_v48, 0.0  ;;  %v3704_v44 = vadd.f32 %v6174_v5, %v3681_v58  ;;  %v3686_v47 = vadd.f32 %v4517_v26, %v3520_v19  ;;  %v3498_v2 = vpop.f32.mrf.mxu0 }
 0x35d   : > { %v3645_v22 = vpop.f32.mrf.mxu1  ;;  %v3525_v46 = vadd.f32 %v4504_v57, %v3359_v56  ;;  %v3523_v9 = vadd.f32 %v3498_v2, %v3357_v27 }
 0x35e   : > { %3738 = vst.msk [vmem:[%s6189_s22 + $0x38] sm:$0xff] %vm2160_vm5, %v3722_v37  ;;  %v3720_v23 = vmax.f32 %v3704_v44, 0.0  ;;  %v3709_v35 = vadd.f32 %v6174_v5, %v3686_v47  ;;  %v3684_v4 = vadd.f32 %v3645_v22, %v3518_v14 }
 0x35f   : > { %v4518_v40 = vpop.f32.mrf.mxu1 }
 0x360   : > { %3736 = vst.msk [vmem:[%s6189_s22 + $0x28] sm:$0xff] %vm2160_vm5, %v3720_v23  ;;  %v3725_v43 = vmax.f32 %v3709_v35, 0.0  ;;  %v3707_v53 = vadd.f32 %v6174_v5, %v3684_v4  ;;  %v3687_v31 = vadd.f32 %v4518_v40, %v3521_v63 }
 0x361   : > { %v3648_v24 = vpop.f32.mrf.mxu1 }
 0x362   : > { %3741 = vst.msk [vmem:[%s6189_s22 + $0x50] sm:$0xff] %vm2160_vm5, %v3725_v43  ;;  %v3723_v10 = vmax.f32 %v3707_v53, 0.0  ;;  %v3710_v34 = vadd.f32 %v6174_v5, %v3687_v31  ;;  %v3685_v29 = vadd.f32 %v3648_v24, %v3519_v7 }
 0x363   : > { %v4521_v60 = vpop.f32.mrf.mxu1 }
 0x364   : > { %3739 = vst.msk [vmem:[%s6189_s22 + $0x40] sm:$0xff] %vm2160_vm5, %v3723_v10  ;;  %v3726_v45 = vmax.f32 %v3710_v34, 0.0  ;;  %v3708_v3 = vadd.f32 %v6174_v5, %v3685_v29  ;;  %v3690_v32 = vadd.f32 %v4521_v60, %v3524_v33 }
 0x365   : > { %v3661_v0 = vpop.f32.mrf.mxu1 }
 0x366   : > { %3742 = vst.msk [vmem:[%s6189_s22 + $0x58] sm:$0xff] %vm2160_vm5, %v3726_v45  ;;  %v3724_v55 = vmax.f32 %v3708_v3, 0.0  ;;  %v3713_v21 = vadd.f32 %v6174_v5, %v3690_v32  ;;  %v3688_v20 = vadd.f32 %v3661_v0, %v3522_v61 }
 0x367   : > { %v4522_v19 = vpop.f32.mrf.mxu1 }
 0x368   : > { %3740 = vst.msk [vmem:[%s6189_s22 + $0x48] sm:$0xff] %vm2160_vm5, %v3724_v55  ;;  %v3729_v36 = vmax.f32 %v3713_v21, 0.0  ;;  %v3711_v51 = vadd.f32 %v6174_v5, %v3688_v20  ;;  %v3691_v52 = vadd.f32 %v4522_v19, %v3525_v46 }
 0x369   : > { %v3664_v1 = vpop.f32.mrf.mxu1 }
 0x36a   : > { %3745 = vst.msk [vmem:[%s6189_s22 + $0x70] sm:$0xff] %vm2160_vm5, %v3729_v36  ;;  %v3727_v48 = vmax.f32 %v3711_v51, 0.0  ;;  %v3714_v58 = vadd.f32 %v6174_v5, %v3691_v52  ;;  %v3689_v59 = vadd.f32 %v3664_v1, %v3523_v9 }
 0x36c   : > { %3743 = vst.msk [vmem:[%s6189_s22 + $0x60] sm:$0xff] %vm2160_vm5, %v3727_v48  ;;  %v3730_v8 = vmax.f32 %v3714_v58, 0.0  ;;  %v3712_v25 = vadd.f32 %v6174_v5, %v3689_v59 }
 0x36e   : > { %3746 = vst.msk [vmem:[%s6189_s22 + $0x78] sm:$0xff] %vm2160_vm5, %v3730_v8  ;;  %v3728_v15 = vmax.f32 %v3712_v25, 0.0 }
 0x370   : > { %3744 = vst.msk [vmem:[%s6189_s22 + $0x68] sm:$0xff] %vm2160_vm5, %v3728_v15 }
 0x371 PF: > { %s15_s18 = sadd.s32 1, %s4559_s18  }
 0x372   : > { %p12_p5 = scmp.ge.s32.totalorder %s15_s18, 4  }
 0x374   :  { %14 = sbr.rel (!%p12_p5) target bundleno = 1 (0x1), region = 105 }

</bundles_post_ra>
